<compile_context>
chip_gen: v7x
topology: tpu7x:2x2x1
jax: 0.10.0
libtpu: 0.0.40
codegen_flags: <defaults>
</compile_context>

<pallas_src>
import jax
import jax.numpy as jnp
import numpy as np
from jax import lax
from jax.experimental import pallas as pl
from jax.experimental.pallas import tpu as pltpu


def _round_up(n, m):
    return (n + m - 1) // m * m


def _chunk_rows(H, W):
    """Whole output rows per in-kernel matmul chunk (~128 flattened rows)."""
    target = max(1, 128 // max(W, 1))
    ch = 1
    for c in range(1, min(H, target) + 1):
        if H % c == 0:
            ch = c
    return ch


def _vmem_limit_bytes(est_bytes):
    """Generation-aware scoped-VMEM limit (headroom on v7x's 64 MiB VMEM)."""
    cap = 128 * 2 ** 20
    try:
        cap = int(getattr(pltpu.get_tpu_info(), "vmem_capacity_bytes", cap))
    except Exception:
        pass
    ceiling = max(min(int(cap * 0.72), 100 * 2 ** 20), 32 * 2 ** 20)
    return int(min(max(2 * est_bytes, 32 * 2 ** 20), ceiling))


def residual_block_kernel(x_ref, w1_ref, b1_ref, w2_ref, b2_ref, o_ref,
                          spad1_ref, spad2_ref):
    """Fused residual block for one batch element (NHWC, C lane-padded).

    x_ref   : (H, W, C)        input tile
    w*_ref  : (9*C, C)         conv weights, tap-major rows, BN scale folded in
    b*_ref  : (1, C)           folded conv-bias + eval-BN bias (f32)
    o_ref   : (H, W, C)        output tile
    spad*   : VMEM (H+2, W, C) H-padded staging (input / conv1 output)
    """
    H, W, C = o_ref.shape
    cdt = spad1_ref.dtype
    CH = _chunk_rows(H, W)           # output rows per chunk (whole rows)
    NCH = H // CH
    M = CH * W                       # flattened rows per MXU call

    # Static border masks for the dx=0/2 taps of a flattened row-chunk:
    # flattened row i of a chunk is image column w = i % W.
    col = lax.broadcasted_iota(jnp.int32, (M, 1), 0) % W
    mask_l = col > 0                 # dx = 0 tap needs column w-1
    mask_r = col < (W - 1)           # dx = 2 tap needs column w+1
    zcdt = jnp.zeros((), cdt)

    # ---- stage input, H-padded only: 1 interior store + 2 border rows -------
    zero_row = jnp.zeros((1, W, C), cdt)
    spad1_ref[pl.ds(0, 1)] = zero_row
    spad1_ref[pl.ds(H + 1, 1)] = zero_row
    spad1_ref[pl.ds(1, H)] = x_ref[...].astype(cdt)
    spad2_ref[pl.ds(0, 1)] = zero_row            # conv1-output staging borders
    spad2_ref[pl.ds(H + 1, 1)] = zero_row

    def conv_chunk(src_ref, w_ref, h0, acc):
        # 3x3 conv for CH output rows starting at h0: 9 accumulated matmuls.
        # dy -> leading-dim slice of the H-padded buffer (alignment-free);
        # dx -> XLU roll of the flattened chunk + border mask (no W slices).
        for dy in range(3):
            blk = src_ref[pl.ds(h0 + dy, CH)].reshape(M, C)
            for dx in range(3):
                if dx == 1:
                    tap = blk
                else:
                    tap = pltpu.roll(blk, (1 - dx) % M, axis=0)
                    tap = jnp.where(mask_l if dx == 0 else mask_r, tap, zcdt)
                t = 3 * dy + dx
                acc = acc + jnp.dot(tap, w_ref[pl.ds(t * C, C), :],
                                    preferred_element_type=jnp.float32)
        return acc

    b1 = b1_ref[...].astype(jnp.float32)         # (1, C)
    b2 = b2_ref[...].astype(jnp.float32)

    # ---- conv1 + bias + ReLU -> restage (all chunks before conv2 starts) ----
    def conv1_body(i, carry):
        h0 = i * CH
        acc0 = jnp.broadcast_to(b1, (M, C))
        y1 = jnp.maximum(conv_chunk(spad1_ref, w1_ref, h0, acc0), 0.0)
        spad2_ref[pl.ds(h0 + 1, CH)] = y1.astype(cdt).reshape(CH, W, C)
        return carry

    lax.fori_loop(0, NCH, conv1_body, 0)

    # ---- conv2 + bias + identity + ReLU (identity pre-added into f32 acc) ---
    def conv2_body(i, carry):
        h0 = i * CH
        ident = x_ref[pl.ds(h0, CH)].reshape(M, C).astype(jnp.float32)
        y2 = conv_chunk(spad2_ref, w2_ref, h0, ident + b2)
        out = jnp.maximum(y2, 0.0).astype(o_ref.dtype)
        o_ref[pl.ds(h0, CH)] = out.reshape(CH, W, C)
        return carry

    lax.fori_loop(0, NCH, conv2_body, 0)


def residual_block_nhwc(x_nhwc, params, *, compute_dtype=jnp.bfloat16):
    """NHWC in, NHWC out.  Preferred entry point (no layout round-trips)."""
    w1, w2 = params['w1'], params['w2']            # (3, 3, Cin, Cout) HWIO
    N, H, W, Cin = x_nhwc.shape
    Cout = w1.shape[-1]
    assert Cin == Cout, "downsample=None requires in_channel == out_channel"
    C = Cin
    Cp = _round_up(C, 128)       # lane-pad channels -> dense 128-lane layout
    pad_c = Cp - C               # (no-op for the module's default C=128)

    x = x_nhwc
    if pad_c:
        x = jnp.pad(x, ((0, 0), (0, 0), (0, 0), (0, pad_c)))

    def prep_w(w, scale):
        w = w * scale[None, None, None, :]          # fold eval-BN scale (f32)
        if pad_c:
            w = jnp.pad(w, ((0, 0), (0, 0), (0, pad_c), (0, pad_c)))
        # (3, 3, Cp, Cp) -> (9*Cp, Cp); row block t = 3*dy + dx holds tap (dy, dx)
        return w.reshape(9 * Cp, Cp).astype(compute_dtype)

    def prep_b(b):
        if pad_c:
            b = jnp.pad(b, ((0, pad_c),))
        return b.reshape(1, Cp).astype(jnp.float32)

    w1m = prep_w(w1, params['scale1'])
    w2m = prep_w(w2, params['scale2'])
    b1, b2 = prep_b(params['bias1']), prep_b(params['bias2'])

    cb = np.dtype(compute_dtype).itemsize
    xb = np.dtype(x.dtype).itemsize
    est = (2 * H * W * Cp * xb                     # input double buffer
           + 2 * H * W * Cp * xb                   # output double buffer
           + 2 * 2 * (9 * Cp * Cp * cb + Cp * 4)   # weights + bias (x2 buffers)
           + 2 * (H + 2) * W * Cp * cb)            # two H-padded staging buffers
    vmem_limit = _vmem_limit_bytes(est)

    out = pl.pallas_call(
        residual_block_kernel,
        out_shape=jax.ShapeDtypeStruct((N, H, W, Cp), x_nhwc.dtype),
        grid_spec=pltpu.PrefetchScalarGridSpec(
            num_scalar_prefetch=0,
            grid=(N,),
            in_specs=[
                pl.BlockSpec((None, H, W, Cp), lambda n: (n, 0, 0, 0)),
                pl.BlockSpec((9 * Cp, Cp),     lambda n: (0, 0)),
                pl.BlockSpec((1, Cp),          lambda n: (0, 0)),
                pl.BlockSpec((9 * Cp, Cp),     lambda n: (0, 0)),
                pl.BlockSpec((1, Cp),          lambda n: (0, 0)),
            ],
            out_specs=pl.BlockSpec((None, H, W, Cp), lambda n: (n, 0, 0, 0)),
            scratch_shapes=[
                pltpu.VMEM((H + 2, W, Cp), compute_dtype),   # padded input
                pltpu.VMEM((H + 2, W, Cp), compute_dtype),   # padded conv1 out
            ],
        ),
        compiler_params=pltpu.CompilerParams(
            dimension_semantics=("parallel",),
            vmem_limit_bytes=vmem_limit,
        ),
    )(x, w1m, b1, w2m, b2)

    if pad_c:
        out = out[..., :C]
    return out


def residual_block(x_nchw, params, *, compute_dtype=jnp.bfloat16):
    """NCHW in, NCHW out (matches the PyTorch module, downsample=None).

    The NCHW<->NHWC transposes are wrapper-side XLA ops; callers that already
    hold NHWC activations should call residual_block_nhwc directly.
    """
    x = jnp.transpose(x_nchw, (0, 2, 3, 1))
    out = residual_block_nhwc(x, params, compute_dtype=compute_dtype)
    return jnp.transpose(out, (0, 3, 1, 2))


# ---------------- parameter construction / reference (deterministic) ----------------
EPS = 1e-5


def make_params(key, cin, cout):
    ks = jax.random.split(key, 12)
    w1 = 0.1 * jax.random.normal(ks[0], (3, 3, cin, cout), jnp.float32)
    cb1 = 0.05 * jax.random.normal(ks[1], (cout,), jnp.float32)
    w2 = 0.1 * jax.random.normal(ks[2], (3, 3, cout, cout), jnp.float32)
    cb2 = 0.05 * jax.random.normal(ks[3], (cout,), jnp.float32)
    g1 = 1.0 + 0.1 * jax.random.normal(ks[4], (cout,), jnp.float32)
    be1 = 0.1 * jax.random.normal(ks[5], (cout,), jnp.float32)
    m1 = 0.1 * jax.random.normal(ks[6], (cout,), jnp.float32)
    v1 = 1.0 + 0.1 * jax.random.uniform(ks[7], (cout,), jnp.float32)
    g2 = 1.0 + 0.1 * jax.random.normal(ks[8], (cout,), jnp.float32)
    be2 = 0.1 * jax.random.normal(ks[9], (cout,), jnp.float32)
    m2 = 0.1 * jax.random.normal(ks[10], (cout,), jnp.float32)
    v2 = 1.0 + 0.1 * jax.random.uniform(ks[11], (cout,), jnp.float32)

    # fold conv bias + eval-mode BN into per-channel scale / bias
    scale1 = g1 * jax.lax.rsqrt(v1 + EPS)
    bias1 = (cb1 - m1) * scale1 + be1
    scale2 = g2 * jax.lax.rsqrt(v2 + EPS)
    bias2 = (cb2 - m2) * scale2 + be2

    params = dict(w1=w1, w2=w2, scale1=scale1, bias1=bias1,
                  scale2=scale2, bias2=bias2)
    raw = dict(w1=w1, cb1=cb1, g1=g1, be1=be1, m1=m1, v1=v1,
               w2=w2, cb2=cb2, g2=g2, be2=be2, m2=m2, v2=v2)
    return params, raw


def ref_forward(x_nchw, raw):
    """Pure-JAX reference matching the PyTorch forward (eval-mode BN)."""
    x = jnp.transpose(x_nchw, (0, 2, 3, 1)).astype(jnp.float32)   # NHWC

    def conv(h, w, b):
        y = jax.lax.conv_general_dilated(
            h, w, window_strides=(1, 1), padding='SAME',
            dimension_numbers=('NHWC', 'HWIO', 'NHWC'))
        return y + b

    def bn(y, g, be, m, v):
        return (y - m) * jax.lax.rsqrt(v + EPS) * g + be

    out = conv(x, raw['w1'], raw['cb1'])
    out = bn(out, raw['g1'], raw['be1'], raw['m1'], raw['v1'])
    out = jnp.maximum(out, 0.0)
    out = conv(out, raw['w2'], raw['cb2'])
    out = bn(out, raw['g2'], raw['be2'], raw['m2'], raw['v2'])
    out = jnp.maximum(out + x, 0.0)
    return jnp.transpose(out, (0, 3, 1, 2))                       # NCHW


if __name__ == "__main__":
    key = jax.random.PRNGKey(0)
    k_x, k_p, k_x2, k_p2 = jax.random.split(key, 4)

    # --- Test 1: module defaults (128 channels), f32 MXU feeds ---
    N, C, Hs, Ws = 2, 128, 16, 16
    x = jax.random.normal(k_x, (N, C, Hs, Ws), jnp.float32)        # NCHW input
    params, raw = make_params(k_p, C, C)
    out = jax.block_until_ready(residual_block(x, params, compute_dtype=jnp.float32))
    ref = jax.block_until_ready(ref_forward(x, raw))
    np.testing.assert_allclose(np.asarray(out), np.asarray(ref),
                               rtol=1e-3, atol=1e-3)

    # --- Test 2: small channel count (exercises lane padding) with bf16 feeds ---
    N2, C2 = 2, 8
    x2 = jax.random.normal(k_x2, (N2, C2, Hs, Ws), jnp.float32)
    params2, raw2 = make_params(k_p2, C2, C2)
    out2 = jax.block_until_ready(residual_block(x2, params2))      # default bf16
    ref2 = jax.block_until_ready(ref_forward(x2, raw2))
    np.testing.assert_allclose(np.asarray(out2), np.asarray(ref2),
                               rtol=1e-1, atol=1e-1)               # loose: bf16 smoke check

    print("KERNEL_OK")
</pallas_src>

<mosaic_0001>
module attributes {stable_mosaic.version = 11 : i64} {
  func.func @residual_block_kernel(%arg0: i32, %arg1: memref<1x16x16x128xf32, #tpu.memory_space<vmem>>, %arg2: memref<1152x128xf32, #tpu.memory_space<vmem>>, %arg3: memref<1x128xf32, #tpu.memory_space<vmem>>, %arg4: memref<1152x128xf32, #tpu.memory_space<vmem>>, %arg5: memref<1x128xf32, #tpu.memory_space<vmem>>, %arg6: memref<1x16x16x128xf32, #tpu.memory_space<vmem>>, %arg7: memref<18x16x128xf32, #tpu.memory_space<vmem>>, %arg8: memref<18x16x128xf32, #tpu.memory_space<vmem>>) attributes {dimension_semantics = [#tpu.dimension_semantics<parallel>], iteration_bounds = array<i64: 2>, scalar_prefetch = 0 : i64, scratch_operands = 2 : i64, tpu.core_type = #tpu.core_type<tc>, window_params = [{transform_indices = @transform_0, window_bounds = array<i64: 1, 16, 16, 128>}, {pipeline_mode = #tpu.pipeline_mode<synchronous>, transform_indices = @transform_1, window_bounds = array<i64: 1152, 128>}, {pipeline_mode = #tpu.pipeline_mode<synchronous>, transform_indices = @transform_2, window_bounds = array<i64: 1, 128>}, {pipeline_mode = #tpu.pipeline_mode<synchronous>, transform_indices = @transform_3, window_bounds = array<i64: 1152, 128>}, {pipeline_mode = #tpu.pipeline_mode<synchronous>, transform_indices = @transform_4, window_bounds = array<i64: 1, 128>}, {transform_indices = @transform_5, window_bounds = array<i64: 1, 16, 16, 128>}]} {
    %0 = tpu.iota {dimensions = array<i32: 0>} : vector<128x1xi32>
    %c16_i32 = arith.constant 16 : i32
    %c0_i32 = arith.constant 0 : i32
    %1 = arith.cmpi eq, %c16_i32, %c0_i32 : i32
    %c1_i32 = arith.constant 1 : i32
    %2 = arith.select %1, %c1_i32, %c16_i32 : i32
    %3 = vector.broadcast %2 : i32 to vector<128x1xi32>
    %4 = arith.remsi %0, %3 : vector<128x1xi32>
    %c0_i32_0 = arith.constant 0 : i32
    %5 = vector.broadcast %c0_i32_0 : i32 to vector<128x1xi32>
    %6 = arith.cmpi ne, %4, %5 : vector<128x1xi32>
    %c0_i32_1 = arith.constant 0 : i32
    %7 = vector.broadcast %c0_i32_1 : i32 to vector<128x1xi32>
    %8 = arith.cmpi slt, %4, %7 : vector<128x1xi32>
    %c0_i32_2 = arith.constant 0 : i32
    %9 = arith.cmpi slt, %2, %c0_i32_2 : i32
    %10 = vector.broadcast %9 : i1 to vector<128x1xi1>
    %11 = vector.broadcast %10 : vector<128x1xi1> to vector<128x1xi1>
    %12 = arith.xori %8, %11 : vector<128x1xi1>
    %13 = arith.andi %12, %6 : vector<128x1xi1>
    %14 = vector.broadcast %2 : i32 to vector<128x1xi32>
    %15 = arith.addi %4, %14 : vector<128x1xi32>
    %16 = arith.select %13, %15, %4 : vector<128x1xi1>, vector<128x1xi32>
    %c0_i32_3 = arith.constant 0 : i32
    %17 = vector.broadcast %c0_i32_3 : i32 to vector<128x1xi32>
    %18 = arith.cmpi sgt, %16, %17 : vector<128x1xi32>
    %c15_i32 = arith.constant 15 : i32
    %19 = vector.broadcast %c15_i32 : i32 to vector<128x1xi32>
    %20 = arith.cmpi slt, %16, %19 : vector<128x1xi32>
    %cst = arith.constant 0.000000e+00 : f32
    %21 = vector.broadcast %cst : f32 to vector<1x16x128xf32>
    %c0 = arith.constant 0 : index
    %c0_4 = arith.constant 0 : index
    %c0_5 = arith.constant 0 : index
    %22 = vector.load %arg7[%c0, %c0_4, %c0_5] : memref<18x16x128xf32, #tpu.memory_space<vmem>>, vector<1x16x128xf32>
    tpu.vector_store %arg7[%c0, %c0_4, %c0_5], %21 {strides = array<i32>} : memref<18x16x128xf32, #tpu.memory_space<vmem>>, vector<1x16x128xf32>,
    %c17 = arith.constant 17 : index
    %c0_6 = arith.constant 0 : index
    %c0_7 = arith.constant 0 : index
    %23 = vector.load %arg7[%c17, %c0_6, %c0_7] : memref<18x16x128xf32, #tpu.memory_space<vmem>>, vector<1x16x128xf32>
    tpu.vector_store %arg7[%c17, %c0_6, %c0_7], %21 {strides = array<i32>} : memref<18x16x128xf32, #tpu.memory_space<vmem>>, vector<1x16x128xf32>,
    %c0_8 = arith.constant 0 : index
    %c0_9 = arith.constant 0 : index
    %c0_10 = arith.constant 0 : index
    %c0_11 = arith.constant 0 : index
    %24 = vector.load %arg1[%c0_8, %c0_9, %c0_10, %c0_11] : memref<1x16x16x128xf32, #tpu.memory_space<vmem>>, vector<1x16x16x128xf32>
    %25 = vector.shape_cast %24 : vector<1x16x16x128xf32> to vector<16x16x128xf32>
    %c1 = arith.constant 1 : index
    %c0_12 = arith.constant 0 : index
    %c0_13 = arith.constant 0 : index
    %26 = vector.load %arg7[%c1, %c0_12, %c0_13] : memref<18x16x128xf32, #tpu.memory_space<vmem>>, vector<16x16x128xf32>
    tpu.vector_store %arg7[%c1, %c0_12, %c0_13], %25 {strides = array<i32>} : memref<18x16x128xf32, #tpu.memory_space<vmem>>, vector<16x16x128xf32>,
    %c0_14 = arith.constant 0 : index
    %c0_15 = arith.constant 0 : index
    %c0_16 = arith.constant 0 : index
    %27 = vector.load %arg8[%c0_14, %c0_15, %c0_16] : memref<18x16x128xf32, #tpu.memory_space<vmem>>, vector<1x16x128xf32>
    tpu.vector_store %arg8[%c0_14, %c0_15, %c0_16], %21 {strides = array<i32>} : memref<18x16x128xf32, #tpu.memory_space<vmem>>, vector<1x16x128xf32>,
    %c17_17 = arith.constant 17 : index
    %c0_18 = arith.constant 0 : index
    %c0_19 = arith.constant 0 : index
    %28 = vector.load %arg8[%c17_17, %c0_18, %c0_19] : memref<18x16x128xf32, #tpu.memory_space<vmem>>, vector<1x16x128xf32>
    tpu.vector_store %arg8[%c17_17, %c0_18, %c0_19], %21 {strides = array<i32>} : memref<18x16x128xf32, #tpu.memory_space<vmem>>, vector<1x16x128xf32>,
    %c0_20 = arith.constant 0 : index
    %c0_21 = arith.constant 0 : index
    %29 = vector.load %arg3[%c0_20, %c0_21] : memref<1x128xf32, #tpu.memory_space<vmem>>, vector<1x128xf32>
    %c0_22 = arith.constant 0 : index
    %c0_23 = arith.constant 0 : index
    %30 = vector.load %arg5[%c0_22, %c0_23] : memref<1x128xf32, #tpu.memory_space<vmem>>, vector<1x128xf32>
    %cst_24 = arith.constant 0.000000e+00 : f32
    %c0_i32_25 = arith.constant 0 : i32
    %c2_i32 = arith.constant 2 : i32
    %31 = arith.addi %c0_i32_25, %c2_i32 : i32
    %c1_i32_26 = arith.constant 1 : i32
    scf.for %arg9 = %c0_i32_25 to %31 step %c1_i32_26  : i32 {
      %c8_i32 = arith.constant 8 : i32
      %33 = arith.muli %arg9, %c8_i32 : i32
      %34 = vector.shape_cast %29 : vector<1x128xf32> to vector<1x128xf32>
      %35 = vector.broadcast %34 : vector<1x128xf32> to vector<128x128xf32>
      %c0_i32_33 = arith.constant 0 : i32
      %36 = arith.addi %33, %c0_i32_33 : i32
      %37 = arith.index_cast %36 : i32 to index
      %c0_34 = arith.constant 0 : index
      %c0_35 = arith.constant 0 : index
      %38 = vector.load %arg7[%37, %c0_34, %c0_35] : memref<18x16x128xf32, #tpu.memory_space<vmem>>, vector<8x16x128xf32>
      %39 = vector.shape_cast %38 : vector<8x16x128xf32> to vector<128x128xf32>
      %c1_i32_36 = arith.constant 1 : i32
      %40 = tpu.dynamic_rotate %39 by %c1_i32_36 dim 0 : vector<128x128xf32>, i32 -> vector<128x128xf32>
      %41 = vector.shape_cast %18 : vector<128x1xi1> to vector<128x1xi1>
      %42 = vector.broadcast %41 : vector<128x1xi1> to vector<128x128xi1>
      %43 = vector.broadcast %cst_24 : f32 to vector<128x128xf32>
      %44 = arith.select %42, %40, %43 : vector<128x128xi1>, vector<128x128xf32>
      %c0_37 = arith.constant 0 : index
      %c0_38 = arith.constant 0 : index
      %45 = vector.load %arg2[%c0_37, %c0_38] : memref<1152x128xf32, #tpu.memory_space<vmem>>, vector<128x128xf32>
      %cst_39 = arith.constant dense<0.000000e+00> : vector<128x128xf32>
      %46 = tpu.matmul %44, %45, %cst_39 {dimension_numbers = #tpu.dot_dimension_numbers<[1], [0], [0], [1], [0, 0, 1, 1], [], []>} : vector<128x128xf32>, vector<128x128xf32>, vector<128x128xf32> -> vector<128x128xf32>
      %47 = arith.addf %35, %46 : vector<128x128xf32>
      %c128 = arith.constant 128 : index
      %c0_40 = arith.constant 0 : index
      %48 = vector.load %arg2[%c128, %c0_40] : memref<1152x128xf32, #tpu.memory_space<vmem>>, vector<128x128xf32>
      %cst_41 = arith.constant dense<0.000000e+00> : vector<128x128xf32>
      %49 = tpu.matmul %39, %48, %cst_41 {dimension_numbers = #tpu.dot_dimension_numbers<[1], [0], [0], [1], [0, 0, 1, 1], [], []>} : vector<128x128xf32>, vector<128x128xf32>, vector<128x128xf32> -> vector<128x128xf32>
      %50 = arith.addf %47, %49 : vector<128x128xf32>
      %c127_i32 = arith.constant 127 : i32
      %51 = tpu.dynamic_rotate %39 by %c127_i32 dim 0 : vector<128x128xf32>, i32 -> vector<128x128xf32>
      %52 = vector.shape_cast %20 : vector<128x1xi1> to vector<128x1xi1>
      %53 = vector.broadcast %52 : vector<128x1xi1> to vector<128x128xi1>
      %54 = vector.broadcast %cst_24 : f32 to vector<128x128xf32>
      %55 = arith.select %53, %51, %54 : vector<128x128xi1>, vector<128x128xf32>
      %c256 = arith.constant 256 : index
      %c0_42 = arith.constant 0 : index
      %56 = vector.load %arg2[%c256, %c0_42] : memref<1152x128xf32, #tpu.memory_space<vmem>>, vector<128x128xf32>
      %cst_43 = arith.constant dense<0.000000e+00> : vector<128x128xf32>
      %57 = tpu.matmul %55, %56, %cst_43 {dimension_numbers = #tpu.dot_dimension_numbers<[1], [0], [0], [1], [0, 0, 1, 1], [], []>} : vector<128x128xf32>, vector<128x128xf32>, vector<128x128xf32> -> vector<128x128xf32>
      %58 = arith.addf %50, %57 : vector<128x128xf32>
      %c1_i32_44 = arith.constant 1 : i32
      %59 = arith.addi %33, %c1_i32_44 : i32
      %60 = arith.index_cast %59 : i32 to index
      %c0_45 = arith.constant 0 : index
      %c0_46 = arith.constant 0 : index
      %61 = vector.load %arg7[%60, %c0_45, %c0_46] : memref<18x16x128xf32, #tpu.memory_space<vmem>>, vector<8x16x128xf32>
      %62 = vector.shape_cast %61 : vector<8x16x128xf32> to vector<128x128xf32>
      %c1_i32_47 = arith.constant 1 : i32
      %63 = tpu.dynamic_rotate %62 by %c1_i32_47 dim 0 : vector<128x128xf32>, i32 -> vector<128x128xf32>
      %64 = vector.shape_cast %18 : vector<128x1xi1> to vector<128x1xi1>
      %65 = vector.broadcast %64 : vector<128x1xi1> to vector<128x128xi1>
      %66 = vector.broadcast %cst_24 : f32 to vector<128x128xf32>
      %67 = arith.select %65, %63, %66 : vector<128x128xi1>, vector<128x128xf32>
      %c384 = arith.constant 384 : index
      %c0_48 = arith.constant 0 : index
      %68 = vector.load %arg2[%c384, %c0_48] : memref<1152x128xf32, #tpu.memory_space<vmem>>, vector<128x128xf32>
      %cst_49 = arith.constant dense<0.000000e+00> : vector<128x128xf32>
      %69 = tpu.matmul %67, %68, %cst_49 {dimension_numbers = #tpu.dot_dimension_numbers<[1], [0], [0], [1], [0, 0, 1, 1], [], []>} : vector<128x128xf32>, vector<128x128xf32>, vector<128x128xf32> -> vector<128x128xf32>
      %70 = arith.addf %58, %69 : vector<128x128xf32>
      %c512 = arith.constant 512 : index
      %c0_50 = arith.constant 0 : index
      %71 = vector.load %arg2[%c512, %c0_50] : memref<1152x128xf32, #tpu.memory_space<vmem>>, vector<128x128xf32>
      %cst_51 = arith.constant dense<0.000000e+00> : vector<128x128xf32>
      %72 = tpu.matmul %62, %71, %cst_51 {dimension_numbers = #tpu.dot_dimension_numbers<[1], [0], [0], [1], [0, 0, 1, 1], [], []>} : vector<128x128xf32>, vector<128x128xf32>, vector<128x128xf32> -> vector<128x128xf32>
      %73 = arith.addf %70, %72 : vector<128x128xf32>
      %c127_i32_52 = arith.constant 127 : i32
      %74 = tpu.dynamic_rotate %62 by %c127_i32_52 dim 0 : vector<128x128xf32>, i32 -> vector<128x128xf32>
      %75 = vector.shape_cast %20 : vector<128x1xi1> to vector<128x1xi1>
      %76 = vector.broadcast %75 : vector<128x1xi1> to vector<128x128xi1>
      %77 = vector.broadcast %cst_24 : f32 to vector<128x128xf32>
      %78 = arith.select %76, %74, %77 : vector<128x128xi1>, vector<128x128xf32>
      %c640 = arith.constant 640 : index
      %c0_53 = arith.constant 0 : index
      %79 = vector.load %arg2[%c640, %c0_53] : memref<1152x128xf32, #tpu.memory_space<vmem>>, vector<128x128xf32>
      %cst_54 = arith.constant dense<0.000000e+00> : vector<128x128xf32>
      %80 = tpu.matmul %78, %79, %cst_54 {dimension_numbers = #tpu.dot_dimension_numbers<[1], [0], [0], [1], [0, 0, 1, 1], [], []>} : vector<128x128xf32>, vector<128x128xf32>, vector<128x128xf32> -> vector<128x128xf32>
      %81 = arith.addf %73, %80 : vector<128x128xf32>
      %c2_i32_55 = arith.constant 2 : i32
      %82 = arith.addi %33, %c2_i32_55 : i32
      %83 = arith.index_cast %82 : i32 to index
      %c0_56 = arith.constant 0 : index
      %c0_57 = arith.constant 0 : index
      %84 = vector.load %arg7[%83, %c0_56, %c0_57] : memref<18x16x128xf32, #tpu.memory_space<vmem>>, vector<8x16x128xf32>
      %85 = vector.shape_cast %84 : vector<8x16x128xf32> to vector<128x128xf32>
      %c1_i32_58 = arith.constant 1 : i32
      %86 = tpu.dynamic_rotate %85 by %c1_i32_58 dim 0 : vector<128x128xf32>, i32 -> vector<128x128xf32>
      %87 = vector.shape_cast %18 : vector<128x1xi1> to vector<128x1xi1>
      %88 = vector.broadcast %87 : vector<128x1xi1> to vector<128x128xi1>
      %89 = vector.broadcast %cst_24 : f32 to vector<128x128xf32>
      %90 = arith.select %88, %86, %89 : vector<128x128xi1>, vector<128x128xf32>
      %c768 = arith.constant 768 : index
      %c0_59 = arith.constant 0 : index
      %91 = vector.load %arg2[%c768, %c0_59] : memref<1152x128xf32, #tpu.memory_space<vmem>>, vector<128x128xf32>
      %cst_60 = arith.constant dense<0.000000e+00> : vector<128x128xf32>
      %92 = tpu.matmul %90, %91, %cst_60 {dimension_numbers = #tpu.dot_dimension_numbers<[1], [0], [0], [1], [0, 0, 1, 1], [], []>} : vector<128x128xf32>, vector<128x128xf32>, vector<128x128xf32> -> vector<128x128xf32>
      %93 = arith.addf %81, %92 : vector<128x128xf32>
      %c896 = arith.constant 896 : index
      %c0_61 = arith.constant 0 : index
      %94 = vector.load %arg2[%c896, %c0_61] : memref<1152x128xf32, #tpu.memory_space<vmem>>, vector<128x128xf32>
      %cst_62 = arith.constant dense<0.000000e+00> : vector<128x128xf32>
      %95 = tpu.matmul %85, %94, %cst_62 {dimension_numbers = #tpu.dot_dimension_numbers<[1], [0], [0], [1], [0, 0, 1, 1], [], []>} : vector<128x128xf32>, vector<128x128xf32>, vector<128x128xf32> -> vector<128x128xf32>
      %96 = arith.addf %93, %95 : vector<128x128xf32>
      %c127_i32_63 = arith.constant 127 : i32
      %97 = tpu.dynamic_rotate %85 by %c127_i32_63 dim 0 : vector<128x128xf32>, i32 -> vector<128x128xf32>
      %98 = vector.shape_cast %20 : vector<128x1xi1> to vector<128x1xi1>
      %99 = vector.broadcast %98 : vector<128x1xi1> to vector<128x128xi1>
      %100 = vector.broadcast %cst_24 : f32 to vector<128x128xf32>
      %101 = arith.select %99, %97, %100 : vector<128x128xi1>, vector<128x128xf32>
      %c1024 = arith.constant 1024 : index
      %c0_64 = arith.constant 0 : index
      %102 = vector.load %arg2[%c1024, %c0_64] : memref<1152x128xf32, #tpu.memory_space<vmem>>, vector<128x128xf32>
      %cst_65 = arith.constant dense<0.000000e+00> : vector<128x128xf32>
      %103 = tpu.matmul %101, %102, %cst_65 {dimension_numbers = #tpu.dot_dimension_numbers<[1], [0], [0], [1], [0, 0, 1, 1], [], []>} : vector<128x128xf32>, vector<128x128xf32>, vector<128x128xf32> -> vector<128x128xf32>
      %104 = arith.addf %96, %103 : vector<128x128xf32>
      %cst_66 = arith.constant 0.000000e+00 : f32
      %105 = vector.broadcast %cst_66 : f32 to vector<128x128xf32>
      %106 = arith.maximumf %104, %105 : vector<128x128xf32>
      %107 = vector.shape_cast %106 : vector<128x128xf32> to vector<8x16x128xf32>
      %c1_i32_67 = arith.constant 1 : i32
      %108 = arith.addi %33, %c1_i32_67 : i32
      %109 = arith.index_cast %108 : i32 to index
      %c0_68 = arith.constant 0 : index
      %c0_69 = arith.constant 0 : index
      %110 = vector.load %arg8[%109, %c0_68, %c0_69] : memref<18x16x128xf32, #tpu.memory_space<vmem>>, vector<8x16x128xf32>
      tpu.vector_store %arg8[%109, %c0_68, %c0_69], %107 {strides = array<i32>} : memref<18x16x128xf32, #tpu.memory_space<vmem>>, vector<8x16x128xf32>,
    }
    %c2_i32_27 = arith.constant 2 : i32
    %cst_28 = arith.constant 0.000000e+00 : f32
    %c0_i32_29 = arith.constant 0 : i32
    %c2_i32_30 = arith.constant 2 : i32
    %32 = arith.addi %c0_i32_29, %c2_i32_30 : i32
    %c1_i32_31 = arith.constant 1 : i32
    scf.for %arg9 = %c0_i32_29 to %32 step %c1_i32_31  : i32 {
      %c8_i32 = arith.constant 8 : i32
      %33 = arith.muli %arg9, %c8_i32 : i32
      %c0_33 = arith.constant 0 : index
      %34 = arith.index_cast %33 : i32 to index
      %c0_34 = arith.constant 0 : index
      %c0_35 = arith.constant 0 : index
      %35 = vector.load %arg1[%c0_33, %34, %c0_34, %c0_35] : memref<1x16x16x128xf32, #tpu.memory_space<vmem>>, vector<1x8x16x128xf32>
      %36 = vector.shape_cast %35 : vector<1x8x16x128xf32> to vector<8x16x128xf32>
      %37 = vector.shape_cast %36 : vector<8x16x128xf32> to vector<128x128xf32>
      %38 = vector.broadcast %30 : vector<1x128xf32> to vector<128x128xf32>
      %39 = arith.addf %37, %38 : vector<128x128xf32>
      %c0_i32_36 = arith.constant 0 : i32
      %40 = arith.addi %33, %c0_i32_36 : i32
      %41 = arith.index_cast %40 : i32 to index
      %c0_37 = arith.constant 0 : index
      %c0_38 = arith.constant 0 : index
      %42 = vector.load %arg8[%41, %c0_37, %c0_38] : memref<18x16x128xf32, #tpu.memory_space<vmem>>, vector<8x16x128xf32>
      %43 = vector.shape_cast %42 : vector<8x16x128xf32> to vector<128x128xf32>
      %c1_i32_39 = arith.constant 1 : i32
      %44 = tpu.dynamic_rotate %43 by %c1_i32_39 dim 0 : vector<128x128xf32>, i32 -> vector<128x128xf32>
      %45 = vector.shape_cast %18 : vector<128x1xi1> to vector<128x1xi1>
      %46 = vector.broadcast %45 : vector<128x1xi1> to vector<128x128xi1>
      %47 = vector.broadcast %cst_28 : f32 to vector<128x128xf32>
      %48 = arith.select %46, %44, %47 : vector<128x128xi1>, vector<128x128xf32>
      %c0_40 = arith.constant 0 : index
      %c0_41 = arith.constant 0 : index
      %49 = vector.load %arg4[%c0_40, %c0_41] : memref<1152x128xf32, #tpu.memory_space<vmem>>, vector<128x128xf32>
      %cst_42 = arith.constant dense<0.000000e+00> : vector<128x128xf32>
      %50 = tpu.matmul %48, %49, %cst_42 {dimension_numbers = #tpu.dot_dimension_numbers<[1], [0], [0], [1], [0, 0, 1, 1], [], []>} : vector<128x128xf32>, vector<128x128xf32>, vector<128x128xf32> -> vector<128x128xf32>
      %51 = arith.addf %39, %50 : vector<128x128xf32>
      %c128 = arith.constant 128 : index
      %c0_43 = arith.constant 0 : index
      %52 = vector.load %arg4[%c128, %c0_43] : memref<1152x128xf32, #tpu.memory_space<vmem>>, vector<128x128xf32>
      %cst_44 = arith.constant dense<0.000000e+00> : vector<128x128xf32>
      %53 = tpu.matmul %43, %52, %cst_44 {dimension_numbers = #tpu.dot_dimension_numbers<[1], [0], [0], [1], [0, 0, 1, 1], [], []>} : vector<128x128xf32>, vector<128x128xf32>, vector<128x128xf32> -> vector<128x128xf32>
      %54 = arith.addf %51, %53 : vector<128x128xf32>
      %c127_i32 = arith.constant 127 : i32
      %55 = tpu.dynamic_rotate %43 by %c127_i32 dim 0 : vector<128x128xf32>, i32 -> vector<128x128xf32>
      %56 = vector.shape_cast %20 : vector<128x1xi1> to vector<128x1xi1>
      %57 = vector.broadcast %56 : vector<128x1xi1> to vector<128x128xi1>
      %58 = vector.broadcast %cst_28 : f32 to vector<128x128xf32>
      %59 = arith.select %57, %55, %58 : vector<128x128xi1>, vector<128x128xf32>
      %c256 = arith.constant 256 : index
      %c0_45 = arith.constant 0 : index
      %60 = vector.load %arg4[%c256, %c0_45] : memref<1152x128xf32, #tpu.memory_space<vmem>>, vector<128x128xf32>
      %cst_46 = arith.constant dense<0.000000e+00> : vector<128x128xf32>
      %61 = tpu.matmul %59, %60, %cst_46 {dimension_numbers = #tpu.dot_dimension_numbers<[1], [0], [0], [1], [0, 0, 1, 1], [], []>} : vector<128x128xf32>, vector<128x128xf32>, vector<128x128xf32> -> vector<128x128xf32>
      %62 = arith.addf %54, %61 : vector<128x128xf32>
      %c1_i32_47 = arith.constant 1 : i32
      %63 = arith.addi %33, %c1_i32_47 : i32
      %64 = arith.index_cast %63 : i32 to index
      %c0_48 = arith.constant 0 : index
      %c0_49 = arith.constant 0 : index
      %65 = vector.load %arg8[%64, %c0_48, %c0_49] : memref<18x16x128xf32, #tpu.memory_space<vmem>>, vector<8x16x128xf32>
      %66 = vector.shape_cast %65 : vector<8x16x128xf32> to vector<128x128xf32>
      %c1_i32_50 = arith.constant 1 : i32
      %67 = tpu.dynamic_rotate %66 by %c1_i32_50 dim 0 : vector<128x128xf32>, i32 -> vector<128x128xf32>
      %68 = vector.shape_cast %18 : vector<128x1xi1> to vector<128x1xi1>
      %69 = vector.broadcast %68 : vector<128x1xi1> to vector<128x128xi1>
      %70 = vector.broadcast %cst_28 : f32 to vector<128x128xf32>
      %71 = arith.select %69, %67, %70 : vector<128x128xi1>, vector<128x128xf32>
      %c384 = arith.constant 384 : index
      %c0_51 = arith.constant 0 : index
      %72 = vector.load %arg4[%c384, %c0_51] : memref<1152x128xf32, #tpu.memory_space<vmem>>, vector<128x128xf32>
      %cst_52 = arith.constant dense<0.000000e+00> : vector<128x128xf32>
      %73 = tpu.matmul %71, %72, %cst_52 {dimension_numbers = #tpu.dot_dimension_numbers<[1], [0], [0], [1], [0, 0, 1, 1], [], []>} : vector<128x128xf32>, vector<128x128xf32>, vector<128x128xf32> -> vector<128x128xf32>
      %74 = arith.addf %62, %73 : vector<128x128xf32>
      %c512 = arith.constant 512 : index
      %c0_53 = arith.constant 0 : index
      %75 = vector.load %arg4[%c512, %c0_53] : memref<1152x128xf32, #tpu.memory_space<vmem>>, vector<128x128xf32>
      %cst_54 = arith.constant dense<0.000000e+00> : vector<128x128xf32>
      %76 = tpu.matmul %66, %75, %cst_54 {dimension_numbers = #tpu.dot_dimension_numbers<[1], [0], [0], [1], [0, 0, 1, 1], [], []>} : vector<128x128xf32>, vector<128x128xf32>, vector<128x128xf32> -> vector<128x128xf32>
      %77 = arith.addf %74, %76 : vector<128x128xf32>
      %c127_i32_55 = arith.constant 127 : i32
      %78 = tpu.dynamic_rotate %66 by %c127_i32_55 dim 0 : vector<128x128xf32>, i32 -> vector<128x128xf32>
      %79 = vector.shape_cast %20 : vector<128x1xi1> to vector<128x1xi1>
      %80 = vector.broadcast %79 : vector<128x1xi1> to vector<128x128xi1>
      %81 = vector.broadcast %cst_28 : f32 to vector<128x128xf32>
      %82 = arith.select %80, %78, %81 : vector<128x128xi1>, vector<128x128xf32>
      %c640 = arith.constant 640 : index
      %c0_56 = arith.constant 0 : index
      %83 = vector.load %arg4[%c640, %c0_56] : memref<1152x128xf32, #tpu.memory_space<vmem>>, vector<128x128xf32>
      %cst_57 = arith.constant dense<0.000000e+00> : vector<128x128xf32>
      %84 = tpu.matmul %82, %83, %cst_57 {dimension_numbers = #tpu.dot_dimension_numbers<[1], [0], [0], [1], [0, 0, 1, 1], [], []>} : vector<128x128xf32>, vector<128x128xf32>, vector<128x128xf32> -> vector<128x128xf32>
      %85 = arith.addf %77, %84 : vector<128x128xf32>
      %c2_i32_58 = arith.constant 2 : i32
      %86 = arith.addi %33, %c2_i32_58 : i32
      %87 = arith.index_cast %86 : i32 to index
      %c0_59 = arith.constant 0 : index
      %c0_60 = arith.constant 0 : index
      %88 = vector.load %arg8[%87, %c0_59, %c0_60] : memref<18x16x128xf32, #tpu.memory_space<vmem>>, vector<8x16x128xf32>
      %89 = vector.shape_cast %88 : vector<8x16x128xf32> to vector<128x128xf32>
      %c1_i32_61 = arith.constant 1 : i32
      %90 = tpu.dynamic_rotate %89 by %c1_i32_61 dim 0 : vector<128x128xf32>, i32 -> vector<128x128xf32>
      %91 = vector.shape_cast %18 : vector<128x1xi1> to vector<128x1xi1>
      %92 = vector.broadcast %91 : vector<128x1xi1> to vector<128x128xi1>
      %93 = vector.broadcast %cst_28 : f32 to vector<128x128xf32>
      %94 = arith.select %92, %90, %93 : vector<128x128xi1>, vector<128x128xf32>
      %c768 = arith.constant 768 : index
      %c0_62 = arith.constant 0 : index
      %95 = vector.load %arg4[%c768, %c0_62] : memref<1152x128xf32, #tpu.memory_space<vmem>>, vector<128x128xf32>
      %cst_63 = arith.constant dense<0.000000e+00> : vector<128x128xf32>
      %96 = tpu.matmul %94, %95, %cst_63 {dimension_numbers = #tpu.dot_dimension_numbers<[1], [0], [0], [1], [0, 0, 1, 1], [], []>} : vector<128x128xf32>, vector<128x128xf32>, vector<128x128xf32> -> vector<128x128xf32>
      %97 = arith.addf %85, %96 : vector<128x128xf32>
      %c896 = arith.constant 896 : index
      %c0_64 = arith.constant 0 : index
      %98 = vector.load %arg4[%c896, %c0_64] : memref<1152x128xf32, #tpu.memory_space<vmem>>, vector<128x128xf32>
      %cst_65 = arith.constant dense<0.000000e+00> : vector<128x128xf32>
      %99 = tpu.matmul %89, %98, %cst_65 {dimension_numbers = #tpu.dot_dimension_numbers<[1], [0], [0], [1], [0, 0, 1, 1], [], []>} : vector<128x128xf32>, vector<128x128xf32>, vector<128x128xf32> -> vector<128x128xf32>
      %100 = arith.addf %97, %99 : vector<128x128xf32>
      %c127_i32_66 = arith.constant 127 : i32
      %101 = tpu.dynamic_rotate %89 by %c127_i32_66 dim 0 : vector<128x128xf32>, i32 -> vector<128x128xf32>
      %102 = vector.shape_cast %20 : vector<128x1xi1> to vector<128x1xi1>
      %103 = vector.broadcast %102 : vector<128x1xi1> to vector<128x128xi1>
      %104 = vector.broadcast %cst_28 : f32 to vector<128x128xf32>
      %105 = arith.select %103, %101, %104 : vector<128x128xi1>, vector<128x128xf32>
      %c1024 = arith.constant 1024 : index
      %c0_67 = arith.constant 0 : index
      %106 = vector.load %arg4[%c1024, %c0_67] : memref<1152x128xf32, #tpu.memory_space<vmem>>, vector<128x128xf32>
      %cst_68 = arith.constant dense<0.000000e+00> : vector<128x128xf32>
      %107 = tpu.matmul %105, %106, %cst_68 {dimension_numbers = #tpu.dot_dimension_numbers<[1], [0], [0], [1], [0, 0, 1, 1], [], []>} : vector<128x128xf32>, vector<128x128xf32>, vector<128x128xf32> -> vector<128x128xf32>
      %108 = arith.addf %100, %107 : vector<128x128xf32>
      %cst_69 = arith.constant 0.000000e+00 : f32
      %109 = vector.broadcast %cst_69 : f32 to vector<128x128xf32>
      %110 = arith.maximumf %108, %109 : vector<128x128xf32>
      %111 = vector.shape_cast %110 : vector<128x128xf32> to vector<8x16x128xf32>
      %c0_70 = arith.constant 0 : index
      %112 = arith.index_cast %33 : i32 to index
      %c0_71 = arith.constant 0 : index
      %c0_72 = arith.constant 0 : index
      %113 = vector.load %arg6[%c0_70, %112, %c0_71, %c0_72] : memref<1x16x16x128xf32, #tpu.memory_space<vmem>>, vector<1x8x16x128xf32>
      %114 = vector.shape_cast %113 : vector<1x8x16x128xf32> to vector<8x16x128xf32>
      %115 = vector.shape_cast %111 : vector<8x16x128xf32> to vector<1x8x16x128xf32>
      tpu.vector_store %arg6[%c0_70, %112, %c0_71, %c0_72], %115 {strides = array<i32>} : memref<1x16x16x128xf32, #tpu.memory_space<vmem>>, vector<1x8x16x128xf32>,
    }
    %c2_i32_32 = arith.constant 2 : i32
    return
  }
  func.func @transform_0(%arg0: i32) -> (i32, i32, i32, i32) {
    %c0_i32 = arith.constant 0 : i32
    %c0_i32_0 = arith.constant 0 : i32
    %c0_i32_1 = arith.constant 0 : i32
    %c0_i32_2 = arith.constant 0 : i32
    return %arg0, %c0_i32, %c0_i32_0, %c0_i32_1 : i32, i32, i32, i32
  }
  func.func @transform_1(%arg0: i32) -> (i32, i32) {
    %c0_i32 = arith.constant 0 : i32
    %c0_i32_0 = arith.constant 0 : i32
    %c0_i32_1 = arith.constant 0 : i32
    return %c0_i32, %c0_i32_0 : i32, i32
  }
  func.func @transform_2(%arg0: i32) -> (i32, i32) {
    %c0_i32 = arith.constant 0 : i32
    %c0_i32_0 = arith.constant 0 : i32
    %c0_i32_1 = arith.constant 0 : i32
    return %c0_i32, %c0_i32_0 : i32, i32
  }
  func.func @transform_3(%arg0: i32) -> (i32, i32) {
    %c0_i32 = arith.constant 0 : i32
    %c0_i32_0 = arith.constant 0 : i32
    %c0_i32_1 = arith.constant 0 : i32
    return %c0_i32, %c0_i32_0 : i32, i32
  }
  func.func @transform_4(%arg0: i32) -> (i32, i32) {
    %c0_i32 = arith.constant 0 : i32
    %c0_i32_0 = arith.constant 0 : i32
    %c0_i32_1 = arith.constant 0 : i32
    return %c0_i32, %c0_i32_0 : i32, i32
  }
  func.func @transform_5(%arg0: i32) -> (i32, i32, i32, i32) {
    %c0_i32 = arith.constant 0 : i32
    %c0_i32_0 = arith.constant 0 : i32
    %c0_i32_1 = arith.constant 0 : i32
    %c0_i32_2 = arith.constant 0 : i32
    return %arg0, %c0_i32, %c0_i32_0, %c0_i32_1 : i32, i32, i32, i32
  }
}

</mosaic_0001>

<bundles_post_ra>
// kernel: tpu_custom_call.1
= control target key start
LH: loop header
LB: loop body
LE: loop exit
PB: predicated region body
PF: predicated region fallthrough
CT: control target
= control target key end

     0   :  { %10 = vsyncpa [#allocation5], 0  ;;  %s9510_s0 = inlined_call_operand.hbm [shape: f32[2,16,16,128], index: 0, kind: input, shape index: {}]   ;;  %s9511_s1 = inlined_call_operand.hbm [shape: f32[1152,128], index: 1, kind: input, shape index: {}]   ;;  %s9512_s2 = inlined_call_operand.vmem [shape: f32[1,128], index: 2, kind: input, shape index: {}]   ;;  %s9513_s3 = inlined_call_operand.hbm [shape: f32[1152,128], index: 3, kind: input, shape index: {}]   ;;  %s9514_s4 = inlined_call_operand.vmem [shape: f32[1,128], index: 4, kind: input, shape index: {}]   ;;  %s9515_s5 = inlined_call_operand.hbm [shape: f32[2,16,16,128], index: 5, kind: output, shape index: {}]  }
   0x1   :  { %12 = vsyncpa [#allocation5 + $0x1], 0 }
   0x2   :  { %13 = vsyncpa [#allocation8], 0 }
   0x3   :  { %14 = vsyncpa [#allocation6], 0 }
   0x4   :  { %16 = vsyncpa [#allocation6 + $0x1], 0  ;;  %s7870_s18 = smov 0   ;;  %s7872_s19 = smov 0  }
   0x5   :  { %s7874_s20 = smov 0   ;;  %s7876_s21 = smov 0  }
   0x6 LB: > { %s7891_s22 = sadd.s32 4294967295, %s7821_s21   ;;  %s4865_s23 = sadd.s32 4294967294, %s7821_s21   ;;  %s7821_s21 = sphi %s7876_s21, %s9802_s21   ;;  %s7817_s20 = sphi %s7874_s20, %s9801_s20   ;;  %s7813_s19 = sphi %s7872_s19, %s9800_s19   ;;  %s7809_s18 = sphi %s7870_s18, %s9799_s18  }
   0x7   : > { %p42_p0 = scmp.ne.s32.totalorder %s7813_s19, %s7809_s18  ;;  %p9516_p1 = scmp.eq.s32.totalorder %s7891_s22, 0 }
   0x8   : > { %p156_p3 = scmp.eq.s32.totalorder %s4865_s23, 1  ;;  %p4866_p5 = scmp.ge.s32.totalorder %s7821_s21, 1 }
   0x9   : > { %p7900_p4 = por %p9516_p1, %p42_p0  ;;  %p163_p7 = scmp.lt.s32.totalorder %s7821_s21, 3 }
   0xa   : > { %p7905_p6 = por %p156_p3, %p42_p0  ;;  %s7831_s27 = smov [#allocation7]  }
   0xb   : > { %s9586_s24 = scalar_select %p7900_p4, 1, 0 }
   0xc   : > { %s9587_s25 = scalar_select %p7905_p6, 1, 0 }
   0xd   : > { %p7910_p8 = pnand %p4866_p5, %p163_p7  ;;  %s175_s28 = sshll.u32 %s7831_s27, 4  ;;  %s7914_s28 = int_to_ptr.vmem [resolvable:$true] %s175_s28 }
   0xe   : > { %s7832_s30 = smov [#allocation9]   ;;  %s7657_s9 = scalar_lea.hbm %s9511_s1, 18432 }
   0xf   : > { %p7576_p9 = pneg %p7910_p8  ;;  %s191_s6 = sshll.u32 %s7832_s30, 4  ;;  %s7925_s6 = int_to_ptr.vmem [resolvable:$true] %s191_s6 }
  0x10   : > { %p7658_p12 = scmp.ne.s32.totalorder %s9511_s1, %s7657_s9  ;;  %p7664_p5 = scmp.lt.u32.totalorder %s7657_s9, %s9511_s1 }
  0x11   : > { %p7921_p11 = pnand %p7576_p9, %p9516_p1 }
  0x13   : > { %p7659_p13 = pneg %p7921_p11 }
  0x15   : > { %p7660_p0 = pnand %p7659_p13, %p7658_p12 }
  0x17   : > { %p7661_p3 = pneg %p7660_p0 }
  0x19   : > { %p7666_p7 = pnand %p7664_p5, %p7661_p3 }
  0x1b   : > { %7669 = shalt.err (!%p7666_p7)
}
  0x1c   : > { %s7670_s14 = scalar_lea.vmem %s7914_s28, 18432  ;;  %p7678_p2 = scmp.lt.s32.totalorder %s7914_s28, %s7914_s28 }
  0x1d   : > { %p7671_p9 = scmp.ne.s32.totalorder %s7914_s28, %s7670_s14  ;;  %p7679_p12 = scmp.lt.s32.totalorder %s7670_s14, %s7670_s14 }
  0x1f   : > { %p7673_p10 = pnand %p7671_p9, %p7659_p13  ;;  %p7680_p0 = por %p7679_p12, %p7678_p2 }
  0x21   : > { %p7674_p1 = pneg %p7673_p10 }
  0x23   : > { %p7681_p6 = pnand %p7680_p0, %p7674_p1 }
  0x25   : > { %7684 = shalt.err (!%p7681_p6)
}
  0x26   : > { %s7833_s15 = smov 128   ;;  %s7834_s16 = smov 8  }
  0x27   : > { %7579 = dma.hbm_to_vmem [thread:$0]  (!%p7921_p11), %s9511_s1, 18432, %s7914_s28, [#allocation8], %s7833_s15, %s7833_s15, %s7834_s16  }
  0x28   : > { %s7685_s7 = scalar_lea.hbm %s9513_s3, 18432 }
  0x29   : > { %p7686_p1 = scmp.ne.s32.totalorder %s9513_s3, %s7685_s7  ;;  %p7692_p10 = scmp.lt.u32.totalorder %s7685_s7, %s9513_s3 }
  0x2b   : > { %p7688_p2 = pnand %p7686_p1, %p7659_p13 }
  0x2d   : > { %p7689_p6 = pneg %p7688_p2 }
  0x2f   : > { %p7694_p3 = pnand %p7692_p10, %p7689_p6 }
  0x31   : > { %7697 = shalt.err (!%p7694_p3)
}
  0x32   : > { %s7698_s28 = scalar_lea.vmem %s7925_s6, 18432  ;;  %p7706_p12 = scmp.lt.s32.totalorder %s7925_s6, %s7925_s6 }
  0x33   : > { %p7699_p5 = scmp.ne.s32.totalorder %s7925_s6, %s7698_s28  ;;  %p7707_p0 = scmp.lt.s32.totalorder %s7698_s28, %s7698_s28 }
  0x35   : > { %p7701_p7 = pnand %p7699_p5, %p7659_p13  ;;  %p7708_p1 = por %p7707_p0, %p7706_p12 }
  0x37   : > { %p7702_p9 = pneg %p7701_p7 }
  0x39   : > { %p7709_p2 = pnand %p7708_p1, %p7702_p9 }
  0x3b   : > { %7712 = shalt.err (!%p7709_p2)
}
  0x3c   : > { %7582 = dma.hbm_to_vmem [thread:$0]  (!%p7921_p11), %s9513_s3, 18432, %s7925_s6, [#allocation8], %s7833_s15, %s7833_s15, %s7834_s16  }
  0x3d   : > { %s7986_s29 = sadd.s32 1, %s7821_s21   ;;  %s29_s14 = sadd.s32 1, %s7817_s20 }
  0x3e   : > { %s26_s17 = ssub.s32 %s7821_s21, %s7986_s29  ;;  %p36_p13 = scmp.ne.s32.totalorder %s7817_s20, %s7813_s19 }
  0x3f   : > { %p27_p6 = scmp.eq.s32.totalorder %s26_s17, 0  ;;  %p37_p10 = scmp.eq.s32.totalorder %s7821_s21, 0 }
  0x40   : > { %p9590_p3 = scmp.eq.s32.totalorder %s7891_s22, 1  ;;  %p7593_p7 = scmp.lt.s32.totalorder %s7821_s21, 2 }
  0x41   : > { %s8002_s27 = scalar_select %p27_p6, %s7817_s20, %s29_s14  }
  0x42   : > { %p7996_p5 = por %p9590_p3, %p36_p13  ;;  %p38_p9 = por %p37_p10, %p36_p13 }
  0x43   : > { %s208_s30 = sand.u32 1, %s7817_s20   ;;  %s5075_s6 = sshll.u32 %s7821_s21, 12 }
  0x44   : > { %s9591_s23 = scalar_select %p7996_p5, 1, 0 }
  0x45   : > { %s4870_s7 = sshll.u32 %s208_s30, 8  ;;  %s8009_s10 = scalar_lea.hbm %s9510_s0, %s5075_s6 }
  0x46   : > { %s212_s11 = scalar_lea.vmem [#allocation4], %s4870_s7  ;;  %p8013_p11 = pnand %p7593_p7, %p38_p9 }
  0x47   : > { %s219_s28 = sshll.u32 %s212_s11, 4  ;;  %s8017_s13 = scalar_lea.sflag [#allocation5], %s208_s30  ;;  %s8011_s28 = int_to_ptr.vmem [resolvable:$true] %s219_s28 }
  0x48   : > { %s7713_s14 = scalar_lea.hbm %s8009_s10, 4096  ;;  %p7715_p0 = pneg %p8013_p11 }
  0x49   : > { %p7714_p12 = scmp.ne.s32.totalorder %s8009_s10, %s7713_s14  ;;  %s7718_s6 = scalar_lea.hbm %s9510_s0, 8192 }
  0x4a   : > { %p7719_p13 = scmp.lt.u32.totalorder %s8009_s10, %s9510_s0  ;;  %p7720_p6 = scmp.lt.u32.totalorder %s7718_s6, %s7713_s14 }
  0x4b   : > { %p7716_p1 = pnand %p7715_p0, %p7714_p12  ;;  %p7722_p3 = scmp.lt.u32.totalorder %s7713_s14, %s8009_s10 }
  0x4c   : > { %p7721_p10 = por %p7720_p6, %p7719_p13 }
  0x4d   : > { %p7717_p2 = pneg %p7716_p1 }
  0x4e   : > { %p7723_p7 = por %p7722_p3, %p7721_p10 }
  0x50   : > { %p7724_p9 = pnand %p7723_p7, %p7717_p2 }
  0x52   : > { %7727 = shalt.err (!%p7724_p9)
}
  0x53   : > { %s7728_s30 = scalar_lea.vmem %s8011_s28, 4096  ;;  %s7835_s11 = smov [#allocation4]  }
  0x54   : > { %p7729_p12 = scmp.ne.s32.totalorder %s8011_s28, %s7728_s30  ;;  %s7733_s17 = sshll.u32 %s7835_s11, 4  ;;  %s7734_s17 = int_to_ptr.vmem [resolvable:$false] %s7733_s17 }
  0x55   : > { %s7735_s7 = scalar_lea.vmem %s7734_s17, 8192  ;;  %p7736_p4 = scmp.lt.s32.totalorder %s8011_s28, %s7734_s17 }
  0x56   : > { %p7731_p1 = pnand %p7729_p12, %p7715_p0  ;;  %p7737_p13 = scmp.lt.s32.totalorder %s7735_s7, %s7728_s30 }
  0x58   : > { %p7732_p5 = pneg %p7731_p1  ;;  %p7738_p6 = por %p7737_p13, %p7736_p4 }
  0x5a   : > { %p7739_p10 = pnand %p7738_p6, %p7732_p5 }
  0x5c   : > { %7742 = shalt.err (!%p7739_p10)
}
  0x5d   : > { %7586 = dma.hbm_to_vmem [thread:$0]  (!%p8013_p11), %s8009_s10, 4096, %s8011_s28, %s8017_s13, %s7833_s15, %s7833_s15, %s7834_s16  }
  0x5e   : > { %231 = sbr.rel (%p7910_p8) target bundleno = 938 (0x3aa), region = 40 }
  0x65   : > { %s8051_s14 = sand.u32 1, %s7813_s19   ;;  %p9593_p4 = scmp.ne.s32.totalorder %s9586_s24, 0 }
  0x66   : > { %s4874_s6 = sshll.u32 %s8051_s14, 8  ;;  %s234_s8 = scalar_lea.sflag [#allocation5], %s8051_s14 }
  0x67   : > { %s8057_s12 = scalar_lea.vmem [#allocation4], %s4874_s6 }
  0x68   : > { %7796 = dma.done.wait (%p9593_p4), %s234_s8, 4096  }
  0x69   : > { %7798 = vsyncadd (%p9593_p4), %s234_s8, 4294963200  ;;  %p9594_p5 = scmp.eq.s32.totalorder %s7891_s22, 0 }
  0x6b   : > { %7800 = dma.done.wait (%p9594_p5), [#allocation8], 36864   ;;  %p9595_p8 = pmov %p9594_p5 }
  0x6c   : > { %v272_v0 = vlaneseq  ;;  %v7836_v1 = vmov 0.0   ;;  %v8090_v15 = vld [vmem:[%s9512_s2] ss:$0 sm:$0xff]  ;;  %v519_v24 = vld [vmem:[%s8057_s12 + $0x8] sm:$0xff]  ;;  %v520_v29 = vld [vmem:[%s8057_s12 + $0x10] sm:$0xff]  ;;  %v9608_v51 = vmov 0 }
  0x6d   : > { %7802 = vsyncadd (%p9595_p8), [#allocation8], 4294930432  ;;  %513 = vst [vmem:[#allocation2] sm:$0xff] %v7836_v1  ;;  %v8095_v16 = vld [vmem:[%s9514_s4] ss:$0 sm:$0xff]  ;;  %v521_v30 = vld [vmem:[%s8057_s12 + $0x18] sm:$0xff] }
  0x6e   : > { %514 = vst [vmem:[#allocation2 + $0x8] sm:$0xff] %v7836_v1  ;;  %516 = vst [vmem:[#allocation2 + $0x110] sm:$0xff] %v7836_v1  ;;  %v8067_v2 = vshrl.u32 %v272_v0, 7  ;;  %v518_v23 = vld [vmem:[%s8057_s12] sm:$0xff]  ;;  %v523_v36 = vld [vmem:[%s8057_s12 + $0x28] sm:$0xff]  ;;  %v9611_v52 = vmov 0 }
  0x6f   : > { %517 = vst [vmem:[#allocation2 + $0x118] sm:$0xff] %v7836_v1  ;;  %583 = vst [vmem:[#allocation3] sm:$0xff] %v7836_v1  ;;  %v522_v35 = vld [vmem:[%s8057_s12 + $0x20] sm:$0xff]  ;;  %v524_v41 = vld [vmem:[%s8057_s12 + $0x30] sm:$0xff]  ;;  %v9614_v55 = vmov 0  ;;  %v9621_v58 = vmov 0 }
  0x70   : > { %584 = vst [vmem:[#allocation3 + $0x8] sm:$0xff] %v7836_v1  ;;  %586 = vst [vmem:[#allocation3 + $0x110] sm:$0xff] %v7836_v1  ;;  %v8070_v3 = vadd.s32 8, %v8067_v2  ;;  %v275_v4 = vadd.s32 16, %v8067_v2  ;;  %v276_v5 = vadd.s32 24, %v8067_v2  ;;  %v277_v6 = vadd.s32 32, %v8067_v2 }
  0x71   : > { %587 = vst [vmem:[#allocation3 + $0x118] sm:$0xff] %v7836_v1  ;;  %v278_v7 = vadd.s32 40, %v8067_v2  ;;  %v279_v8 = vadd.s32 48, %v8067_v2  ;;  %v8078_v9 = vadd.s32 56, %v8067_v2  ;;  %v281_v10 = vadd.s32 64, %v8067_v2  ;;  %9596 = vst [vmem:[#allocation14_spill] sm:$0xff] %v8090_v15 }
  0x72   : > { %v8082_v11 = vadd.s32 72, %v8067_v2  ;;  %v283_v12 = vadd.s32 80, %v8067_v2  ;;  %v284_v13 = vadd.s32 88, %v8067_v2  ;;  %v285_v14 = vadd.s32 96, %v8067_v2  ;;  %9597 = vst [vmem:[#allocation15_spill] sm:$0xff] %v8095_v16  ;;  %551 = vst [vmem:[#allocation2 + $0x10] sm:$0xff] %v518_v23 }
  0x73   : > { %v286_v17 = vadd.s32 104, %v8067_v2  ;;  %v287_v18 = vadd.s32 112, %v8067_v2  ;;  %v288_v19 = vadd.s32 120, %v8067_v2  ;;  %v293_v20 = vand.u32 15, %v8067_v2  ;;  %552 = vst [vmem:[#allocation2 + $0x18] sm:$0xff] %v519_v24  ;;  %553 = vst [vmem:[#allocation2 + $0x20] sm:$0xff] %v520_v29 }
  0x74   : > { %v300_v21 = vand.u32 15, %v8070_v3  ;;  %v307_v22 = vand.u32 15, %v275_v4  ;;  %v314_v25 = vand.u32 15, %v276_v5  ;;  %v321_v26 = vand.u32 15, %v277_v6  ;;  %554 = vst [vmem:[#allocation2 + $0x28] sm:$0xff] %v521_v30  ;;  %555 = vst [vmem:[#allocation2 + $0x30] sm:$0xff] %v522_v35 }
  0x75   : > { %v328_v27 = vand.u32 15, %v278_v7  ;;  %v335_v28 = vand.u32 15, %v279_v8  ;;  %v342_v31 = vand.u32 15, %v8078_v9  ;;  %v349_v32 = vand.u32 15, %v281_v10  ;;  %556 = vst [vmem:[#allocation2 + $0x38] sm:$0xff] %v523_v36  ;;  %v525_v42 = vld [vmem:[%s8057_s12 + $0x38] sm:$0xff] }
  0x76   : > { %v356_v33 = vand.u32 15, %v8082_v11  ;;  %v363_v34 = vand.u32 15, %v283_v12  ;;  %v370_v37 = vand.u32 15, %v284_v13  ;;  %v377_v38 = vand.u32 15, %v285_v14  ;;  %557 = vst [vmem:[#allocation2 + $0x40] sm:$0xff] %v524_v41  ;;  %558 = vst [vmem:[#allocation2 + $0x48] sm:$0xff] %v525_v42 }
  0x77   : > { %v384_v39 = vand.u32 15, %v286_v17  ;;  %v391_v40 = vand.u32 15, %v287_v18  ;;  %v398_v43 = vand.u32 15, %v288_v19  ;;  %vm8112_vm0 = vcmp.gt.s32.totalorder %v293_v20, 0  ;;  %v526_v47 = vld [vmem:[%s8057_s12 + $0x40] sm:$0xff]  ;;  %v527_v48 = vld [vmem:[%s8057_s12 + $0x48] sm:$0xff] }
  0x78   : > { %vm8116_vm1 = vcmp.gt.s32.totalorder %v307_v22, 0  ;;  %vm8120_vm2 = vcmp.gt.s32.totalorder %v321_v26, 0  ;;  %vm8126_vm3 = vcmp.gt.s32.totalorder %v335_v28, 0  ;;  %vm8130_vm4 = vcmp.gt.s32.totalorder %v349_v32, 0  ;;  %559 = vst [vmem:[#allocation2 + $0x50] sm:$0xff] %v526_v47  ;;  %560 = vst [vmem:[#allocation2 + $0x58] sm:$0xff] %v527_v48 }
  0x79   : > { %vm8134_vm5 = vcmp.gt.s32.totalorder %v363_v34, 0  ;;  %vm8138_vm6 = vcmp.gt.s32.totalorder %v377_v38, 0  ;;  %v528_v53 = vld [vmem:[%s8057_s12 + $0x50] sm:$0xff]  ;;  %v529_v54 = vld [vmem:[%s8057_s12 + $0x58] sm:$0xff]  ;;  %vm8144_vm7 = vcmp.gt.s32.totalorder %v391_v40, 0  ;;  %vm8148_vm8 = vcmp.lt.s32.totalorder %v300_v21, 15 }
  0x7a   : > { %v9609_v51 = vsel %vm8134_vm5, 4294967295, %v9608_v51  ;;  %v9612_v52 = vsel %vm8138_vm6, 4294967295, %v9611_v52  ;;  %v9615_v55 = vsel %vm8144_vm7, 4294967295, %v9614_v55  ;;  %vm8152_vm9 = vcmp.lt.s32.totalorder %v314_v25, 15  ;;  %561 = vst [vmem:[#allocation2 + $0x60] sm:$0xff] %v528_v53  ;;  %562 = vst [vmem:[#allocation2 + $0x68] sm:$0xff] %v529_v54 }
  0x7b   : > { %9610 = vst [vmem:[#allocation16_spill] sm:$0xff] %v9609_v51  ;;  %9613 = vst [vmem:[#allocation17_spill] sm:$0xff] %v9612_v52  ;;  %vm8156_vm10 = vcmp.lt.s32.totalorder %v328_v27, 15  ;;  %v530_v59 = vld [vmem:[%s8057_s12 + $0x60] sm:$0xff]  ;;  %v531_v60 = vld [vmem:[%s8057_s12 + $0x68] sm:$0xff]  ;;  %vm8162_vm11 = vcmp.lt.s32.totalorder %v342_v31, 15 }
  0x7c   : > { %9616 = vst [vmem:[#allocation18_spill] sm:$0xff] %v9615_v55  ;;  %v9622_v58 = vsel %vm8156_vm10, 4294967295, %v9621_v58  ;;  %v9623_v61 = vmov 0  ;;  %vm8166_vm12 = vcmp.lt.s32.totalorder %v356_v33, 15  ;;  %vm8170_vm13 = vcmp.lt.s32.totalorder %v370_v37, 15  ;;  %563 = vst [vmem:[#allocation2 + $0x70] sm:$0xff] %v530_v59 }
  0x7d   : > { %v9624_v61 = vsel %vm8162_vm11, 4294967295, %v9623_v61  ;;  %vm8174_vm14 = vcmp.lt.s32.totalorder %v384_v39, 15  ;;  %v9629_v0 = vmov 0  ;;  %564 = vst [vmem:[#allocation2 + $0x78] sm:$0xff] %v531_v60  ;;  %v532_v1 = vld [vmem:[%s8057_s12 + $0x70] sm:$0xff]  ;;  %v533_v3 = vld [vmem:[%s8057_s12 + $0x78] sm:$0xff] }
  0x7e   : > { %v9630_v0 = vsel %vm8174_vm14, 4294967295, %v9629_v0  ;;  %vm8180_vm15 = vcmp.lt.s32.totalorder %v398_v43, 15  ;;  %v9631_v4 = vmov 0  ;;  %565 = vst [vmem:[#allocation2 + $0x80] sm:$0xff] %v532_v1  ;;  %566 = vst [vmem:[#allocation2 + $0x88] sm:$0xff] %v533_v3  ;;  %v534_v5 = vld [vmem:[%s8057_s12 + $0x80] sm:$0xff] }
  0x7f   : > { %v9632_v4 = vsel %vm8180_vm15, 4294967295, %v9631_v4  ;;  %v535_v6 = vld [vmem:[%s8057_s12 + $0x88] sm:$0xff]  ;;  %v536_v7 = vld [vmem:[%s8057_s12 + $0x90] sm:$0xff]  ;;  %567 = vst [vmem:[#allocation2 + $0x90] sm:$0xff] %v534_v5  ;;  %v537_v8 = vld [vmem:[%s8057_s12 + $0x98] sm:$0xff]  ;;  %s8202_s10 = scalar_lea.vmem [#allocation10], %s4874_s6 }
  0x80   : > { %568 = vst [vmem:[#allocation2 + $0x98] sm:$0xff] %v535_v6  ;;  %569 = vst [vmem:[#allocation2 + $0xa0] sm:$0xff] %v536_v7  ;;  %v538_v9 = vld [vmem:[%s8057_s12 + $0xa0] sm:$0xff]  ;;  %v539_v10 = vld [vmem:[%s8057_s12 + $0xa8] sm:$0xff]  ;;  %s8204_s28 = smov 0  }
  0x81   : > { %570 = vst [vmem:[#allocation2 + $0xa8] sm:$0xff] %v537_v8  ;;  %571 = vst [vmem:[#allocation2 + $0xb0] sm:$0xff] %v538_v9  ;;  %v540_v11 = vld [vmem:[%s8057_s12 + $0xb0] sm:$0xff]  ;;  %v541_v12 = vld [vmem:[%s8057_s12 + $0xb8] sm:$0xff] }
  0x82   : > { %572 = vst [vmem:[#allocation2 + $0xb8] sm:$0xff] %v539_v10  ;;  %v542_v13 = vld [vmem:[%s8057_s12 + $0xc0] sm:$0xff]  ;;  %573 = vst [vmem:[#allocation2 + $0xc0] sm:$0xff] %v540_v11  ;;  %v543_v14 = vld [vmem:[%s8057_s12 + $0xc8] sm:$0xff] }
  0x83   : > { %574 = vst [vmem:[#allocation2 + $0xc8] sm:$0xff] %v541_v12  ;;  %575 = vst [vmem:[#allocation2 + $0xd0] sm:$0xff] %v542_v13  ;;  %v544_v17 = vld [vmem:[%s8057_s12 + $0xd0] sm:$0xff]  ;;  %v545_v18 = vld [vmem:[%s8057_s12 + $0xd8] sm:$0xff] }
  0x84   : > { %576 = vst [vmem:[#allocation2 + $0xd8] sm:$0xff] %v543_v14  ;;  %577 = vst [vmem:[#allocation2 + $0xe0] sm:$0xff] %v544_v17  ;;  %v546_v19 = vld [vmem:[%s8057_s12 + $0xe0] sm:$0xff]  ;;  %v547_v20 = vld [vmem:[%s8057_s12 + $0xe8] sm:$0xff] }
  0x85   : > { %578 = vst [vmem:[#allocation2 + $0xe8] sm:$0xff] %v545_v18  ;;  %v548_v21 = vld [vmem:[%s8057_s12 + $0xf0] sm:$0xff]  ;;  %579 = vst [vmem:[#allocation2 + $0xf0] sm:$0xff] %v546_v19  ;;  %v549_v22 = vld [vmem:[%s8057_s12 + $0xf8] sm:$0xff] }
  0x86   : > { %580 = vst [vmem:[#allocation2 + $0xf8] sm:$0xff] %v547_v20  ;;  %581 = vst [vmem:[#allocation2 + $0x100] sm:$0xff] %v548_v21 }
  0x87   : > { %582 = vst [vmem:[#allocation2 + $0x108] sm:$0xff] %v549_v22 }
  0x88 LB: >> { %v702_v23 = vld [vmem:[#allocation7] sm:$0xff]  ;;  %v703_v24 = vld [vmem:[#allocation7 + $0x8] sm:$0xff]  ;;  %v704_v28 = vld [vmem:[#allocation7 + $0x10] sm:$0xff]  ;;  %s5076_s13 = sshll.u32 %s7825_s28, 7  ;;  %vm9528_vm15 = vcmp.lt.s32.totalorder %v8067_v2, 1  ;;  %vm9665_vm11 = vnez %v9624_v61  ;;  %s595_s28 = sadd.s32 1, %s7825_s28   ;;  %s7825_s28 = sphi %s8204_s28, %s595_s28  }
  0x89   : >> { %v1558_v25 = vld [vmem:[#allocation7 + $0x200] sm:$0xff]  ;;  %v6668_v26 = vpack.c.bf16 %v703_v24, %v702_v23  ;;  %v1559_v27 = vld [vmem:[#allocation7 + $0x208] sm:$0xff]  ;;  %v705_v29 = vld [vmem:[#allocation7 + $0x18] sm:$0xff]  ;;  %s8212_s9 = scalar_lea.vmem [#allocation2], %s5076_s13  ;;  %s8797_s30 = scalar_lea.vmem [#allocation3], %s5076_s13 }
  0x8a   : >> { %v6796_v30 = vpack.c.bf16 %v1559_v27, %v1558_v25  ;;  %v6672_v31 = vpack.c.bf16 %v705_v29, %v704_v28  ;;  %v1560_v32 = vld [vmem:[#allocation7 + $0x210] sm:$0xff]  ;;  %v1561_v33 = vld [vmem:[#allocation7 + $0x218] sm:$0xff]  ;;  %v706_v34 = vld [vmem:[#allocation7 + $0x20] sm:$0xff]  ;;  %p592_p11 = scmp.ge.s32.totalorder %s595_s28, 2  }
  0x8b   : >> { %6669 = vmatprep.subr.bf16.mxu1 %v6668_v26  ;;  %v6800_v35 = vpack.c.bf16 %v1561_v33, %v1560_v32  ;;  %v707_v36 = vld [vmem:[#allocation7 + $0x28] sm:$0xff]  ;;  %v1562_v37 = vld [vmem:[#allocation7 + $0x220] sm:$0xff]  ;;  %v708_v41 = vld [vmem:[#allocation7 + $0x30] sm:$0xff]  ;;  %s8826_s11 = smov (%p592_p11), 0  }
  0x8c   : >> { %v1563_v38 = vld [vmem:[#allocation7 + $0x228] sm:$0xff]  ;;  %6797 = vmatprep.subr.bf16.mxu0 %v6796_v30  ;;  %6671 = vmatpush3.bf16.msra.mxu1 %v6668_v26  ;;  %v6676_v39 = vpack.c.bf16 %v707_v36, %v706_v34  ;;  %v709_v42 = vld [vmem:[#allocation7 + $0x38] sm:$0xff]  ;;  %v1564_v43 = vld [vmem:[#allocation7 + $0x230] sm:$0xff] }
  0x8d   : >> { %6799 = vmatpush3.bf16.msra.mxu0 %v6796_v30  ;;  %6673 = vmatprep.subr.bf16.mxu1 %v6672_v31  ;;  %v6804_v40 = vpack.c.bf16 %v1563_v38, %v1562_v37  ;;  %v1565_v47 = vld [vmem:[#allocation7 + $0x238] sm:$0xff]  ;;  %v6680_v48 = vpack.c.bf16 %v709_v42, %v708_v41  ;;  %v710_v53 = vld [vmem:[#allocation7 + $0x40] sm:$0xff]  ;;  %v711_v59 = vld [vmem:[#allocation7 + $0x48] sm:$0xff] }
  0x8e   : >> { %6801 = vmatprep.subr.bf16.mxu0 %v6800_v35  ;;  %v6808_v54 = vpack.c.bf16 %v1565_v47, %v1564_v43  ;;  %v1566_v60 = vld [vmem:[#allocation7 + $0x240] sm:$0xff]  ;;  %v1567_v3 = vld [vmem:[#allocation7 + $0x248] sm:$0xff]  ;;  %v8218_v5 = vld [vmem:[%s8212_s9 + $0x78] sm:$0xff]  ;;  %v6684_v9 = vpack.c.bf16 %v711_v59, %v710_v53 }
  0x8f   : >> { %v8215_v1 = vld [vmem:[%s8212_s9] sm:$0xff]  ;;  %v8223_v7 = vld [vmem:[%s8212_s9 + $0x10] sm:$0xff]  ;;  %v8226_v8 = vrot.slane %v8218_v5, 7  ;;  %v6812_v10 = vpack.c.bf16 %v1567_v3, %v1566_v60  ;;  %v713_v12 = vld [vmem:[#allocation7 + $0x58] sm:$0xff] }
  0x90   : >> { %6675 = vmatpush3.bf16.msra.mxu1 %v6672_v31  ;;  %v621_v6 = vrot.slane %v8215_v1, 7  ;;  %5916 = vmatprep.mubr.f32.mxu0 %v8223_v7  ;;  %v712_v11 = vld [vmem:[#allocation7 + $0x50] sm:$0xff]  ;;  %v1569_v17 = vld [vmem:[#allocation7 + $0x258] sm:$0xff]  ;;  %v714_v20 = vld [vmem:[#allocation7 + $0x60] sm:$0xff] }
  0x91   : >> { %6803 = vmatpush3.bf16.msra.mxu0 %v6800_v35  ;;  %6677 = vmatprep.subr.bf16.mxu1 %v6676_v39  ;;  %v1568_v14 = vld [vmem:[#allocation7 + $0x250] sm:$0xff]  ;;  %v6688_v18 = vpack.c.bf16 %v713_v12, %v712_v11  ;;  %v715_v21 = vld [vmem:[#allocation7 + $0x68] sm:$0xff]  ;;  %v1570_v22 = vld [vmem:[#allocation7 + $0x260] sm:$0xff] }
  0x92   : >> { %6805 = vmatprep.subr.bf16.mxu0 %v6804_v40  ;;  %v653_v13 = vsel %vm9528_vm15, %v8226_v8, %v621_v6  ;;  %v6816_v19 = vpack.c.bf16 %v1569_v17, %v1568_v14  ;;  %v1571_v23 = vld [vmem:[#allocation7 + $0x268] sm:$0xff]  ;;  %v6692_v24 = vpack.c.bf16 %v715_v21, %v714_v20  ;;  %v716_v26 = vld [vmem:[#allocation7 + $0x70] sm:$0xff]  ;;  %v717_v27 = vld [vmem:[#allocation7 + $0x78] sm:$0xff] }
  0x93   : >> { %5692 = vmatprep.mubr.msk.f32.mxu1 %vm8112_vm0, %v653_v13  ;;  %v6820_v25 = vpack.c.bf16 %v1571_v23, %v1570_v22  ;;  %v1572_v28 = vld [vmem:[#allocation7 + $0x270] sm:$0xff]  ;;  %v1573_v29 = vld [vmem:[#allocation7 + $0x278] sm:$0xff]  ;;  %v6696_v30 = vpack.c.bf16 %v717_v27, %v716_v26  ;;  %v8235_v31 = vld [vmem:[%s8212_s9 + $0x8] sm:$0xff] }
  0x94   : >> { %6679 = vmatpush3.bf16.msra.mxu1 %v6676_v39  ;;  %v6824_v32 = vpack.c.bf16 %v1573_v29, %v1572_v28  ;;  %v879_v33 = vld [vmem:[#allocation7 + $0x80] sm:$0xff]  ;;  %v880_v34 = vld [vmem:[#allocation7 + $0x88] sm:$0xff]  ;;  %v622_v37 = vrot.slane %v8235_v31, 7  ;;  %v8239_v39 = vld [vmem:[%s8212_s9 + $0x18] sm:$0xff] }
  0x95   : >> { %6807 = vmatpush3.bf16.msra.mxu0 %v6804_v40  ;;  %6681 = vmatprep.subr.bf16.mxu1 %v6680_v48  ;;  %v1783_v35 = vld [vmem:[#allocation7 + $0x280] sm:$0xff]  ;;  %v1784_v36 = vld [vmem:[#allocation7 + $0x288] sm:$0xff]  ;;  %v6700_v38 = vpack.c.bf16 %v880_v34, %v879_v33  ;;  %v8242_v40 = vrot.slane %v8223_v7, 7  ;;  %v881_v43 = vld [vmem:[#allocation7 + $0x90] sm:$0xff]  ;;  %v1334_v53 = vrot.slane %v8239_v39, 7 }
  0x96   : >> { %6809 = vmatprep.subr.bf16.mxu0 %v6808_v54  ;;  %v6828_v41 = vpack.c.bf16 %v1784_v36, %v1783_v35  ;;  %v8245_v42 = vld [vmem:[%s8212_s9 + $0x20] sm:$0xff]  ;;  %v882_v47 = vld [vmem:[#allocation7 + $0x98] sm:$0xff]  ;;  %v8251_v60 = vld [vmem:[%s8212_s9 + $0x28] sm:$0xff] }
  0x97   : >> { %9633 = vst [vmem:[#allocation19_spill] sm:$0xff] %v8245_v42  ;;  %v1786_v59 = vld [vmem:[#allocation7 + $0x298] sm:$0xff]  ;;  %v651_v3 = vsel %vm9528_vm15, %v622_v37, %v8242_v40  ;;  %v8260_v11 = vld [vmem:[%s8212_s9 + $0x30] sm:$0xff]  ;;  %v883_v12 = vld [vmem:[#allocation7 + $0xa0] sm:$0xff]  ;;  %v8266_v14 = vsel %vm9528_vm15, %v8242_v40, %v1334_v53  ;;  %v1336_v17 = vrot.slane %v8251_v60, 7 }
  0x98   : >> { %6683 = vmatpush3.bf16.msra.mxu1 %v6680_v48  ;;  %v652_v48 = vsel %vm9528_vm15, %v621_v6, %v622_v37  ;;  %9634 = vst [vmem:[#allocation20_spill] sm:$0xff] %v8260_v11  ;;  %v884_v13 = vld [vmem:[#allocation7 + $0xa8] sm:$0xff]  ;;  %9635 = vst [vmem:[#allocation21_spill] sm:$0xff] %v8266_v14  ;;  %v8272_v20 = vld [vmem:[%s8212_s9 + $0x38] sm:$0xff]  ;;  %v1337_v22 = vrot.slane %v8260_v11, 7 }
  0x99   : >> { %6811 = vmatpush3.bf16.msra.mxu0 %v6808_v54  ;;  %6685 = vmatprep.subr.bf16.mxu1 %v6684_v9  ;;  %v1785_v54 = vld [vmem:[#allocation7 + $0x290] sm:$0xff]  ;;  %9636 = vst [vmem:[#allocation22_spill] sm:$0xff] %v8272_v20  ;;  %v6708_v23 = vpack.c.bf16 %v884_v13, %v883_v12  ;;  %v886_v27 = vld [vmem:[#allocation7 + $0xb8] sm:$0xff]  ;;  %v8286_v28 = vld [vmem:[%s8212_s9 + $0x48] sm:$0xff] }
  0x9a   : >> { %6813 = vmatprep.subr.bf16.mxu0 %v6812_v10  ;;  %v6832_v6 = vpack.c.bf16 %v1786_v59, %v1785_v54  ;;  %9639 = vst [vmem:[#allocation25_spill] sm:$0xff] %v8286_v28  ;;  %v8289_v29 = vld [vmem:[%s8212_s9 + $0x80] sm:$0xff]  ;;  %v1789_v33 = vld [vmem:[#allocation7 + $0x2b0] sm:$0xff]  ;;  %v1790_v34 = vld [vmem:[#allocation7 + $0x2b8] sm:$0xff] }
  0x9b   : >> { %v9521_v35 = vrot.slane %v8289_v29, 7  ;;  %v8304_v37 = vld [vmem:[%s8212_s9 + $0x50] sm:$0xff]  ;;  %v8314_v54 = vld [vmem:[%s8212_s9 + $0x88] sm:$0xff]  ;;  %v891_v15 = vld [vmem:[#allocation7 + $0xe0] sm:$0xff] }
  0x9c   : >> { %6687 = vmatpush3.bf16.msra.mxu1 %v6684_v9  ;;  %v8257_v9 = vrot.slane %v8245_v42, 7  ;;  %9640 = vst [vmem:[#allocation26_spill] sm:$0xff] %v8304_v37  ;;  %9641 = vst [vmem:[#allocation27_spill] sm:$0xff] %v8314_v54  ;;  %v8323_v12 = vrot.slane %v8314_v54, 7  ;;  %v8380_v16 = vld [vmem:[%s8212_s9 + $0x70] sm:$0xff]  ;;  %v9652_v52 = vld [vmem:[#allocation17_spill] sm:$0xff] }
  0x9d   : >> { %6815 = vmatpush3.bf16.msra.mxu0 %v6812_v10  ;;  %6689 = vmatprep.subr.bf16.mxu1 %v6688_v18  ;;  %v6704_v10 = vpack.c.bf16 %v882_v47, %v881_v43  ;;  %v1340_v43 = vrot.slane %v8286_v28, 7  ;;  %v6840_v47 = vpack.c.bf16 %v1790_v34, %v1789_v33  ;;  %v8330_v13 = vsel %vm9528_vm15, %v8226_v8, %v9521_v35  ;;  %v890_v33 = vld [vmem:[#allocation7 + $0xd8] sm:$0xff]  ;;  %v8368_v35 = vld [vmem:[%s8212_s9 + $0x90] sm:$0xff]  ;;  %v9661_v55 = vld [vmem:[#allocation18_spill] sm:$0xff] }
  0x9e   : >> { %6817 = vmatprep.subr.bf16.mxu0 %v6816_v19  ;;  %v8278_v21 = vsel %vm9528_vm15, %v1334_v53, %v8257_v9  ;;  %v888_v53 = vld [vmem:[#allocation7 + $0xc8] sm:$0xff]  ;;  %9642 = vst [vmem:[#allocation28_spill] sm:$0xff] %v8323_v12  ;;  %9643 = vst [vmem:[#allocation29_spill] sm:$0xff] %v8330_v13  ;;  %vm9653_vm6 = vnez %v9652_v52  ;;  %vm9662_vm7 = vnez %v9661_v55 }
  0x9f   : >> { %9637 = vst [vmem:[#allocation23_spill] sm:$0xff] %v8278_v21  ;;  %9646 = vst [vmem:[#allocation32_spill] sm:$0xff] %v8368_v35  ;;  %v1138_v52 = vld [vmem:[#allocation7 + $0x108] sm:$0xff] }
  0xa0   : >> { %6691 = vmatpush3.bf16.msra.mxu1 %v6688_v18  ;;  %v1787_v18 = vld [vmem:[#allocation7 + $0x2a0] sm:$0xff]  ;;  %v1142_v55 = vld [vmem:[#allocation7 + $0x128] sm:$0xff] }
  0xa1   : >> { %6819 = vmatpush3.bf16.msra.mxu0 %v6816_v19  ;;  %6693 = vmatprep.subr.bf16.mxu1 %v6692_v24  ;;  %v1788_v19 = vld [vmem:[#allocation7 + $0x2a8] sm:$0xff] }
  0xa2   : >> { %6821 = vmatprep.subr.bf16.mxu0 %v6820_v25  ;;  %v6836_v26 = vpack.c.bf16 %v1788_v19, %v1787_v18  ;;  %v8340_v18 = vld [vmem:[%s8212_s9 + $0x58] sm:$0xff]  ;;  %v8343_v19 = vld [vmem:[%s8212_s9 + $0x60] sm:$0xff] }
  0xa3   : >> { %9644 = vst [vmem:[#allocation30_spill] sm:$0xff] %v8343_v19  ;;  %v1342_v34 = vrot.slane %v8340_v18, 7 }
  0xa4   : >> { %6695 = vmatpush3.bf16.msra.mxu1 %v6692_v24  ;;  %v8282_v24 = vld [vmem:[%s8212_s9 + $0x40] sm:$0xff] }
  0xa5   : >> { %6823 = vmatpush3.bf16.msra.mxu0 %v6820_v25  ;;  %6697 = vmatprep.subr.bf16.mxu1 %v6696_v30  ;;  %9638 = vst [vmem:[#allocation24_spill] sm:$0xff] %v8282_v24  ;;  %v885_v25 = vld [vmem:[#allocation7 + $0xb0] sm:$0xff]  ;;  %v1339_v36 = vrot.slane %v8282_v24, 7 }
  0xa6   : >> { %6825 = vmatprep.subr.bf16.mxu0 %v6824_v32 }
  0xa8   : >> { %6699 = vmatpush3.bf16.msra.mxu1 %v6696_v30  ;;  %v8295_v30 = vsel %vm9528_vm15, %v8257_v9, %v1336_v17 }
  0xa9   : >> { %6827 = vmatpush3.bf16.msra.mxu0 %v6824_v32  ;;  %6701 = vmatprep.subr.bf16.mxu1 %v6700_v38  ;;  %v1338_v32 = vrot.slane %v8272_v20, 7 }
  0xaa   : >> { %6829 = vmatprep.subr.bf16.mxu0 %v6828_v41 }
  0xab   : >> { %5693 = vmatmul.mubr.f32.vlgmr.msra.gmra.mrb[0].mxu1 %v652_v48  ;;  %v887_v48 = vld [vmem:[#allocation7 + $0xc0] sm:$0xff]  ;;  %v8319_v59 = vsel %vm9528_vm15, %v1337_v22, %v1338_v32 }
  0xac   : >> { %5917 = vmatmul.mubr.f32.vlgmr.msra.gmra.mrb[0].mxu0 %v8239_v39  ;;  %6703 = vmatpush3.bf16.msra.mxu1 %v6700_v38  ;;  %v8309_v38 = vsel %vm9528_vm15, %v1336_v17, %v1337_v22  ;;  %v8337_v17 = vsel %vm9528_vm15, %v1338_v32, %v1339_v36  ;;  %v8348_v22 = vsel %vm9528_vm15, %v1339_v36, %v1340_v43  ;;  %v889_v32 = vld [vmem:[#allocation7 + $0xd0] sm:$0xff] }
  0xad   : >> { %6831 = vmatpush3.bf16.msra.mxu0 %v6828_v41  ;;  %5695 = vmatprep.mubr.msk.f32.mxu1 %vm8116_vm1, %v651_v3  ;;  %v6712_v41 = vpack.c.bf16 %v886_v27, %v885_v25  ;;  %v1341_v3 = vrot.slane %v8304_v37, 7  ;;  %v8351_v25 = vld [vmem:[%s8212_s9 + $0x98] sm:$0xff] }
  0xae   : >> { %5919 = vmatprep.mubr.f32.mxu0 %v8245_v42  ;;  %6705 = vmatprep.subr.bf16.mxu1 %v6704_v10  ;;  %v9648_v13 = vrot.slane %v8351_v25, 7 }
  0xaf   : >> { %5696 = vmatmul.mubr.f32.gmra.mrb[2].mxu1 %v8266_v14  ;;  %6833 = vmatprep.subr.bf16.mxu0 %v6832_v6  ;;  %v8364_v36 = vsel %vm9528_vm15, %v1340_v43, %v1341_v3  ;;  %v6720_v43 = vpack.c.bf16 %v890_v33, %v889_v32  ;;  %v1795_v14 = vld [vmem:[#allocation7 + $0x2e0] sm:$0xff]  ;;  %v8397_v33 = vsel %vm9528_vm15, %v1341_v3, %v1342_v34 }
  0xb0   : >> { %5920 = vmatmul.mubr.f32.gmra.mrb[2].mxu0 %v8251_v60  ;;  %6707 = vmatpush3.bf16.msra.mxu1 %v6704_v10  ;;  %v1791_v10 = vld [vmem:[#allocation7 + $0x2c0] sm:$0xff] }
  0xb1   : >> { %6835 = vmatpush3.bf16.msra.mxu0 %v6832_v6  ;;  %5698 = vmatprep.mubr.msk.f32.mxu1 %vm8120_vm2, %v8278_v21  ;;  %v1792_v6 = vld [vmem:[#allocation7 + $0x2c8] sm:$0xff] }
  0xb2   : >> { %5922 = vmatprep.mubr.f32.mxu0 %v8260_v11  ;;  %6709 = vmatprep.subr.bf16.mxu1 %v6708_v23  ;;  %v6844_v27 = vpack.c.bf16 %v1792_v6, %v1791_v10  ;;  %v8374_v10 = vld [vmem:[%s8212_s9 + $0x68] sm:$0xff]  ;;  %v1993_v6 = vrot.slane %v8368_v35, 7 }
  0xb3   : >> { %5699 = vmatmul.mubr.f32.gmra.mrb[4].mxu1 %v8295_v30  ;;  %6837 = vmatprep.subr.bf16.mxu0 %v6836_v26  ;;  %v892_v21 = vld [vmem:[#allocation7 + $0xe8] sm:$0xff] }
  0xb4   : >> { %5923 = vmatmul.mubr.f32.gmra.mrb[4].mxu0 %v8272_v20  ;;  %6711 = vmatpush3.bf16.msra.mxu1 %v6708_v23  ;;  %v6716_v23 = vpack.c.bf16 %v888_v53, %v887_v48  ;;  %v1793_v48 = vld [vmem:[#allocation7 + $0x2d0] sm:$0xff]  ;;  %v1794_v53 = vld [vmem:[#allocation7 + $0x2d8] sm:$0xff]  ;;  %v8392_v32 = vsel %vm9528_vm15, %v1993_v6, %v9648_v13  ;;  %v1345_v13 = vrot.slane %v8380_v16, 7 }
  0xb5   : >> { %6839 = vmatpush3.bf16.msra.mxu0 %v6836_v26  ;;  %5701 = vmatprep.mubr.msk.f32.mxu1 %vm8126_vm3, %v8309_v38  ;;  %v8357_v26 = vsel %vm9528_vm15, %v8323_v12, %v8242_v40  ;;  %v1343_v40 = vrot.slane %v8343_v19, 7  ;;  %9649 = vst [vmem:[#allocation34_spill] sm:$0xff] %v8392_v32  ;;  %v893_v32 = vld [vmem:[#allocation7 + $0xf0] sm:$0xff] }
  0xb6   : >> { %5925 = vmatprep.mubr.f32.mxu0 %v8282_v24  ;;  %6713 = vmatprep.subr.bf16.mxu1 %v6712_v41  ;;  %9645 = vst [vmem:[#allocation31_spill] sm:$0xff] %v8357_v26  ;;  %v1796_v26 = vld [vmem:[#allocation7 + $0x2e8] sm:$0xff] }
  0xb7   : >> { %5702 = vmatmul.mubr.f32.gmra.mrb[6].mxu1 %v8319_v59  ;;  %6841 = vmatprep.subr.bf16.mxu0 %v6840_v47 }
  0xb8   : >> { %5926 = vmatmul.mubr.f32.gmra.mrb[6].mxu0 %v8286_v28  ;;  %6715 = vmatpush3.bf16.msra.mxu1 %v6712_v41  ;;  %v8386_v41 = vsel %vm9528_vm15, %v8323_v12, %v1993_v6  ;;  %v6724_v6 = vpack.c.bf16 %v892_v21, %v891_v15  ;;  %v1137_v21 = vld [vmem:[#allocation7 + $0x100] sm:$0xff]  ;;  %v9655_v12 = vrot.slane %v8351_v25, 1 }
  0xb9   : >> { %6843 = vmatpush3.bf16.msra.mxu0 %v6840_v47  ;;  %5704 = vmatprep.mubr.msk.f32.mxu1 %vm8130_vm4, %v8337_v17  ;;  %v6848_v47 = vpack.c.bf16 %v1794_v53, %v1793_v48  ;;  %9647 = vst [vmem:[#allocation33_spill] sm:$0xff] %v8386_v41  ;;  %v1344_v48 = vrot.slane %v8374_v10, 7  ;;  %v8405_v53 = vsel %vm9528_vm15, %v1342_v34, %v1343_v40  ;;  %v894_v41 = vld [vmem:[#allocation7 + $0xf8] sm:$0xff] }
  0xba   : >> { %5928 = vmatprep.mubr.f32.mxu0 %v8304_v37  ;;  %6717 = vmatprep.subr.bf16.mxu1 %v6716_v23 }
  0xbb   : >> { %5705 = vmatmul.mubr.f32.gmra.mrb[8].mxu1 %v8348_v22  ;;  %6845 = vmatprep.subr.bf16.mxu0 %v6844_v27  ;;  %v8411_v3 = vsel %vm9528_vm15, %v1343_v40, %v1344_v48  ;;  %v8417_v34 = vsel %vm9528_vm15, %v1344_v48, %v1345_v13  ;;  %v1798_v40 = vld [vmem:[#allocation7 + $0x2f8] sm:$0xff]  ;;  %vm9557_vm15 = vcmp.lt.s32.totalorder %v8067_v2, 7  ;;  %v8431_v48 = vrot.slane %v8223_v7, 1 }
  0xbc   : >> { %5929 = vmatmul.mubr.f32.gmra.mrb[8].mxu0 %v8340_v18  ;;  %6719 = vmatpush3.bf16.msra.mxu1 %v6716_v23  ;;  %v6852_v23 = vpack.c.bf16 %v1796_v26, %v1795_v14  ;;  %9651 = vst [vmem:[#allocation35_spill] sm:$0xff] %v8411_v3  ;;  %v8423_v14 = vrot.slane %v8314_v54, 1  ;;  %v1797_v26 = vld [vmem:[#allocation7 + $0x2f0] sm:$0xff] }
  0xbd   : >> { %6847 = vmatpush3.bf16.msra.mxu0 %v6844_v27  ;;  %5707 = vmatprep.mubr.msk.f32.mxu1 %vm8134_vm5, %v8364_v36  ;;  %v2395_v27 = vrot.slane %v8368_v35, 1  ;;  %v6856_v35 = vpack.c.bf16 %v1798_v40, %v1797_v26  ;;  %v2027_v40 = vld [vmem:[#allocation7 + $0x300] sm:$0xff] }
  0xbe   : >> { %5931 = vmatprep.mubr.f32.mxu0 %v8343_v19  ;;  %6721 = vmatprep.subr.bf16.mxu1 %v6720_v43 }
  0xbf   : >> { %5708 = vmatmul.mubr.f32.gmra.mrb[10].mxu1 %v8397_v33  ;;  %6849 = vmatprep.subr.bf16.mxu0 %v6848_v47  ;;  %v8437_v15 = vsel %vm9557_vm15, %v8423_v14, %v2395_v27  ;;  %v8445_v51 = vsel %vm9557_vm15, %v2395_v27, %v9655_v12  ;;  %v1737_v12 = vrot.slane %v8245_v42, 1  ;;  %v6732_v27 = vpack.c.bf16 %v1138_v52, %v1137_v21 }
  0xc0   : >> { %5932 = vmatmul.mubr.f32.gmra.mrb[10].mxu0 %v8374_v10  ;;  %6723 = vmatpush3.bf16.msra.mxu1 %v6720_v43  ;;  %v6728_v43 = vpack.c.bf16 %v894_v41, %v893_v32  ;;  %9654 = vst [vmem:[#allocation36_spill] sm:$0xff] %v8437_v15  ;;  %9656 = vst [vmem:[#allocation37_spill] sm:$0xff] %v8445_v51  ;;  %v9657_v41 = vrot.slane %v8343_v19, 1  ;;  %v9658_v32 = vrot.slane %v8340_v18, 1  ;;  %v2030_v51 = vld [vmem:[#allocation7 + $0x318] sm:$0xff]  ;;  %v1739_v52 = vrot.slane %v8260_v11, 1 }
  0xc1   : >> { %6851 = vmatpush3.bf16.msra.mxu0 %v6848_v47  ;;  %5710 = vmatprep.mubr.msk.f32.mxu1 %vm9653_vm6, %v8405_v53  ;;  %v1736_v47 = vrot.slane %v8239_v39, 1  ;;  %vm9659_vm6 = vcmp.lt.s32.totalorder %v8067_v2, 1 }
  0xc2   : >> { %5934 = vmatprep.mubr.f32.mxu0 %v8380_v16  ;;  %6725 = vmatprep.subr.bf16.mxu1 %v6724_v6  ;;  %v8453_v15 = vsel %vm9557_vm15, %v9658_v32, %v9657_v41  ;;  %v8459_v26 = vsel %vm9659_vm6, %v1345_v13, %v8226_v8  ;;  %v1140_v41 = vld [vmem:[#allocation7 + $0x118] sm:$0xff]  ;;  %v2029_v32 = vld [vmem:[#allocation7 + $0x310] sm:$0xff] }
  0xc3   : >> { %5711 = vmatmul.mubr.f32.gmra.mrb[12].mxu1 %v8411_v3  ;;  %6853 = vmatprep.subr.bf16.mxu0 %v6852_v23  ;;  %9660 = vst [vmem:[#allocation38_spill] sm:$0xff] %v8459_v26  ;;  %v2028_v3 = vld [vmem:[#allocation7 + $0x308] sm:$0xff]  ;;  %v8471_v8 = vsel %vm9557_vm15, %v8431_v48, %v1736_v47  ;;  %v8478_v21 = vsel %vm9557_vm15, %v1736_v47, %v1737_v12  ;;  %v2031_v47 = vld [vmem:[#allocation7 + $0x320] sm:$0xff] }
  0xc4   : >> { %5935 = vmatmul.mubr.f32.gmra.mrb[12].mxu0 %v8218_v5  ;;  %6727 = vmatpush3.bf16.msra.mxu1 %v6724_v6  ;;  %v1738_v6 = vrot.slane %v8251_v60, 1  ;;  %v6860_v13 = vpack.c.bf16 %v2028_v3, %v2027_v40  ;;  %v8482_v40 = vrot.slane %v8272_v20, 1 }
  0xc5   : >> { %6855 = vmatpush3.bf16.msra.mxu0 %v6852_v23  ;;  %5713 = vmatprep.mubr.msk.f32.mxu1 %vm9662_vm7, %v8417_v34  ;;  %v1139_v23 = vld [vmem:[#allocation7 + $0x110] sm:$0xff]  ;;  %vm9669_vm7 = vnez %v9632_v4 }
  0xc6   : >> { %5937 = vmatprep.mubr.f32.mxu0 %v8289_v29  ;;  %6729 = vmatprep.subr.bf16.mxu1 %v6728_v43  ;;  %v6736_v3 = vpack.c.bf16 %v1140_v41, %v1139_v23  ;;  %9663 = vst [vmem:[#allocation39_spill] sm:$0xff] %v8482_v40  ;;  %v2032_v23 = vld [vmem:[#allocation7 + $0x328] sm:$0xff]  ;;  %v1741_v41 = vrot.slane %v8282_v24, 1 }
  0xc7   : >> { %5714 = vmatmul.mubr.f32.gmra.mrb[14].mxu1 %v8459_v26  ;;  %6857 = vmatprep.subr.bf16.mxu0 %v6856_v35  ;;  %v8496_v26 = vsel %vm9557_vm15, %v1738_v6, %v1739_v52 }
  0xc8   : >> { %5938 = vmatmul.mubr.f32.gmra.mrb[14].mxu0 %v8314_v54  ;;  %6731 = vmatpush3.bf16.msra.mxu1 %v6728_v43  ;;  %v8487_v43 = vsel %vm9557_vm15, %v1737_v12, %v1738_v6  ;;  %v1141_v54 = vld [vmem:[#allocation7 + $0x120] sm:$0xff]  ;;  %v1742_v12 = vrot.slane %v8286_v28, 1  ;;  %v2033_v6 = vld [vmem:[#allocation7 + $0x330] sm:$0xff] }
  0xc9   : >> { %6859 = vmatpush3.bf16.msra.mxu0 %v6856_v35  ;;  %5748 = vmatprep.mubr.f32.mxu1 %v8215_v1  ;;  %v6864_v35 = vpack.c.bf16 %v2030_v51, %v2029_v32  ;;  %v6740_v51 = vpack.c.bf16 %v1142_v55, %v1141_v54  ;;  %v1144_v32 = vld [vmem:[#allocation7 + $0x138] sm:$0xff]  ;;  %v1743_v54 = vrot.slane %v8304_v37, 1 }
  0xca   : >> { %5972 = vmatprep.mubr.f32.mxu0 %v8471_v8  ;;  %6733 = vmatprep.subr.bf16.mxu1 %v6732_v27  ;;  %v2034_v55 = vld [vmem:[#allocation7 + $0x338] sm:$0xff] }
  0xcb   : >> { %5749 = vmatmul.mubr.f32.vlgmr.msra.gmra.mrb[0].mxu1 %v8235_v31  ;;  %6861 = vmatprep.subr.bf16.mxu0 %v6860_v13 }
  0xcc   : >> { %5973 = vmatmul.mubr.msk.f32.vlgmr.msra.gmra.mrb[0].mxu0 %vm8148_vm8, %v8478_v21  ;;  %6735 = vmatpush3.bf16.msra.mxu1 %v6732_v27  ;;  %v8504_v27 = vsel %vm9557_vm15, %v1739_v52, %v8482_v40 }
  0xcd   : >> { %6863 = vmatpush3.bf16.msra.mxu0 %v6860_v13  ;;  %5751 = vmatprep.mubr.f32.mxu1 %v8223_v7  ;;  %v6868_v13 = vpack.c.bf16 %v2032_v23, %v2031_v47  ;;  %v1143_v7 = vld [vmem:[#allocation7 + $0x130] sm:$0xff]  ;;  %v6872_v47 = vpack.c.bf16 %v2034_v55, %v2033_v6  ;;  %v1146_v23 = vld [vmem:[#allocation7 + $0x148] sm:$0xff] }
  0xce   : >> { %5975 = vmatprep.mubr.f32.mxu0 %v8487_v43  ;;  %6737 = vmatprep.subr.bf16.mxu1 %v6736_v3  ;;  %v6744_v52 = vpack.c.bf16 %v1144_v32, %v1143_v7  ;;  %v8528_v7 = vsel %vm9557_vm15, %v1742_v12, %v1743_v54  ;;  %v1746_v32 = vrot.slane %v8374_v10, 1  ;;  %v1147_v55 = vld [vmem:[#allocation7 + $0x150] sm:$0xff] }
  0xcf   : >> { %5752 = vmatmul.mubr.f32.gmra.mrb[2].mxu1 %v8239_v39  ;;  %6865 = vmatprep.subr.bf16.mxu0 %v6864_v35  ;;  %v8514_v39 = vsel %vm9557_vm15, %v8482_v40, %v1741_v41  ;;  %v2035_v40 = vld [vmem:[#allocation7 + $0x340] sm:$0xff] }
  0xd0   : >> { %5976 = vmatmul.mubr.msk.f32.gmra.mrb[2].mxu0 %vm8152_vm9, %v8496_v26  ;;  %6739 = vmatpush3.bf16.msra.mxu1 %v6736_v3  ;;  %v8520_v3 = vsel %vm9557_vm15, %v1741_v41, %v1742_v12  ;;  %v2037_v12 = vld [vmem:[#allocation7 + $0x350] sm:$0xff] }
  0xd1   : >> { %6867 = vmatpush3.bf16.msra.mxu0 %v6864_v35  ;;  %5754 = vmatprep.mubr.f32.mxu1 %v8245_v42  ;;  %v1145_v35 = vld [vmem:[#allocation7 + $0x140] sm:$0xff]  ;;  %v2036_v42 = vld [vmem:[#allocation7 + $0x348] sm:$0xff] }
  0xd2   : >> { %5978 = vmatprep.mubr.f32.mxu0 %v8504_v27  ;;  %6741 = vmatprep.subr.bf16.mxu1 %v6740_v51  ;;  %v6748_v41 = vpack.c.bf16 %v1146_v23, %v1145_v35  ;;  %v6876_v6 = vpack.c.bf16 %v2036_v42, %v2035_v40  ;;  %v2038_v35 = vld [vmem:[#allocation7 + $0x358] sm:$0xff]  ;;  %v1747_v23 = vrot.slane %v8380_v16, 1  ;;  %v8546_v42 = vrot.slane %v8218_v5, 1 }
  0xd3   : >> { %5755 = vmatmul.mubr.f32.gmra.mrb[4].mxu1 %v8251_v60  ;;  %6869 = vmatprep.subr.bf16.mxu0 %v6868_v13  ;;  %v9666_v40 = vrot.slane %v8343_v19, 1 }
  0xd4   : >> { %5979 = vmatmul.mubr.msk.f32.gmra.mrb[4].mxu0 %vm8156_vm10, %v8514_v39  ;;  %6743 = vmatpush3.bf16.msra.mxu1 %v6740_v51  ;;  %v9664_v51 = vrot.slane %v8340_v18, 1 }
  0xd5   : >> { %6871 = vmatpush3.bf16.msra.mxu0 %v6868_v13  ;;  %5757 = vmatprep.mubr.f32.mxu1 %v8260_v11  ;;  %v1148_v11 = vld [vmem:[#allocation7 + $0x158] sm:$0xff] }
  0xd6   : >> { %5981 = vmatprep.mubr.f32.mxu0 %v8520_v3  ;;  %6745 = vmatprep.subr.bf16.mxu1 %v6744_v52  ;;  %v8537_v13 = vsel %vm9557_vm15, %v1743_v54, %v9664_v51  ;;  %v6752_v54 = vpack.c.bf16 %v1148_v11, %v1147_v55  ;;  %v6880_v51 = vpack.c.bf16 %v2038_v35, %v2037_v12  ;;  %v2039_v11 = vld [vmem:[#allocation7 + $0x360] sm:$0xff]  ;;  %v2040_v55 = vld [vmem:[#allocation7 + $0x368] sm:$0xff] }
  0xd7   : >> { %5758 = vmatmul.mubr.f32.gmra.mrb[6].mxu1 %v8272_v20  ;;  %6873 = vmatprep.subr.bf16.mxu0 %v6872_v47  ;;  %v1150_v20 = vld [vmem:[#allocation7 + $0x168] sm:$0xff]  ;;  %v6884_v35 = vpack.c.bf16 %v2040_v55, %v2039_v11  ;;  %v1057_v11 = vrot.slane %v8235_v31, 1  ;;  %v1381_v55 = vld [vmem:[#allocation7 + $0x180] sm:$0xff]  ;;  %v1766_v31 = vsel %vm9557_vm15, %v8423_v14, %v8431_v48 }
  0xd8   : >> { %5982 = vmatmul.mubr.msk.f32.gmra.mrb[6].mxu0 %vm9665_vm11, %v8528_v7  ;;  %6747 = vmatpush3.bf16.msra.mxu1 %v6744_v52  ;;  %v8553_v52 = vsel %vm9557_vm15, %v9666_v40, %v1746_v32  ;;  %v1152_v40 = vld [vmem:[#allocation7 + $0x178] sm:$0xff] }
  0xd9   : >> { %6875 = vmatpush3.bf16.msra.mxu0 %v6872_v47  ;;  %5760 = vmatprep.mubr.f32.mxu1 %v8282_v24  ;;  %v1149_v47 = vld [vmem:[#allocation7 + $0x160] sm:$0xff]  ;;  %v1749_v24 = vrot.slane %v8289_v29, 1 }
  0xda   : >> { %5984 = vmatprep.mubr.f32.mxu0 %v8537_v13  ;;  %6749 = vmatprep.subr.bf16.mxu1 %v6748_v41  ;;  %v6756_v12 = vpack.c.bf16 %v1150_v20, %v1149_v47  ;;  %v1056_v47 = vrot.slane %v8215_v1, 1  ;;  %v9682_v1 = vld [vmem:[#allocation34_spill] sm:$0xff] }
  0xdb   : >> { %5761 = vmatmul.mubr.f32.gmra.mrb[8].mxu1 %v8286_v28  ;;  %6877 = vmatprep.subr.bf16.mxu0 %v6876_v6  ;;  %v8562_v28 = vsel %vm9557_vm15, %v1746_v32, %v1747_v23  ;;  %v2041_v32 = vld [vmem:[#allocation7 + $0x370] sm:$0xff]  ;;  %v8578_v20 = vsel %vm9557_vm15, %v8546_v42, %v1749_v24 }
  0xdc   : >> { %5985 = vmatmul.mubr.msk.f32.gmra.mrb[8].mxu0 %vm8166_vm12, %v8453_v15  ;;  %6751 = vmatpush3.bf16.msra.mxu1 %v6748_v41  ;;  %v8569_v41 = vsel %vm9557_vm15, %v1747_v23, %v8546_v42  ;;  %9667 = vst [vmem:[#allocation40_spill] sm:$0xff] %v8578_v20 }
  0xdd   : >> { %6879 = vmatpush3.bf16.msra.mxu0 %v6876_v6  ;;  %5763 = vmatprep.mubr.f32.mxu1 %v8304_v37  ;;  %v1151_v6 = vld [vmem:[#allocation7 + $0x170] sm:$0xff]  ;;  %v2042_v37 = vld [vmem:[#allocation7 + $0x378] sm:$0xff] }
  0xde   : >> { %5987 = vmatprep.mubr.f32.mxu0 %v8553_v52  ;;  %6753 = vmatprep.subr.bf16.mxu1 %v6752_v54  ;;  %v6760_v23 = vpack.c.bf16 %v1152_v40, %v1151_v6  ;;  %v2204_v6 = vld [vmem:[#allocation7 + $0x380] sm:$0xff]  ;;  %v2205_v40 = vld [vmem:[#allocation7 + $0x388] sm:$0xff] }
  0xdf   : >> { %5764 = vmatmul.mubr.f32.gmra.mrb[10].mxu1 %v8340_v18  ;;  %6881 = vmatprep.subr.bf16.mxu0 %v6880_v51 }
  0xe0   : >> { %5988 = vmatmul.mubr.msk.f32.gmra.mrb[10].mxu0 %vm8170_vm13, %v8562_v28  ;;  %6755 = vmatpush3.bf16.msra.mxu1 %v6752_v54  ;;  %v8587_v54 = vsel %vm9557_vm15, %v1749_v24, %v8423_v14  ;;  %v1087_v24 = vsel %vm9557_vm15, %v1056_v47, %v1057_v11  ;;  %v1383_v14 = vld [vmem:[#allocation7 + $0x190] sm:$0xff] }
  0xe1   : >> { %6883 = vmatpush3.bf16.msra.mxu0 %v6880_v51  ;;  %5766 = vmatprep.mubr.f32.mxu1 %v8343_v19  ;;  %v6888_v51 = vpack.c.bf16 %v2042_v37, %v2041_v32  ;;  %v1382_v19 = vld [vmem:[#allocation7 + $0x188] sm:$0xff]  ;;  %v6892_v32 = vpack.c.bf16 %v2205_v40, %v2204_v6  ;;  %v1385_v40 = vld [vmem:[#allocation7 + $0x1a0] sm:$0xff] }
  0xe2   : >> { %5990 = vmatprep.mubr.f32.mxu0 %v8569_v41  ;;  %6757 = vmatprep.subr.bf16.mxu1 %v6756_v12  ;;  %v6764_v37 = vpack.c.bf16 %v1382_v19, %v1381_v55  ;;  %v1086_v19 = vsel %vm9557_vm15, %v1057_v11, %v8431_v48  ;;  %v2206_v55 = vld [vmem:[#allocation7 + $0x390] sm:$0xff]  ;;  %v2208_v48 = vld [vmem:[#allocation7 + $0x3a0] sm:$0xff]  ;;  %v2209_v11 = vld [vmem:[#allocation7 + $0x3a8] sm:$0xff] }
  0xe3   : >> { %5767 = vmatmul.mubr.f32.gmra.mrb[12].mxu1 %v8374_v10  ;;  %6885 = vmatprep.subr.bf16.mxu0 %v6884_v35 }
  0xe4   : >> { %5991 = vmatmul.mubr.msk.f32.gmra.mrb[12].mxu0 %vm8174_vm14, %v8578_v20  ;;  %6759 = vmatpush3.bf16.msra.mxu1 %v6756_v12  ;;  %v9668_v12 = vrot.slane %v8351_v25, 7  ;;  %v1384_v20 = vld [vmem:[#allocation7 + $0x198] sm:$0xff] }
  0xe5   : >> { %6887 = vmatpush3.bf16.msra.mxu0 %v6884_v35  ;;  %5769 = vmatprep.mubr.f32.mxu1 %v8380_v16 }
  0xe6   : >> { %5993 = vmatprep.mubr.f32.mxu0 %v8587_v54  ;;  %6761 = vmatprep.subr.bf16.mxu1 %v6760_v23  ;;  %v2010_v35 = vsel %vm9659_vm6, %v9668_v12, %v8257_v9  ;;  %v6768_v9 = vpack.c.bf16 %v1384_v20, %v1383_v14  ;;  %v2211_v12 = vld [vmem:[#allocation7 + $0x3b8] sm:$0xff]  ;;  %v2212_v14 = vld [vmem:[#allocation7 + $0x3c0] sm:$0xff] }
  0xe7   : >> { %5770 = vmatmul.mubr.f32.gmra.mrb[14].mxu1 %v8218_v5  ;;  %6889 = vmatprep.subr.bf16.mxu0 %v6888_v51  ;;  %v2207_v5 = vld [vmem:[#allocation7 + $0x398] sm:$0xff] }
  0xe8   : >> { %5994 = vmatmul.mubr.msk.f32.gmra.mrb[14].mxu0 %vm9669_vm7, %v1766_v31  ;;  %6763 = vmatpush3.bf16.msra.mxu1 %v6760_v23  ;;  %v6896_v6 = vpack.c.bf16 %v2207_v5, %v2206_v55  ;;  %v1386_v23 = vld [vmem:[#allocation7 + $0x1a8] sm:$0xff]  ;;  %v1387_v31 = vld [vmem:[#allocation7 + $0x1b0] sm:$0xff]  ;;  %v1392_v5 = vld [vmem:[#allocation7 + $0x1d8] sm:$0xff] }
  0xe9   : >> { %6891 = vmatpush3.bf16.msra.mxu0 %v6888_v51  ;;  %5804 = vmatprep.mubr.f32.mxu1 %v1087_v24  ;;  %v6772_v20 = vpack.c.bf16 %v1386_v23, %v1385_v40  ;;  %v6900_v51 = vpack.c.bf16 %v2209_v11, %v2208_v48  ;;  %v1388_v24 = vld [vmem:[#allocation7 + $0x1b8] sm:$0xff]  ;;  %v1391_v55 = vld [vmem:[#allocation7 + $0x1d0] sm:$0xff]  ;;  %v1393_v23 = vld [vmem:[#allocation7 + $0x1e0] sm:$0xff] }
  0xea   : >> { %6028 = vmatprep.mubr.msk.f32.mxu0 %vm8112_vm0, %v2010_v35  ;;  %6765 = vmatprep.subr.bf16.mxu1 %v6764_v37  ;;  %v1389_v35 = vld [vmem:[#allocation7 + $0x1c0] sm:$0xff]  ;;  %v1394_v48 = vld [vmem:[#allocation7 + $0x1e8] sm:$0xff] }
  0xeb   : >> { %5805 = vmatmul.mubr.msk.f32.vlgmr.msra.gmra.mrb[0].mxu1 %vm8148_vm8, %v1086_v19  ;;  %6893 = vmatprep.subr.bf16.mxu0 %v6892_v32  ;;  %v2213_v19 = vld [vmem:[#allocation7 + $0x3c8] sm:$0xff] }
  0xec   : >> { %6029 = vmatmul.mubr.f32.vlgmr.msra.gmra.mrb[0].mxu0 %v8295_v30  ;;  %6767 = vmatpush3.bf16.msra.mxu1 %v6764_v37  ;;  %v2210_v37 = vld [vmem:[#allocation7 + $0x3b0] sm:$0xff]  ;;  %v9670_v11 = vld [vmem:[#allocation35_spill] sm:$0xff] }
  0xed   : >> { %6895 = vmatpush3.bf16.msra.mxu0 %v6892_v32  ;;  %5807 = vmatprep.mubr.f32.mxu1 %v8471_v8  ;;  %v6776_v8 = vpack.c.bf16 %v1388_v24, %v1387_v31  ;;  %v1390_v32 = vld [vmem:[#allocation7 + $0x1c8] sm:$0xff]  ;;  %v6788_v24 = vpack.c.bf16 %v1394_v48, %v1393_v23  ;;  %v9679_v23 = vld [vmem:[#allocation33_spill] sm:$0xff]  ;;  %v9680_v48 = vld [vmem:[#allocation18_spill] sm:$0xff] }
  0xee   : >> { %6031 = vmatprep.mubr.msk.f32.mxu0 %vm8116_vm1, %v8309_v38  ;;  %6769 = vmatprep.subr.bf16.mxu1 %v6768_v9  ;;  %v7654_v31 = vld [vmem:[%s8212_s9 + $0x28] sm:$0xff] }
  0xef   : >> { %5808 = vmatmul.mubr.msk.f32.gmra.mrb[2].mxu1 %vm8152_vm9, %v8478_v21  ;;  %6897 = vmatprep.subr.bf16.mxu0 %v6896_v6  ;;  %v6904_v21 = vpack.c.bf16 %v2211_v12, %v2210_v37  ;;  %v1395_v12 = vld [vmem:[#allocation7 + $0x1f0] sm:$0xff] }
  0xf0   : >> { %6032 = vmatmul.mubr.f32.gmra.mrb[2].mxu0 %v8319_v59  ;;  %6771 = vmatpush3.bf16.msra.mxu1 %v6768_v9  ;;  %v2214_v9 = vld [vmem:[#allocation7 + $0x3d0] sm:$0xff] }
  0xf1   : >> { %6899 = vmatpush3.bf16.msra.mxu0 %v6896_v6  ;;  %5810 = vmatprep.mubr.f32.mxu1 %v8487_v43  ;;  %v6780_v43 = vpack.c.bf16 %v1390_v32, %v1389_v35  ;;  %v2215_v6 = vld [vmem:[#allocation7 + $0x3d8] sm:$0xff]  ;;  %v2218_v35 = vld [vmem:[#allocation7 + $0x3f0] sm:$0xff] }
  0xf2   : >> { %6034 = vmatprep.mubr.msk.f32.mxu0 %vm8120_vm2, %v8337_v17  ;;  %6773 = vmatprep.subr.bf16.mxu1 %v6772_v20  ;;  %v6912_v40 = vpack.c.bf16 %v2215_v6, %v2214_v9  ;;  %v2219_v32 = vld [vmem:[#allocation7 + $0x3f8] sm:$0xff]  ;;  %v2429_v6 = vld [vmem:[#allocation7 + $0x400] sm:$0xff] }
  0xf3   : >> { %5811 = vmatmul.mubr.msk.f32.gmra.mrb[4].mxu1 %vm8156_vm10, %v8496_v26  ;;  %6901 = vmatprep.subr.bf16.mxu0 %v6900_v51  ;;  %v6908_v26 = vpack.c.bf16 %v2213_v19, %v2212_v14  ;;  %v9673_v14 = vld [vmem:[#allocation28_spill] sm:$0xff]  ;;  %v9674_v19 = vrot.slane %v8289_v29, 7  ;;  %v6920_v9 = vpack.c.bf16 %v2219_v32, %v2218_v35  ;;  %v2434_v35 = vld [vmem:[#allocation7 + $0x428] sm:$0xff] }
  0xf4   : >> { %6035 = vmatmul.mubr.f32.gmra.mrb[4].mxu0 %v8348_v22  ;;  %6775 = vmatpush3.bf16.msra.mxu1 %v6772_v20  ;;  %v2216_v20 = vld [vmem:[#allocation7 + $0x3e0] sm:$0xff]  ;;  %v9686_v32 = vld [vmem:[#allocation23_spill] sm:$0xff] }
  0xf5   : >> { %6903 = vmatpush3.bf16.msra.mxu0 %v6900_v51  ;;  %5813 = vmatprep.mubr.f32.mxu1 %v8504_v27  ;;  %v6784_v27 = vpack.c.bf16 %v1392_v5, %v1391_v55  ;;  %v2217_v51 = vld [vmem:[#allocation7 + $0x3e8] sm:$0xff]  ;;  %v9676_v55 = vld [vmem:[#allocation17_spill] sm:$0xff] }
  0xf6   : >> { %6037 = vmatprep.mubr.msk.f32.mxu0 %vm8126_vm3, %v8364_v36  ;;  %6777 = vmatprep.subr.bf16.mxu1 %v6776_v8  ;;  %v6916_v37 = vpack.c.bf16 %v2217_v51, %v2216_v20  ;;  %vm9677_vm15 = vnez %v9676_v55  ;;  %v2431_v51 = vld [vmem:[#allocation7 + $0x410] sm:$0xff] }
  0xf7   : >> { %5814 = vmatmul.mubr.msk.f32.gmra.mrb[6].mxu1 %vm9665_vm11, %v8514_v39  ;;  %6905 = vmatprep.subr.bf16.mxu0 %v6904_v21  ;;  %vm9681_vm11 = vnez %v9680_v48 }
  0xf8   : >> { %6038 = vmatmul.mubr.f32.gmra.mrb[6].mxu0 %v8397_v33  ;;  %6779 = vmatpush3.bf16.msra.mxu1 %v6776_v8  ;;  %v1396_v8 = vld [vmem:[#allocation7 + $0x1f8] sm:$0xff] }
  0xf9   : >> { %6907 = vmatpush3.bf16.msra.mxu0 %v6904_v21  ;;  %5816 = vmatprep.mubr.f32.mxu1 %v8520_v3  ;;  %v9672_v21 = vld [vmem:[#allocation38_spill] sm:$0xff]  ;;  %v6792_v5 = vpack.c.bf16 %v1396_v8, %v1395_v12  ;;  %v9685_v12 = vld [vmem:[#allocation21_spill] sm:$0xff] }
  0xfa   : >> { %6040 = vmatprep.mubr.msk.f32.mxu0 %vm8130_vm4, %v8405_v53  ;;  %6781 = vmatprep.subr.bf16.mxu1 %v6780_v43  ;;  %v2433_v8 = vld [vmem:[#allocation7 + $0x420] sm:$0xff] }
  0xfb   : >> { %5817 = vmatmul.mubr.msk.f32.gmra.mrb[8].mxu1 %vm8166_vm12, %v8528_v7  ;;  %6909 = vmatprep.subr.bf16.mxu0 %v6908_v26 }
  0xfc   : >> { %6041 = vmatmul.mubr.f32.gmra.mrb[8].mxu0 %v9670_v11  ;;  %6783 = vmatpush3.bf16.msra.mxu1 %v6780_v43  ;;  %v8664_v43 = vsel %vm9659_vm6, %v9674_v19, %v9673_v14  ;;  %vm9678_vm6 = vcmp.lt.s32.totalorder %v8067_v2, 7  ;;  %v9687_v14 = vld [vmem:[#allocation20_spill] sm:$0xff]  ;;  %v6932_v19 = vpack.c.bf16 %v2434_v35, %v2433_v8 }
  0xfd   : >> { %6911 = vmatpush3.bf16.msra.mxu0 %v6908_v26  ;;  %5819 = vmatprep.mubr.f32.mxu1 %v8537_v13  ;;  %v9675_v26 = vld [vmem:[#allocation29_spill] sm:$0xff] }
  0xfe   : >> { %6043 = vmatprep.mubr.msk.f32.mxu0 %vm8134_vm5, %v8417_v34  ;;  %6785 = vmatprep.subr.bf16.mxu1 %v6784_v27 }
  0xff   : >> { %5820 = vmatmul.mubr.msk.f32.gmra.mrb[10].mxu1 %vm8170_vm13, %v8453_v15  ;;  %6913 = vmatprep.subr.bf16.mxu0 %v6912_v40 }
 0x100   : >> { %6044 = vmatmul.mubr.f32.gmra.mrb[10].mxu0 %v9672_v21  ;;  %6787 = vmatpush3.bf16.msra.mxu1 %v6784_v27  ;;  %v2430_v27 = vld [vmem:[#allocation7 + $0x408] sm:$0xff] }
 0x101   : >> { %6915 = vmatpush3.bf16.msra.mxu0 %v6912_v40  ;;  %5822 = vmatprep.mubr.f32.mxu1 %v8553_v52  ;;  %v1088_v40 = vsel %vm9678_vm6, %v8546_v42, %v1056_v47  ;;  %v6924_v20 = vpack.c.bf16 %v2430_v27, %v2429_v6  ;;  %v9683_v42 = vld [vmem:[#allocation31_spill] sm:$0xff]  ;;  %v9688_v6 = vld [vmem:[#allocation22_spill] sm:$0xff] }
 0x102   : >> { %6046 = vmatprep.mubr.msk.f32.mxu0 %vm9677_vm15, %v9675_v26  ;;  %6789 = vmatprep.subr.bf16.mxu1 %v6788_v24  ;;  %v9684_v47 = vld [vmem:[#allocation19_spill] sm:$0xff] }
 0x103   : >> { %5823 = vmatmul.mubr.msk.f32.gmra.mrb[12].mxu1 %vm8174_vm14, %v8562_v28  ;;  %6917 = vmatprep.subr.bf16.mxu0 %v6916_v37 }
 0x104   : >> { %6047 = vmatmul.mubr.f32.gmra.mrb[12].mxu0 %v8664_v43  ;;  %6791 = vmatpush3.bf16.msra.mxu1 %v6788_v24  ;;  %v2432_v24 = vld [vmem:[#allocation7 + $0x418] sm:$0xff] }
 0x105   : >> { %6919 = vmatpush3.bf16.msra.mxu0 %v6916_v37  ;;  %5825 = vmatprep.mubr.f32.mxu1 %v8569_v41  ;;  %v6928_v37 = vpack.c.bf16 %v2432_v24, %v2431_v51  ;;  %v2439_v51 = vld [vmem:[#allocation7 + $0x450] sm:$0xff]  ;;  %v9692_v24 = vld [vmem:[#allocation30_spill] sm:$0xff] }
 0x106   : >> { %6049 = vmatprep.mubr.msk.f32.mxu0 %vm9681_vm11, %v9679_v23  ;;  %6793 = vmatprep.subr.bf16.mxu1 %v6792_v5  ;;  %v9690_v23 = vld [vmem:[#allocation25_spill] sm:$0xff] }
 0x107   : >> { %5826 = vmatmul.mubr.msk.f32.gmra.mrb[14].mxu1 %vm9669_vm7, %v1088_v40  ;;  %6921 = vmatprep.subr.bf16.mxu0 %v6920_v9  ;;  %v2437_v40 = vld [vmem:[#allocation7 + $0x440] sm:$0xff] }
 0x108   : >> { %6050 = vmatmul.mubr.f32.gmra.mrb[14].mxu0 %v9682_v1  ;;  %6795 = vmatpush3.bf16.msra.mxu1 %v6792_v5  ;;  %v2435_v5 = vld [vmem:[#allocation7 + $0x430] sm:$0xff]  ;;  %v2442_v1 = vld [vmem:[#allocation7 + $0x468] sm:$0xff] }
 0x109   : >> { %6923 = vmatpush3.bf16.msra.mxu0 %v6920_v9  ;;  %5860 = vmatprep.mubr.msk.f32.mxu1 %vm8112_vm0, %v9683_v42  ;;  %v2436_v9 = vld [vmem:[#allocation7 + $0x438] sm:$0xff] }
 0x10a   : >> { %6084 = vmatprep.mubr.f32.mxu0 %v9684_v47  ;;  %6925 = vmatprep.subr.bf16.mxu0 %v6924_v20  ;;  %v6936_v27 = vpack.c.bf16 %v2436_v9, %v2435_v5  ;;  %v7652_v42 = vld [vmem:[%s8212_s9 + $0x78] sm:$0xff]  ;;  %v9693_v47 = vld [vmem:[#allocation27_spill] sm:$0xff] }
 0x10b   : >> { %5861 = vmatmul.mubr.f32.vlgmr.msra.gmra.mrb[0].mxu1 %v9685_v12  ;;  %7244 = vmatprep.subr.bf16.mxu1 %v6924_v20 }
 0x10c   : >> { %6085 = vmatmul.mubr.f32.vlgmr.msra.gmra.mrb[0].mxu0 %v8251_v60  ;;  %7252 = vmatpush3.bf16.msra.mxu1 %v6924_v20  ;;  %v9689_v60 = vld [vmem:[#allocation24_spill] sm:$0xff] }
 0x10d   : >> { %6927 = vmatpush3.bf16.msra.mxu0 %v6924_v20  ;;  %5863 = vmatprep.mubr.msk.f32.mxu1 %vm8116_vm1, %v9686_v32  ;;  %v9691_v20 = vld [vmem:[#allocation26_spill] sm:$0xff] }
 0x10e   : >> { %6087 = vmatprep.mubr.f32.mxu0 %v9687_v14  ;;  %6929 = vmatprep.subr.bf16.mxu0 %v6928_v37  ;;  %v9704_v14 = vld [vmem:[#allocation14_spill] sm:$0xff] }
 0x10f   : >> { %5864 = vmatmul.mubr.f32.gmra.mrb[2].mxu1 %v8295_v30  ;;  %7245 = vmatprep.subr.bf16.mxu1 %v6928_v37  ;;  %v2438_v30 = vld [vmem:[#allocation7 + $0x448] sm:$0xff] }
 0x110   : >> { %6088 = vmatmul.mubr.f32.gmra.mrb[2].mxu0 %v9688_v6  ;;  %7253 = vmatpush3.bf16.msra.mxu1 %v6928_v37 }
 0x111   : >> { %6931 = vmatpush3.bf16.msra.mxu0 %v6928_v37  ;;  %5866 = vmatprep.mubr.msk.f32.mxu1 %vm8120_vm2, %v8309_v38  ;;  %v6940_v38 = vpack.c.bf16 %v2438_v30, %v2437_v40 }
 0x112   : >> { %6090 = vmatprep.mubr.f32.mxu0 %v9689_v60  ;;  %6933 = vmatprep.subr.bf16.mxu0 %v6932_v19 }
 0x113   : >> { %5867 = vmatmul.mubr.f32.gmra.mrb[4].mxu1 %v8319_v59  ;;  %7246 = vmatprep.subr.bf16.mxu1 %v6932_v19  ;;  %v2440_v59 = vld [vmem:[#allocation7 + $0x458] sm:$0xff] }
 0x114   : >> { %6091 = vmatmul.mubr.f32.gmra.mrb[4].mxu0 %v9690_v23  ;;  %7254 = vmatpush3.bf16.msra.mxu1 %v6932_v19 }
 0x115   : >> { %6935 = vmatpush3.bf16.msra.mxu0 %v6932_v19  ;;  %5869 = vmatprep.mubr.msk.f32.mxu1 %vm8126_vm3, %v8337_v17  ;;  %v6944_v17 = vpack.c.bf16 %v2440_v59, %v2439_v51 }
 0x116   : >> { %6093 = vmatprep.mubr.f32.mxu0 %v9691_v20  ;;  %6937 = vmatprep.subr.bf16.mxu0 %v6936_v27 }
 0x117   : >> { %5870 = vmatmul.mubr.f32.gmra.mrb[6].mxu1 %v8348_v22  ;;  %7247 = vmatprep.subr.bf16.mxu1 %v6936_v27  ;;  %v2441_v22 = vld [vmem:[#allocation7 + $0x460] sm:$0xff] }
 0x118   : >> { %6094 = vmatmul.mubr.f32.gmra.mrb[6].mxu0 %v8340_v18  ;;  %7255 = vmatpush3.bf16.msra.mxu1 %v6936_v27  ;;  %v6948_v18 = vpack.c.bf16 %v2442_v1, %v2441_v22 }
 0x119   : >> { %6939 = vmatpush3.bf16.msra.mxu0 %v6936_v27  ;;  %5872 = vmatprep.mubr.msk.f32.mxu1 %vm8130_vm4, %v8364_v36  ;;  %v2443_v36 = vld [vmem:[#allocation7 + $0x470] sm:$0xff] }
 0x11a   : >> { %6096 = vmatprep.mubr.f32.mxu0 %v9692_v24  ;;  %6941 = vmatprep.subr.bf16.mxu0 %v6940_v38 }
 0x11b   : >> { %5873 = vmatmul.mubr.f32.gmra.mrb[8].mxu1 %v8397_v33  ;;  %7248 = vmatprep.subr.bf16.mxu1 %v6940_v38  ;;  %v2444_v33 = vld [vmem:[#allocation7 + $0x478] sm:$0xff] }
 0x11c   : >> { %6097 = vmatmul.mubr.f32.gmra.mrb[8].mxu0 %v8374_v10  ;;  %7256 = vmatpush3.bf16.msra.mxu1 %v6940_v38  ;;  %v7653_v10 = vld [vmem:[%s8212_s9 + $0x20] sm:$0xff] }
 0x11d   : >> { %6943 = vmatpush3.bf16.msra.mxu0 %v6940_v38  ;;  %5875 = vmatprep.mubr.msk.f32.mxu1 %vm8134_vm5, %v8405_v53  ;;  %v2381_v53 = vrot.slane %v7653_v10, 1 }
 0x11e   : >> { %6099 = vmatprep.mubr.f32.mxu0 %v8380_v16  ;;  %6945 = vmatprep.subr.bf16.mxu0 %v6944_v17  ;;  %v6952_v16 = vpack.c.bf16 %v2444_v33, %v2443_v36 }
 0x11f   : >> { %5876 = vmatmul.mubr.f32.gmra.mrb[10].mxu1 %v9670_v11  ;;  %7249 = vmatprep.subr.bf16.mxu1 %v6944_v17  ;;  %v2382_v11 = vrot.slane %v7654_v31, 1 }
 0x120   : >> { %6100 = vmatmul.mubr.f32.gmra.mrb[10].mxu0 %v7652_v42  ;;  %7257 = vmatpush3.bf16.msra.mxu1 %v6944_v17 }
 0x121   : >> { %6947 = vmatpush3.bf16.msra.mxu0 %v6944_v17  ;;  %5878 = vmatprep.mubr.msk.f32.mxu1 %vm9677_vm15, %v8417_v34  ;;  %v7655_v34 = vld [vmem:[%s8212_s9 + $0x30] sm:$0xff]  ;;  %vm9695_vm15 = vmmov %vm9678_vm6 }
 0x122   : >> { %6102 = vmatprep.mubr.f32.mxu0 %v8289_v29  ;;  %6949 = vmatprep.subr.bf16.mxu0 %v6948_v18  ;;  %v2383_v55 = vrot.slane %v7655_v34, 1  ;;  %v9694_v29 = vld [vmem:[#allocation32_spill] sm:$0xff]  ;;  %v2411_v37 = vsel %vm9695_vm15, %v2381_v53, %v2382_v11  ;;  %vm9702_vm15 = vmmov %vm9678_vm6 }
 0x123   : >> { %5879 = vmatmul.mubr.f32.gmra.mrb[12].mxu1 %v9672_v21  ;;  %7250 = vmatprep.subr.bf16.mxu1 %v6948_v18 }
 0x124   : >> { %6103 = vmatmul.mubr.f32.gmra.mrb[12].mxu0 %v9693_v47  ;;  %7258 = vmatpush3.bf16.msra.mxu1 %v6948_v18  ;;  %v2410_v21 = vsel %vm9678_vm6, %v2382_v11, %v2383_v55 }
 0x125   : >> { %6951 = vmatpush3.bf16.msra.mxu0 %v6948_v18  ;;  %5881 = vmatprep.mubr.msk.f32.mxu1 %vm9681_vm11, %v9675_v26  ;;  %v9696_v26 = vld [vmem:[#allocation39_spill] sm:$0xff]  ;;  %vm9697_vm11 = vmmov %vm9678_vm6  ;;  %vm9703_vm6 = vnez %v9624_v61 }
 0x126   : >> { %6105 = vmatprep.mubr.f32.mxu0 %v9694_v29  ;;  %6953 = vmatprep.subr.bf16.mxu0 %v6952_v16  ;;  %v2409_v48 = vsel %vm9697_vm11, %v2383_v55, %v9696_v26 }
 0x127   : >> { %5882 = vmatmul.mubr.f32.gmra.mrb[14].mxu1 %v8664_v43  ;;  %7251 = vmatprep.subr.bf16.mxu1 %v6952_v16  ;;  %v9698_v43 = vld [vmem:[#allocation40_spill] sm:$0xff] }
 0x128   : >> { %6106 = vmatmul.mubr.f32.gmra.mrb[14].mxu0 %v8351_v25  ;;  %7259 = vmatpush3.bf16.msra.mxu1 %v6952_v16 }
 0x129   : >> { %6955 = vmatpush3.bf16.msra.mxu0 %v6952_v16  ;;  %6140 = vmatprep.mubr.f32.mxu0 %v2411_v37 }
 0x12a   : >> { %6152 = vmatprep.mubr.f32.mxu1 %v8553_v52  ;;  %v9699_v52 = vld [vmem:[#allocation36_spill] sm:$0xff] }
 0x12b   : >> { %6153 = vmatmul.mubr.msk.f32.vlgmr.msra.gmra.mrb[16].mxu1 %vm8166_vm12, %v8562_v28  ;;  %v9700_v28 = vld [vmem:[#allocation37_spill] sm:$0xff] }
 0x12c   : >> { %6141 = vmatmul.mubr.msk.f32.vlgmr.msra.gmra.mrb[0].mxu0 %vm8148_vm8, %v2410_v21  ;;  %6155 = vmatprep.mubr.f32.mxu1 %v8569_v41  ;;  %v9701_v41 = vrot.slane %v8351_v25, 1 }
 0x12d   : >> { %6143 = vmatprep.mubr.f32.mxu0 %v2409_v48 }
 0x12e   : >> { %v2412_v12 = vsel %vm9702_vm15, %v9701_v41, %v2381_v53 }
 0x12f   : >> { %6156 = vmatmul.mubr.msk.f32.gmra.mrb[18].mxu1 %vm8170_vm13, %v9698_v43 }
 0x130   : >> { %6144 = vmatmul.mubr.msk.f32.gmra.mrb[2].mxu0 %vm8152_vm9, %v8514_v39  ;;  %6158 = vmatprep.mubr.f32.mxu1 %v8587_v54 }
 0x131   : >> { %6146 = vmatprep.mubr.f32.mxu0 %v8520_v3 }
 0x133   : >> { %6159 = vmatmul.mubr.msk.f32.gmra.mrb[20].mxu1 %vm8174_vm14, %v9699_v52 }
 0x134   : >> { %6147 = vmatmul.mubr.msk.f32.gmra.mrb[4].mxu0 %vm8156_vm10, %v8528_v7  ;;  %6161 = vmatprep.mubr.f32.mxu1 %v9700_v28 }
 0x135   : >> { %6149 = vmatprep.mubr.f32.mxu0 %v8537_v13 }
 0x137   : >> { %6162 = vmatmul.mubr.msk.f32.gmra.mrb[22].mxu1 %vm9669_vm7, %v2412_v12 }
 0x138   : >> { %6150 = vmatmul.mubr.msk.f32.gmra.mrb[6].mxu0 %vm9703_vm6, %v8453_v15 }
 0x1de   : >> { %v5862_v39 = vpop.f32.mrb[0].mxu1 }
 0x1df   : >> { %v1463_v3 = vpop.f32.mrb[1].mxu1  ;;  %v7260_v29 = vadd.f32 %v5862_v39, %v9704_v14 }
 0x1e0   : >> { %v7262_v26 = vadd.f32 %v9704_v14, %v1463_v3 }
 0x1e2   : >> { %v5865_v54 = vpop.f32.mrb[2].mxu1 }
 0x1e3   : >> { %v1473_v7 = vpop.f32.mrb[3].mxu1 }
 0x1e4   : >> { %v7266_v39 = vadd.f32 %v9704_v14, %v1473_v7 }
 0x1e6   : >> { %v8775_v8 = vpop.f32.mrb[4].mxu1 }
 0x1e7   : >> { %v8777_v35 = vpop.f32.mrb[5].mxu1 }
 0x1ea   : >> { %v8779_v25 = vpop.f32.mrb[6].mxu1 }
 0x1eb   : >> { %v8781_v32 = vpop.f32.mrb[7].mxu1 }
 0x1ee   : >> { %v5874_v13 = vpop.f32.mrb[8].mxu1 }
 0x1ef   : >> { %v7276_v19 = vadd.f32 %v5874_v13, %v9704_v14  ;;  %v6098_v5 = vpop.f32.mrb[8].mxu0  ;;  %v1503_v9 = vpop.f32.mrb[9].mxu1 }
 0x1f0   : >> { %v7279_v6 = vadd.f32 %v9704_v14, %v1503_v9  ;;  %v2326_v15 = vpop.f32.mrb[9].mxu0 }
 0x1f1   : >> { %v7277_v60 = vadd.f32 %v7276_v19, %v6098_v5  ;;  %v7264_v5 = vadd.f32 %v5865_v54, %v9704_v14 }
 0x1f2   : >> { %v7280_v27 = vadd.f32 %v7279_v6, %v2326_v15  ;;  %v5877_v40 = vpop.f32.mrb[10].mxu1 }
 0x1f3   : >> { %v7282_v30 = vadd.f32 %v5877_v40, %v9704_v14  ;;  %v6101_v23 = vpop.f32.mrb[10].mxu0  ;;  %v1513_v20 = vpop.f32.mrb[11].mxu1 }
 0x1f4   : >> { %v7285_v38 = vadd.f32 %v9704_v14, %v1513_v20  ;;  %v2336_v51 = vpop.f32.mrb[11].mxu0 }
 0x1f5   : >> { %v7283_v59 = vadd.f32 %v7282_v30, %v6101_v23 }
 0x1f6   : >> { %v7286_v24 = vadd.f32 %v7285_v38, %v2336_v51  ;;  %v5880_v17 = vpop.f32.mrb[12].mxu1  ;;  %v7268_v38 = vadd.f32 %v8775_v8, %v9704_v14 }
 0x1f7   : >> { %v7288_v22 = vadd.f32 %v5880_v17, %v9704_v14  ;;  %v6104_v1 = vpop.f32.mrb[12].mxu0  ;;  %v1523_v18 = vpop.f32.mrb[13].mxu1 }
 0x1f8   : >> { %v7291_v36 = vadd.f32 %v9704_v14, %v1523_v18  ;;  %v2346_v33 = vpop.f32.mrb[13].mxu0 }
 0x1f9   : >> { %v7289_v42 = vadd.f32 %v7288_v22, %v6104_v1 }
 0x1fa   : >> { %v7292_v16 = vadd.f32 %v7291_v36, %v2346_v33  ;;  %v5883_v10 = vpop.f32.mrb[14].mxu1 }
 0x1fb   : >> { %v7294_v53 = vadd.f32 %v5883_v10, %v9704_v14  ;;  %v6107_v31 = vpop.f32.mrb[14].mxu0  ;;  %v1533_v11 = vpop.f32.mrb[15].mxu1 }
 0x1fc   : >> { %v7297_v47 = vadd.f32 %v9704_v14, %v1533_v11  ;;  %v2356_v34 = vpop.f32.mrb[15].mxu0 }
 0x1fd   : >> { %v7295_v55 = vadd.f32 %v7294_v53, %v6107_v31 }
 0x1fe   : >> { %v7298_v37 = vadd.f32 %v7297_v47, %v2356_v34  ;;  %v6154_v21 = vpop.f32.mrb[16].mxu1 }
 0x1ff   : >> { %v6142_v48 = vpop.f32.mrb[0].mxu0  ;;  %v7278_v43 = vadd.f32 %v7277_v60, %v6154_v21  ;;  %v2551_v52 = vpop.f32.mrb[17].mxu1 }
 0x200   : >> { %v7261_v28 = vadd.f32 %v7260_v29, %v6142_v48  ;;  %v2511_v41 = vpop.f32.mrb[1].mxu0  ;;  %v7281_v12 = vadd.f32 %v7280_v27, %v2551_v52 }
 0x201   : >> { %v2615_v13 = vmax.f32 %v7278_v43, 0.0  ;;  %v7263_v19 = vadd.f32 %v7262_v26, %v2511_v41 }
 0x202   : >> { %v2607_v9 = vmax.f32 %v7261_v28, 0.0  ;;  %v2614_v6 = vmax.f32 %v7281_v12, 0.0  ;;  %v6157_v15 = vpop.f32.mrb[18].mxu1 }
 0x203   : >> { %4976 = vst [vmem:[%s8797_s30 + $0x58] sm:$0xff] %v2615_v13  ;;  %v2606_v3 = vmax.f32 %v7263_v19, 0.0  ;;  %v6145_v60 = vpop.f32.mrb[2].mxu0  ;;  %v7284_v27 = vadd.f32 %v7283_v59, %v6157_v15  ;;  %v2561_v40 = vpop.f32.mrb[19].mxu1  ;;  %v7270_v59 = vadd.f32 %v9704_v14, %v8777_v35  ;;  %v7272_v35 = vadd.f32 %v8779_v25, %v9704_v14 }
 0x204   : >> { %4968 = vst [vmem:[%s8797_s30 + $0x18] sm:$0xff] %v2607_v9  ;;  %4975 = vst [vmem:[%s8797_s30 + $0x50] sm:$0xff] %v2614_v6  ;;  %v7265_v54 = vadd.f32 %v7264_v5, %v6145_v60  ;;  %v2521_v30 = vpop.f32.mrb[3].mxu0  ;;  %v7287_v7 = vadd.f32 %v7286_v24, %v2561_v40 }
 0x205   : >> { %4967 = vst [vmem:[%s8797_s30 + $0x10] sm:$0xff] %v2606_v3  ;;  %v2617_v23 = vmax.f32 %v7284_v27, 0.0  ;;  %v7267_v20 = vadd.f32 %v7266_v39, %v2521_v30 }
 0x206   : >> { %v2609_v51 = vmax.f32 %v7265_v54, 0.0  ;;  %v2616_v17 = vmax.f32 %v7287_v7, 0.0  ;;  %v6160_v22 = vpop.f32.mrb[20].mxu1 }
 0x207   : >> { %4978 = vst [vmem:[%s8797_s30 + $0x68] sm:$0xff] %v2617_v23  ;;  %v2608_v1 = vmax.f32 %v7267_v20, 0.0  ;;  %v6148_v18 = vpop.f32.mrb[4].mxu0  ;;  %v7290_v36 = vadd.f32 %v7289_v42, %v6160_v22  ;;  %v2571_v33 = vpop.f32.mrb[21].mxu1  ;;  %v7274_v42 = vadd.f32 %v9704_v14, %v8781_v32 }
 0x208   : >> { %4970 = vst [vmem:[%s8797_s30 + $0x28] sm:$0xff] %v2609_v51  ;;  %4977 = vst [vmem:[%s8797_s30 + $0x60] sm:$0xff] %v2616_v17  ;;  %v7269_v24 = vadd.f32 %v7268_v38, %v6148_v18  ;;  %v2531_v10 = vpop.f32.mrb[5].mxu0  ;;  %v7293_v53 = vadd.f32 %v7292_v16, %v2571_v33 }
 0x209   : >> { %4969 = vst [vmem:[%s8797_s30 + $0x20] sm:$0xff] %v2608_v1  ;;  %v2619_v8 = vmax.f32 %v7290_v36, 0.0  ;;  %v7271_v31 = vadd.f32 %v7270_v59, %v2531_v10 }
 0x20a   : >> { %v2611_v11 = vmax.f32 %v7269_v24, 0.0  ;;  %v2618_v47 = vmax.f32 %v7293_v53, 0.0  ;;  %v6163_v34 = vpop.f32.mrb[22].mxu1 }
 0x20b   : >> { %4980 = vst [vmem:[%s8797_s30 + $0x78] sm:$0xff] %v2619_v8  ;;  %v2610_v29 = vmax.f32 %v7271_v31, 0.0  ;;  %v6151_v21 = vpop.f32.mrb[6].mxu0  ;;  %v7296_v16 = vadd.f32 %v7295_v55, %v6163_v34  ;;  %v2581_v26 = vpop.f32.mrb[23].mxu1  ;;  %594 = sbr.rel (!%p592_p11) target bundleno = 136 (0x88), region = 119 }
 0x20c   : >> { %4972 = vst [vmem:[%s8797_s30 + $0x38] sm:$0xff] %v2611_v11  ;;  %4979 = vst [vmem:[%s8797_s30 + $0x70] sm:$0xff] %v2618_v47  ;;  %v7273_v48 = vadd.f32 %v7272_v35, %v6151_v21  ;;  %v2541_v43 = vpop.f32.mrb[7].mxu0  ;;  %v7299_v25 = vadd.f32 %v7298_v37, %v2581_v26 }
 0x20d   : >> { %4971 = vst [vmem:[%s8797_s30 + $0x30] sm:$0xff] %v2610_v29  ;;  %v2621_v52 = vmax.f32 %v7296_v16, 0.0  ;;  %v7275_v28 = vadd.f32 %v7274_v42, %v2541_v43 }
 0x20e   : >> { %v2613_v41 = vmax.f32 %v7273_v48, 0.0  ;;  %v2620_v12 = vmax.f32 %v7299_v25, 0.0 }
 0x20f   : >> { %4982 = vst [vmem:[%s8797_s30 + $0x88] sm:$0xff] %v2621_v52  ;;  %v2612_v32 = vmax.f32 %v7275_v28, 0.0 }
 0x210   : >> { %4974 = vst [vmem:[%s8797_s30 + $0x48] sm:$0xff] %v2613_v41  ;;  %4981 = vst [vmem:[%s8797_s30 + $0x80] sm:$0xff] %v2620_v12 }
 0x211   : >> { %4973 = vst [vmem:[%s8797_s30 + $0x40] sm:$0xff] %v2612_v32 }
 0x212 LB: >> { %v2784_v55 = vld [vmem:[#allocation9] sm:$0xff]  ;;  %v2785_v37 = vld [vmem:[#allocation9 + $0x8] sm:$0xff]  ;;  %v2786_v9 = vld [vmem:[#allocation9 + $0x10] sm:$0xff]  ;;  %s8832_s17 = sshll.u32 %s7829_s11, 7  ;;  %vm9706_vm7 = vcmp.lt.s32.totalorder %v8067_v2, 1  ;;  %vm9747_vm10 = vnez %v9622_v58  ;;  %vm9753_vm14 = vnez %v9630_v0  ;;  %s2644_s11 = sadd.s32 1, %s7829_s11   ;;  %s7829_s11 = sphi %s8826_s11, %s2644_s11  }
 0x213   : >> { %v3640_v13 = vld [vmem:[#allocation9 + $0x200] sm:$0xff]  ;;  %v6956_v19 = vpack.c.bf16 %v2785_v37, %v2784_v55  ;;  %v3641_v5 = vld [vmem:[#allocation9 + $0x208] sm:$0xff]  ;;  %v2787_v6 = vld [vmem:[#allocation9 + $0x18] sm:$0xff]  ;;  %s8835_s7 = scalar_lea.vmem [#allocation3], %s8832_s17  ;;  %s9380_s6 = scalar_lea.vmem %s8057_s12, %s8832_s17 [#allocation4] }
 0x214   : >> { %v7084_v15 = vpack.c.bf16 %v3641_v5, %v3640_v13  ;;  %v6960_v39 = vpack.c.bf16 %v2787_v6, %v2786_v9  ;;  %v3642_v3 = vld [vmem:[#allocation9 + $0x210] sm:$0xff]  ;;  %v3643_v60 = vld [vmem:[#allocation9 + $0x218] sm:$0xff]  ;;  %v2788_v27 = vld [vmem:[#allocation9 + $0x20] sm:$0xff]  ;;  %s9423_s8 = scalar_lea.vmem %s8202_s10, %s8832_s17 [#allocation10]  ;;  %p2641_p0 = scmp.ge.s32.totalorder %s2644_s11, 2  }
 0x215   : >> { %6957 = vmatprep.subr.bf16.mxu1 %v6956_v19  ;;  %v7088_v14 = vpack.c.bf16 %v3643_v60, %v3642_v3  ;;  %v2789_v40 = vld [vmem:[#allocation9 + $0x28] sm:$0xff]  ;;  %v3644_v54 = vld [vmem:[#allocation9 + $0x220] sm:$0xff]  ;;  %v2790_v20 = vld [vmem:[#allocation9 + $0x30] sm:$0xff]  ;;  %s5083_s24 = sshll.u32 (%p2641_p0), %s7891_s22, 12  ;;  %s4735_s28 = sshll.u32 (%p2641_p0), %s8202_s10, 4  ;;  %s9466_s28 = int_to_ptr.vmem [resolvable:$true] %s4735_s28 }
 0x216   : >> { %v3645_v30 = vld [vmem:[#allocation9 + $0x228] sm:$0xff]  ;;  %7085 = vmatprep.subr.bf16.mxu0 %v7084_v15  ;;  %6959 = vmatpush3.bf16.msra.mxu1 %v6956_v19  ;;  %v6964_v7 = vpack.c.bf16 %v2789_v40, %v2788_v27  ;;  %v2791_v38 = vld [vmem:[#allocation9 + $0x38] sm:$0xff]  ;;  %v3646_v51 = vld [vmem:[#allocation9 + $0x230] sm:$0xff]  ;;  %s9463_s16 = scalar_lea.hbm (%p2641_p0), %s9515_s5, %s5083_s24  ;;  %s4722_s13 = scalar_lea.sflag (%p2641_p0), [#allocation6], %s8051_s14 }
 0x217   : >> { %7087 = vmatpush3.bf16.msra.mxu0 %v7084_v15  ;;  %6961 = vmatprep.subr.bf16.mxu1 %v6960_v39  ;;  %v7092_v23 = vpack.c.bf16 %v3645_v30, %v3644_v54  ;;  %v3647_v17 = vld [vmem:[#allocation9 + $0x238] sm:$0xff]  ;;  %v6968_v22 = vpack.c.bf16 %v2791_v38, %v2790_v20  ;;  %v2792_v59 = vld [vmem:[#allocation9 + $0x40] sm:$0xff]  ;;  %v2793_v18 = vld [vmem:[#allocation9 + $0x48] sm:$0xff]  ;;  %s7743_s9 = scalar_lea.vmem (%p2641_p0), %s9466_s28, 4096  ;;  %p9796_p3 = scmp.ne.s32.totalorder (%p2641_p0), %s9591_s23, 0 }
 0x218   : >> { %7089 = vmatprep.subr.bf16.mxu0 %v7088_v14  ;;  %v7096_v1 = vpack.c.bf16 %v3647_v17, %v3646_v51  ;;  %v3648_v36 = vld [vmem:[#allocation9 + $0x240] sm:$0xff]  ;;  %v3649_v24 = vld [vmem:[#allocation9 + $0x248] sm:$0xff]  ;;  %v8841_v10 = vld [vmem:[%s8835_s7 + $0x78] sm:$0xff]  ;;  %v6972_v35 = vpack.c.bf16 %v2793_v18, %v2792_v59  ;;  %p7744_p2 = scmp.ne.s32.totalorder (%p2641_p0), %s9466_s28, %s7743_s9  ;;  %s7837_s12 = smov (%p2641_p0), [#allocation10]  }
 0x219   : >> { %v8838_v33 = vld [vmem:[%s8835_s7] sm:$0xff]  ;;  %v8845_v8 = vld [vmem:[%s8835_s7 + $0x10] sm:$0xff]  ;;  %v8848_v31 = vrot.slane %v8841_v10, 7  ;;  %v7100_v11 = vpack.c.bf16 %v3649_v24, %v3648_v36  ;;  %v2795_v34 = vld [vmem:[#allocation9 + $0x58] sm:$0xff]  ;;  %s7747_s30 = sshll.u32 (%p2641_p0), %s7837_s12, 4  ;;  %s7748_s30 = int_to_ptr.vmem [resolvable:$false] %s7747_s30 }
 0x21a   : >> { %6963 = vmatpush3.bf16.msra.mxu1 %v6960_v39  ;;  %v2703_v53 = vrot.slane %v8838_v33, 7  ;;  %6420 = vmatprep.mubr.f32.mxu0 %v8845_v8  ;;  %v2794_v47 = vld [vmem:[#allocation9 + $0x50] sm:$0xff]  ;;  %v3651_v21 = vld [vmem:[#allocation9 + $0x258] sm:$0xff]  ;;  %v2796_v48 = vld [vmem:[#allocation9 + $0x60] sm:$0xff]  ;;  %v8864_v40 = vrot.slane %v8845_v8, 7  ;;  %p7745_p7 = pnand (%p2641_p0), %p7744_p2, %p9796_p3  ;;  %s7749_s22 = scalar_lea.vmem (%p2641_p0), %s7748_s30, 8192 }
 0x21b   : >> { %7091 = vmatpush3.bf16.msra.mxu0 %v7088_v14  ;;  %6965 = vmatprep.subr.bf16.mxu1 %v6964_v7  ;;  %9705 = vst [vmem:[#allocation41_spill] sm:$0xff] %v8848_v31  ;;  %v3650_v29 = vld [vmem:[#allocation9 + $0x250] sm:$0xff]  ;;  %v6976_v16 = vpack.c.bf16 %v2795_v34, %v2794_v47  ;;  %v2797_v43 = vld [vmem:[#allocation9 + $0x68] sm:$0xff]  ;;  %v3652_v25 = vld [vmem:[#allocation9 + $0x260] sm:$0xff]  ;;  %p7750_p12 = scmp.lt.s32.totalorder (%p2641_p0), %s9466_s28, %s7748_s30  ;;  %p7751_p1 = scmp.lt.s32.totalorder (%p2641_p0), %s7749_s22, %s7743_s9 }
 0x21c   : >> { %7093 = vmatprep.subr.bf16.mxu0 %v7092_v23  ;;  %v2735_v42 = vsel %vm9706_vm7, %v8848_v31, %v2703_v53  ;;  %v7104_v26 = vpack.c.bf16 %v3651_v21, %v3650_v29  ;;  %v3653_v52 = vld [vmem:[#allocation9 + $0x268] sm:$0xff]  ;;  %v6980_v28 = vpack.c.bf16 %v2797_v43, %v2796_v48  ;;  %v2798_v12 = vld [vmem:[#allocation9 + $0x70] sm:$0xff]  ;;  %v2799_v32 = vld [vmem:[#allocation9 + $0x78] sm:$0xff]  ;;  %9707 = vst [vmem:[#allocation42_spill] sm:$0xff] %v8864_v40  ;;  %p7746_p9 = pneg (%p2641_p0), %p7745_p7 }
 0x21d   : >> { %6196 = vmatprep.mubr.msk.f32.mxu1 %vm8112_vm0, %v2735_v42  ;;  %v7108_v41 = vpack.c.bf16 %v3653_v52, %v3652_v25  ;;  %v3654_v55 = vld [vmem:[#allocation9 + $0x270] sm:$0xff]  ;;  %v3655_v37 = vld [vmem:[#allocation9 + $0x278] sm:$0xff]  ;;  %v6984_v13 = vpack.c.bf16 %v2799_v32, %v2798_v12  ;;  %v8857_v19 = vld [vmem:[%s8835_s7 + $0x8] sm:$0xff]  ;;  %p7752_p13 = por (%p2641_p0), %p7751_p1, %p7750_p12 }
 0x21e   : >> { %6967 = vmatpush3.bf16.msra.mxu1 %v6964_v7  ;;  %v7112_v5 = vpack.c.bf16 %v3655_v37, %v3654_v55  ;;  %v2961_v9 = vld [vmem:[#allocation9 + $0x80] sm:$0xff]  ;;  %v2962_v6 = vld [vmem:[#allocation9 + $0x88] sm:$0xff]  ;;  %v2704_v3 = vrot.slane %v8857_v19, 7  ;;  %v8861_v27 = vld [vmem:[%s8835_s7 + $0x18] sm:$0xff] }
 0x21f   : >> { %7095 = vmatpush3.bf16.msra.mxu0 %v7092_v23  ;;  %6969 = vmatprep.subr.bf16.mxu1 %v6968_v22  ;;  %v3865_v15 = vld [vmem:[#allocation9 + $0x280] sm:$0xff]  ;;  %v3866_v39 = vld [vmem:[#allocation9 + $0x288] sm:$0xff]  ;;  %v6988_v60 = vpack.c.bf16 %v2962_v6, %v2961_v9  ;;  %v2963_v30 = vld [vmem:[#allocation9 + $0x90] sm:$0xff]  ;;  %v3416_v20 = vrot.slane %v8861_v27, 7  ;;  %p7753_p6 = pnand (%p2641_p0), %p7752_p13, %p7746_p9 }
 0x220   : >> { %7097 = vmatprep.subr.bf16.mxu0 %v7096_v1  ;;  %v7116_v14 = vpack.c.bf16 %v3866_v39, %v3865_v15  ;;  %v8867_v54 = vld [vmem:[%s8835_s7 + $0x20] sm:$0xff]  ;;  %v2964_v7 = vld [vmem:[#allocation9 + $0x98] sm:$0xff]  ;;  %vm9709_vm11 = vmmov %vm9706_vm7 }
 0x221   : >> { %9708 = vst [vmem:[#allocation43_spill] sm:$0xff] %v8867_v54  ;;  %v2734_v23 = vsel %vm9709_vm11, %v2703_v53, %v2704_v3  ;;  %v3867_v38 = vld [vmem:[#allocation9 + $0x290] sm:$0xff]  ;;  %v3868_v51 = vld [vmem:[#allocation9 + $0x298] sm:$0xff]  ;;  %v8873_v17 = vld [vmem:[%s8835_s7 + $0x28] sm:$0xff]  ;;  %v6992_v59 = vpack.c.bf16 %v2964_v7, %v2963_v30 }
 0x222   : >> { %6971 = vmatpush3.bf16.msra.mxu1 %v6968_v22  ;;  %9710 = vst [vmem:[#allocation44_spill] sm:$0xff] %v8873_v17  ;;  %vm9711_vm15 = vmmov %vm9706_vm7  ;;  %v7120_v18 = vpack.c.bf16 %v3868_v51, %v3867_v38  ;;  %v8882_v36 = vld [vmem:[%s8835_s7 + $0x30] sm:$0xff]  ;;  %v2965_v24 = vld [vmem:[#allocation9 + $0xa0] sm:$0xff] }
 0x223   : >> { %7099 = vmatpush3.bf16.msra.mxu0 %v7096_v1  ;;  %6973 = vmatprep.subr.bf16.mxu1 %v6972_v35  ;;  %v2733_v22 = vsel %vm9711_vm15, %v2704_v3, %v8864_v40  ;;  %v8879_v1 = vrot.slane %v8867_v54, 7  ;;  %9712 = vst [vmem:[#allocation45_spill] sm:$0xff] %v8882_v36  ;;  %v2966_v53 = vld [vmem:[#allocation9 + $0xa8] sm:$0xff]  ;;  %vm9713_vm6 = vmmov %vm9706_vm7  ;;  %v3869_v47 = vld [vmem:[#allocation9 + $0x2a0] sm:$0xff] }
 0x224   : >> { %7101 = vmatprep.subr.bf16.mxu0 %v7100_v11  ;;  %v3870_v34 = vld [vmem:[#allocation9 + $0x2a8] sm:$0xff]  ;;  %v8894_v42 = vld [vmem:[%s8835_s7 + $0x38] sm:$0xff]  ;;  %vm9716_vm7 = vmmov %vm9713_vm6  ;;  %v6996_v21 = vpack.c.bf16 %v2966_v53, %v2965_v24 }
 0x225   : >> { %9715 = vst [vmem:[#allocation47_spill] sm:$0xff] %v8894_v42  ;;  %v8900_v29 = vsel %vm9716_vm7, %v3416_v20, %v8879_v1  ;;  %v8905_v48 = vld [vmem:[%s8835_s7 + $0x40] sm:$0xff]  ;;  %v2967_v43 = vld [vmem:[#allocation9 + $0xb0] sm:$0xff]  ;;  %v2968_v25 = vld [vmem:[#allocation9 + $0xb8] sm:$0xff] }
 0x226   : >> { %6975 = vmatpush3.bf16.msra.mxu1 %v6972_v35  ;;  %v8888_v35 = vsel %vm9713_vm6, %v8864_v40, %v3416_v20  ;;  %9717 = vst [vmem:[#allocation48_spill] sm:$0xff] %v8900_v29  ;;  %9718 = vst [vmem:[#allocation49_spill] sm:$0xff] %v8905_v48  ;;  %v3872_v12 = vld [vmem:[#allocation9 + $0x2b8] sm:$0xff]  ;;  %v8918_v32 = vld [vmem:[%s8835_s7 + $0x48] sm:$0xff]  ;;  %v7000_v37 = vpack.c.bf16 %v2968_v25, %v2967_v43  ;;  %v3820_v40 = vrot.slane %v8873_v17, 1 }
 0x227   : >> { %7103 = vmatpush3.bf16.msra.mxu0 %v7100_v11  ;;  %6977 = vmatprep.subr.bf16.mxu1 %v6976_v16  ;;  %9714 = vst [vmem:[#allocation46_spill] sm:$0xff] %v8888_v35  ;;  %v2708_v11 = vrot.slane %v8873_v17, 7  ;;  %vm9719_vm11 = vmmov %vm9713_vm6  ;;  %v8928_v9 = vld [vmem:[%s8835_s7 + $0x50] sm:$0xff]  ;;  %v2969_v6 = vld [vmem:[#allocation9 + $0xc0] sm:$0xff]  ;;  %v2712_v3 = vrot.slane %v8918_v32, 7 }
 0x228   : >> { %7105 = vmatprep.subr.bf16.mxu0 %v7104_v26  ;;  %9720 = vst [vmem:[#allocation50_spill] sm:$0xff] %v8918_v32  ;;  %vm9721_vm15 = vmmov %vm9713_vm6  ;;  %v2970_v15 = vld [vmem:[#allocation9 + $0xc8] sm:$0xff]  ;;  %v8940_v30 = vld [vmem:[%s8835_s7 + $0x58] sm:$0xff]  ;;  %v2713_v20 = vrot.slane %v8928_v9, 7 }
 0x229   : >> { %v8911_v52 = vsel %vm9719_vm11, %v8879_v1, %v2708_v11  ;;  %9722 = vst [vmem:[#allocation51_spill] sm:$0xff] %v8928_v9  ;;  %9723 = vst [vmem:[#allocation52_spill] sm:$0xff] %v8940_v30  ;;  %v8949_v38 = vld [vmem:[%s8835_s7 + $0x60] sm:$0xff]  ;;  %v2714_v53 = vrot.slane %v8940_v30, 7 }
 0x22a   : >> { %6979 = vmatpush3.bf16.msra.mxu1 %v6976_v16  ;;  %v2709_v16 = vrot.slane %v8882_v36, 7  ;;  %vm9724_vm7 = vmmov %vm9713_vm6  ;;  %9725 = vst [vmem:[#allocation53_spill] sm:$0xff] %v8949_v38 }
 0x22b   : >> { %7107 = vmatpush3.bf16.msra.mxu0 %v7104_v26  ;;  %6981 = vmatprep.subr.bf16.mxu1 %v6980_v28  ;;  %v7124_v26 = vpack.c.bf16 %v3870_v34, %v3869_v47  ;;  %vm9727_vm11 = vmmov %vm9713_vm6  ;;  %v3876_v47 = vld [vmem:[#allocation9 + $0x2d8] sm:$0xff]  ;;  %v8962_v34 = vld [vmem:[%s8835_s7 + $0x88] sm:$0xff] }
 0x22c   : >> { %7109 = vmatprep.subr.bf16.mxu0 %v7108_v41  ;;  %v8923_v55 = vsel %vm9721_vm15, %v2708_v11, %v2709_v16  ;;  %v3875_v11 = vld [vmem:[#allocation9 + $0x2d0] sm:$0xff]  ;;  %vm9728_vm15 = vmmov %vm9713_vm6 }
 0x22d   : >> { %v8977_v43 = vsel %vm9728_vm15, %v2712_v3, %v2713_v20  ;;  %vm9734_vm15 = vmmov %vm9724_vm7 }
 0x22e   : >> { %6983 = vmatpush3.bf16.msra.mxu1 %v6980_v28  ;;  %v2710_v28 = vrot.slane %v8894_v42, 7 }
 0x22f   : >> { %7111 = vmatpush3.bf16.msra.mxu0 %v7108_v41  ;;  %6985 = vmatprep.subr.bf16.mxu1 %v6984_v13  ;;  %v3871_v41 = vld [vmem:[#allocation9 + $0x2b0] sm:$0xff] }
 0x230   : >> { %7113 = vmatprep.subr.bf16.mxu0 %v7112_v5  ;;  %v8933_v39 = vsel %vm9713_vm6, %v2709_v16, %v2710_v28  ;;  %v8969_v16 = vld [vmem:[%s8835_s7 + $0x68] sm:$0xff]  ;;  %vm9729_vm6 = vcmp.lt.s32.totalorder %v8067_v2, 7 }
 0x232   : >> { %6987 = vmatpush3.bf16.msra.mxu1 %v6984_v13  ;;  %v2711_v13 = vrot.slane %v8905_v48, 7 }
 0x233   : >> { %7115 = vmatpush3.bf16.msra.mxu0 %v7112_v5  ;;  %6989 = vmatprep.subr.bf16.mxu1 %v6988_v60  ;;  %v7128_v5 = vpack.c.bf16 %v3872_v12, %v3871_v41  ;;  %v7136_v41 = vpack.c.bf16 %v3876_v47, %v3875_v11  ;;  %v8982_v12 = vld [vmem:[%s8835_s7 + $0x70] sm:$0xff]  ;;  %v2976_v11 = vld [vmem:[#allocation9 + $0xf8] sm:$0xff] }
 0x234   : >> { %7117 = vmatprep.subr.bf16.mxu0 %v7116_v14  ;;  %v8945_v7 = vsel %vm9724_vm7, %v2710_v28, %v2711_v13  ;;  %v8958_v24 = vsel %vm9727_vm11, %v2711_v13, %v2712_v3  ;;  %v2715_v28 = vrot.slane %v8949_v38, 7  ;;  %v2974_v13 = vld [vmem:[#allocation9 + $0xe8] sm:$0xff]  ;;  %v3877_v3 = vld [vmem:[#allocation9 + $0x2e0] sm:$0xff]  ;;  %vm9732_vm11 = vmmov %vm9724_vm7 }
 0x235   : >> { %6197 = vmatmul.mubr.f32.vlgmr.msra.gmra.mrb[0].mxu1 %v2734_v23  ;;  %v7004_v23 = vpack.c.bf16 %v2970_v15, %v2969_v6  ;;  %v8994_v6 = vsel %vm9724_vm7, %v2713_v20, %v2714_v53  ;;  %v2716_v15 = vrot.slane %v8969_v16, 7  ;;  %v9006_v20 = vrot.slane %v8982_v12, 7 }
 0x236   : >> { %6421 = vmatmul.mubr.f32.vlgmr.msra.gmra.mrb[0].mxu0 %v8861_v27  ;;  %6991 = vmatpush3.bf16.msra.mxu1 %v6988_v60  ;;  %v3873_v60 = vld [vmem:[#allocation9 + $0x2c0] sm:$0xff] }
 0x237   : >> { %7119 = vmatpush3.bf16.msra.mxu0 %v7116_v14  ;;  %6199 = vmatprep.mubr.msk.f32.mxu1 %vm8116_vm1, %v2733_v22  ;;  %v3874_v14 = vld [vmem:[#allocation9 + $0x2c8] sm:$0xff]  ;;  %v2971_v22 = vld [vmem:[#allocation9 + $0xd0] sm:$0xff]  ;;  %9733 = vst [vmem:[#allocation56_spill] sm:$0xff] %v9006_v20  ;;  %v9012_v47 = vsel %vm9734_vm15, %v2715_v28, %v2716_v15 }
 0x238   : >> { %6423 = vmatprep.mubr.f32.mxu0 %v8867_v54  ;;  %6993 = vmatprep.subr.bf16.mxu1 %v6992_v59  ;;  %v7132_v51 = vpack.c.bf16 %v3874_v14, %v3873_v60  ;;  %v3878_v60 = vld [vmem:[#allocation9 + $0x2e8] sm:$0xff]  ;;  %v3226_v14 = vld [vmem:[#allocation9 + $0x138] sm:$0xff] }
 0x239   : >> { %6200 = vmatmul.mubr.f32.gmra.mrb[2].mxu1 %v8888_v35  ;;  %7121 = vmatprep.subr.bf16.mxu0 %v7120_v18 }
 0x23a   : >> { %6424 = vmatmul.mubr.f32.gmra.mrb[2].mxu0 %v8873_v17  ;;  %6995 = vmatpush3.bf16.msra.mxu1 %v6992_v59  ;;  %v2972_v59 = vld [vmem:[#allocation9 + $0xd8] sm:$0xff] }
 0x23b   : >> { %7123 = vmatpush3.bf16.msra.mxu0 %v7120_v18  ;;  %6202 = vmatprep.mubr.msk.f32.mxu1 %vm8120_vm2, %v8900_v29  ;;  %v8953_v18 = vld [vmem:[%s8835_s7 + $0x90] sm:$0xff]  ;;  %v7008_v25 = vpack.c.bf16 %v2972_v59, %v2971_v22  ;;  %v9003_v22 = vsel %vm9732_vm11, %v2714_v53, %v2715_v28  ;;  %v7140_v59 = vpack.c.bf16 %v3878_v60, %v3877_v3  ;;  %v9025_v28 = vld [vmem:[%s8835_s7 + $0x80] sm:$0xff]  ;;  %v3818_v60 = vrot.slane %v8861_v27, 1  ;;  %v3220_v29 = vld [vmem:[#allocation9 + $0x108] sm:$0xff] }
 0x23c   : >> { %6426 = vmatprep.mubr.f32.mxu0 %v8882_v36  ;;  %6997 = vmatprep.subr.bf16.mxu1 %v6996_v21  ;;  %9726 = vst [vmem:[#allocation54_spill] sm:$0xff] %v8953_v18  ;;  %v3879_v53 = vld [vmem:[#allocation9 + $0x2f0] sm:$0xff]  ;;  %vm9738_vm11 = vmmov %vm9724_vm7 }
 0x23d   : >> { %6203 = vmatmul.mubr.f32.gmra.mrb[4].mxu1 %v8911_v52  ;;  %7125 = vmatprep.subr.bf16.mxu0 %v7124_v26 }
 0x23e   : >> { %6427 = vmatmul.mubr.f32.gmra.mrb[4].mxu0 %v8894_v42  ;;  %6999 = vmatpush3.bf16.msra.mxu1 %v6996_v21  ;;  %v9559_v21 = vrot.slane %v8953_v18, 1  ;;  %v4112_v18 = vld [vmem:[#allocation9 + $0x318] sm:$0xff] }
 0x23f   : >> { %7127 = vmatpush3.bf16.msra.mxu0 %v7124_v26  ;;  %6205 = vmatprep.mubr.msk.f32.mxu1 %vm8126_vm3, %v8923_v55  ;;  %v8972_v26 = vrot.slane %v8962_v34, 1 }
 0x240   : >> { %6429 = vmatprep.mubr.f32.mxu0 %v8905_v48  ;;  %7001 = vmatprep.subr.bf16.mxu1 %v7000_v37 }
 0x241   : >> { %6206 = vmatmul.mubr.f32.gmra.mrb[6].mxu1 %v8933_v39  ;;  %7129 = vmatprep.subr.bf16.mxu0 %v7128_v5 }
 0x242   : >> { %6430 = vmatmul.mubr.f32.gmra.mrb[6].mxu0 %v8918_v32  ;;  %7003 = vmatpush3.bf16.msra.mxu1 %v7000_v37  ;;  %v2973_v37 = vld [vmem:[#allocation9 + $0xe0] sm:$0xff] }
 0x243   : >> { %7131 = vmatpush3.bf16.msra.mxu0 %v7128_v5  ;;  %6208 = vmatprep.mubr.msk.f32.mxu1 %vm8130_vm4, %v8945_v7  ;;  %v8989_v5 = vsel %vm9729_vm6, %v8972_v26, %v9559_v21  ;;  %v3880_v21 = vld [vmem:[#allocation9 + $0x2f8] sm:$0xff] }
 0x244   : >> { %6432 = vmatprep.mubr.f32.mxu0 %v8928_v9  ;;  %7005 = vmatprep.subr.bf16.mxu1 %v7004_v23  ;;  %9730 = vst [vmem:[#allocation55_spill] sm:$0xff] %v8989_v5  ;;  %v7144_v3 = vpack.c.bf16 %v3880_v21, %v3879_v53  ;;  %v3219_v5 = vld [vmem:[#allocation9 + $0x100] sm:$0xff]  ;;  %v9039_v21 = vrot.slane %v8867_v54, 1 }
 0x245   : >> { %6209 = vmatmul.mubr.f32.gmra.mrb[8].mxu1 %v8958_v24  ;;  %7133 = vmatprep.subr.bf16.mxu0 %v7132_v51  ;;  %v9741_v53 = vld [vmem:[#allocation18_spill] sm:$0xff] }
 0x246   : >> { %6433 = vmatmul.mubr.f32.gmra.mrb[8].mxu0 %v8940_v30  ;;  %7007 = vmatpush3.bf16.msra.mxu1 %v7004_v23  ;;  %v7012_v23 = vpack.c.bf16 %v2974_v13, %v2973_v37  ;;  %v9735_v37 = vld [vmem:[#allocation17_spill] sm:$0xff]  ;;  %v9021_v13 = vsel %vm9724_vm7, %v2716_v15, %v9006_v20  ;;  %v9036_v15 = vsel %vm9738_vm11, %v9006_v20, %v8848_v31  ;;  %vm9743_vm7 = vcmp.lt.s32.totalorder %v8067_v2, 7  ;;  %v4113_v31 = vld [vmem:[#allocation9 + $0x320] sm:$0xff] }
 0x247   : >> { %7135 = vmatpush3.bf16.msra.mxu0 %v7132_v51  ;;  %6211 = vmatprep.mubr.msk.f32.mxu1 %vm8134_vm5, %v8977_v43  ;;  %v2975_v51 = vld [vmem:[#allocation9 + $0xf0] sm:$0xff]  ;;  %vm9736_vm6 = vnez %v9735_v37  ;;  %9737 = vst [vmem:[#allocation57_spill] sm:$0xff] %v9021_v13  ;;  %9739 = vst [vmem:[#allocation58_spill] sm:$0xff] %v9036_v15  ;;  %vm9742_vm15 = vnez %v9741_v53  ;;  %v3222_v37 = vld [vmem:[#allocation9 + $0x118] sm:$0xff] }
 0x248   : >> { %6435 = vmatprep.mubr.f32.mxu0 %v8949_v38  ;;  %7009 = vmatprep.subr.bf16.mxu1 %v7008_v25  ;;  %9740 = vst [vmem:[#allocation59_spill] sm:$0xff] %v9039_v21  ;;  %v4111_v53 = vld [vmem:[#allocation9 + $0x310] sm:$0xff]  ;;  %vm9744_vm11 = vmmov %vm9743_vm7 }
 0x249   : >> { %6212 = vmatmul.mubr.f32.gmra.mrb[10].mxu1 %v8994_v6  ;;  %7137 = vmatprep.subr.bf16.mxu0 %v7136_v41 }
 0x24a   : >> { %6436 = vmatmul.mubr.f32.gmra.mrb[10].mxu0 %v8969_v16  ;;  %7011 = vmatpush3.bf16.msra.mxu1 %v7008_v25  ;;  %v7016_v25 = vpack.c.bf16 %v2976_v11, %v2975_v51  ;;  %v4109_v51 = vld [vmem:[#allocation9 + $0x300] sm:$0xff]  ;;  %v4110_v11 = vld [vmem:[#allocation9 + $0x308] sm:$0xff] }
 0x24b   : >> { %7139 = vmatpush3.bf16.msra.mxu0 %v7136_v41  ;;  %6214 = vmatprep.mubr.msk.f32.mxu1 %vm9736_vm6, %v9003_v22  ;;  %v9028_v41 = vrot.slane %v8845_v8, 1  ;;  %v7148_v35 = vpack.c.bf16 %v4110_v11, %v4109_v51  ;;  %v3822_v11 = vrot.slane %v8894_v42, 1 }
 0x24c   : >> { %6438 = vmatprep.mubr.f32.mxu0 %v8982_v12  ;;  %7013 = vmatprep.subr.bf16.mxu1 %v7012_v23 }
 0x24d   : >> { %6215 = vmatmul.mubr.f32.gmra.mrb[12].mxu1 %v9012_v47  ;;  %7141 = vmatprep.subr.bf16.mxu0 %v7140_v59  ;;  %v9049_v20 = vsel %vm9743_vm7, %v9028_v41, %v3818_v60 }
 0x24e   : >> { %6439 = vmatmul.mubr.f32.gmra.mrb[12].mxu0 %v8841_v10  ;;  %7015 = vmatpush3.bf16.msra.mxu1 %v7012_v23  ;;  %v7020_v23 = vpack.c.bf16 %v3220_v29, %v3219_v5  ;;  %v9057_v29 = vsel %vm9744_vm11, %v3818_v60, %v9039_v21  ;;  %v3821_v5 = vrot.slane %v8882_v36, 1  ;;  %v3224_v60 = vld [vmem:[#allocation9 + $0x128] sm:$0xff]  ;;  %vm9745_vm11 = vmmov %vm9743_vm7 }
 0x24f   : >> { %7143 = vmatpush3.bf16.msra.mxu0 %v7140_v59  ;;  %6217 = vmatprep.mubr.msk.f32.mxu1 %vm9742_vm15, %v9021_v13  ;;  %v3221_v59 = vld [vmem:[#allocation9 + $0x110] sm:$0xff]  ;;  %v4116_v13 = vld [vmem:[#allocation9 + $0x338] sm:$0xff]  ;;  %vm9750_vm15 = vmmov %vm9743_vm7 }
 0x250   : >> { %6441 = vmatprep.mubr.f32.mxu0 %v9025_v28  ;;  %7017 = vmatprep.subr.bf16.mxu1 %v7016_v25  ;;  %v7024_v51 = vpack.c.bf16 %v3222_v37, %v3221_v59  ;;  %v4114_v37 = vld [vmem:[#allocation9 + $0x328] sm:$0xff]  ;;  %v9074_v59 = vsel %vm9745_vm11, %v3820_v40, %v3821_v5  ;;  %vm9746_vm11 = vmmov %vm9743_vm7 }
 0x251   : >> { %6218 = vmatmul.mubr.f32.gmra.mrb[14].mxu1 %v9036_v15  ;;  %7145 = vmatprep.subr.bf16.mxu0 %v7144_v3  ;;  %v3223_v15 = vld [vmem:[#allocation9 + $0x120] sm:$0xff] }
 0x252   : >> { %6442 = vmatmul.mubr.f32.gmra.mrb[14].mxu0 %v8962_v34  ;;  %7019 = vmatpush3.bf16.msra.mxu1 %v7016_v25  ;;  %v9065_v25 = vsel %vm9743_vm7, %v9039_v21, %v3820_v40  ;;  %v3225_v21 = vld [vmem:[#allocation9 + $0x130] sm:$0xff] }
 0x253   : >> { %7147 = vmatpush3.bf16.msra.mxu0 %v7144_v3  ;;  %6252 = vmatprep.mubr.f32.mxu1 %v8838_v33  ;;  %v7152_v3 = vpack.c.bf16 %v4112_v18, %v4111_v53  ;;  %v3823_v18 = vrot.slane %v8905_v48, 1  ;;  %v7028_v53 = vpack.c.bf16 %v3224_v60, %v3223_v15  ;;  %v4115_v40 = vld [vmem:[#allocation9 + $0x330] sm:$0xff]  ;;  %v7032_v15 = vpack.c.bf16 %v3226_v14, %v3225_v21  ;;  %v3227_v60 = vld [vmem:[#allocation9 + $0x140] sm:$0xff] }
 0x254   : >> { %6476 = vmatprep.mubr.f32.mxu0 %v9049_v20  ;;  %7021 = vmatprep.subr.bf16.mxu1 %v7020_v23 }
 0x255   : >> { %6253 = vmatmul.mubr.f32.vlgmr.msra.gmra.mrb[0].mxu1 %v8857_v19  ;;  %7149 = vmatprep.subr.bf16.mxu0 %v7148_v35 }
 0x256   : >> { %6477 = vmatmul.mubr.msk.f32.vlgmr.msra.gmra.mrb[0].mxu0 %vm8148_vm8, %v9057_v29  ;;  %7023 = vmatpush3.bf16.msra.mxu1 %v7020_v23  ;;  %v9081_v23 = vsel %vm9743_vm7, %v3821_v5, %v3822_v11 }
 0x257   : >> { %7151 = vmatpush3.bf16.msra.mxu0 %v7148_v35  ;;  %6255 = vmatprep.mubr.f32.mxu1 %v8845_v8  ;;  %v7156_v35 = vpack.c.bf16 %v4114_v37, %v4113_v31  ;;  %v3824_v8 = vrot.slane %v8918_v32, 1  ;;  %v3825_v31 = vrot.slane %v8928_v9, 1  ;;  %v3228_v37 = vld [vmem:[#allocation9 + $0x148] sm:$0xff] }
 0x258   : >> { %6479 = vmatprep.mubr.f32.mxu0 %v9065_v25  ;;  %7025 = vmatprep.subr.bf16.mxu1 %v7024_v51  ;;  %v7036_v21 = vpack.c.bf16 %v3228_v37, %v3227_v60  ;;  %v9132_v37 = vrot.slane %v8841_v10, 1 }
 0x259   : >> { %6256 = vmatmul.mubr.f32.gmra.mrb[2].mxu1 %v8861_v27  ;;  %7153 = vmatprep.subr.bf16.mxu0 %v7152_v3  ;;  %v9090_v27 = vsel %vm9746_vm11, %v3822_v11, %v3823_v18  ;;  %v9097_v5 = vsel %vm9743_vm7, %v3823_v18, %v3824_v8  ;;  %v4117_v11 = vld [vmem:[#allocation9 + $0x340] sm:$0xff]  ;;  %vm9748_vm11 = vmmov %vm9743_vm7 }
 0x25a   : >> { %6480 = vmatmul.mubr.msk.f32.gmra.mrb[2].mxu0 %vm8152_vm9, %v9074_v59  ;;  %7027 = vmatpush3.bf16.msra.mxu1 %v7024_v51  ;;  %v7160_v51 = vpack.c.bf16 %v4116_v13, %v4115_v40  ;;  %v9106_v14 = vsel %vm9748_vm11, %v3824_v8, %v3825_v31  ;;  %v3827_v13 = vrot.slane %v8949_v38, 1  ;;  %v3229_v40 = vld [vmem:[#allocation9 + $0x150] sm:$0xff]  ;;  %vm9749_vm11 = vnez %v9624_v61 }
 0x25b   : >> { %7155 = vmatpush3.bf16.msra.mxu0 %v7152_v3  ;;  %6258 = vmatprep.mubr.f32.mxu1 %v8867_v54  ;;  %v3826_v3 = vrot.slane %v8940_v30, 1  ;;  %v4118_v54 = vld [vmem:[#allocation9 + $0x348] sm:$0xff]  ;;  %v4119_v8 = vld [vmem:[#allocation9 + $0x350] sm:$0xff] }
 0x25c   : >> { %6482 = vmatprep.mubr.f32.mxu0 %v9081_v23  ;;  %7029 = vmatprep.subr.bf16.mxu1 %v7028_v53 }
 0x25d   : >> { %6259 = vmatmul.mubr.f32.gmra.mrb[4].mxu1 %v8873_v17  ;;  %7157 = vmatprep.subr.bf16.mxu0 %v7156_v35  ;;  %v9113_v18 = vsel %vm9743_vm7, %v3825_v31, %v3826_v3  ;;  %v4120_v17 = vld [vmem:[#allocation9 + $0x358] sm:$0xff]  ;;  %v9122_v60 = vsel %vm9750_vm15, %v3826_v3, %v3827_v13  ;;  %v3232_v3 = vld [vmem:[#allocation9 + $0x168] sm:$0xff]  ;;  %vm9751_vm15 = vmmov %vm9743_vm7 }
 0x25e   : >> { %6483 = vmatmul.mubr.msk.f32.gmra.mrb[4].mxu0 %vm9747_vm10, %v9090_v27  ;;  %7031 = vmatpush3.bf16.msra.mxu1 %v7028_v53  ;;  %v7164_v53 = vpack.c.bf16 %v4118_v54, %v4117_v11  ;;  %v3829_v54 = vrot.slane %v8982_v12, 1  ;;  %v3231_v11 = vld [vmem:[#allocation9 + $0x160] sm:$0xff] }
 0x25f   : >> { %7159 = vmatpush3.bf16.msra.mxu0 %v7156_v35  ;;  %6261 = vmatprep.mubr.f32.mxu1 %v8882_v36  ;;  %v3828_v35 = vrot.slane %v8969_v16, 1  ;;  %v3230_v36 = vld [vmem:[#allocation9 + $0x158] sm:$0xff] }
 0x260   : >> { %6485 = vmatprep.mubr.f32.mxu0 %v9097_v5  ;;  %7033 = vmatprep.subr.bf16.mxu1 %v7032_v15  ;;  %v7040_v31 = vpack.c.bf16 %v3230_v36, %v3229_v40  ;;  %v4122_v36 = vld [vmem:[#allocation9 + $0x368] sm:$0xff]  ;;  %v7044_v40 = vpack.c.bf16 %v3232_v3, %v3231_v11  ;;  %v9583_v11 = vrot.slane %v8838_v33, 1 }
 0x261   : >> { %6262 = vmatmul.mubr.f32.gmra.mrb[6].mxu1 %v8894_v42  ;;  %7161 = vmatprep.subr.bf16.mxu0 %v7160_v51  ;;  %v9154_v42 = vld [vmem:[%s8835_s7 + $0x98] sm:$0xff] }
 0x262   : >> { %6486 = vmatmul.mubr.msk.f32.gmra.mrb[6].mxu0 %vm9749_vm11, %v9106_v14  ;;  %7035 = vmatpush3.bf16.msra.mxu1 %v7032_v15  ;;  %v9129_v15 = vsel %vm9743_vm7, %v3827_v13, %v3828_v35  ;;  %v9140_v13 = vsel %vm9751_vm15, %v3828_v35, %v3829_v54  ;;  %v4123_v35 = vld [vmem:[#allocation9 + $0x370] sm:$0xff]  ;;  %vm9752_vm15 = vmmov %vm9743_vm7 }
 0x263   : >> { %7163 = vmatpush3.bf16.msra.mxu0 %v7160_v51  ;;  %6264 = vmatprep.mubr.f32.mxu1 %v8905_v48  ;;  %v7168_v51 = vpack.c.bf16 %v4120_v17, %v4119_v8  ;;  %v4121_v48 = vld [vmem:[#allocation9 + $0x360] sm:$0xff]  ;;  %v3831_v17 = vrot.slane %v9025_v28, 1  ;;  %v3233_v8 = vld [vmem:[#allocation9 + $0x170] sm:$0xff] }
 0x264   : >> { %6488 = vmatprep.mubr.f32.mxu0 %v9113_v18  ;;  %7037 = vmatprep.subr.bf16.mxu1 %v7036_v21 }
 0x265   : >> { %6265 = vmatmul.mubr.f32.gmra.mrb[8].mxu1 %v8918_v32  ;;  %7165 = vmatprep.subr.bf16.mxu0 %v7164_v53  ;;  %v4124_v32 = vld [vmem:[#allocation9 + $0x378] sm:$0xff] }
 0x266   : >> { %6489 = vmatmul.mubr.msk.f32.gmra.mrb[8].mxu0 %vm8166_vm12, %v9122_v60  ;;  %7039 = vmatpush3.bf16.msra.mxu1 %v7036_v21  ;;  %v9148_v21 = vsel %vm9743_vm7, %v3829_v54, %v9132_v37  ;;  %v9160_v54 = vsel %vm9752_vm15, %v9132_v37, %v3831_v17  ;;  %v7176_v3 = vpack.c.bf16 %v4124_v32, %v4123_v35  ;;  %vm9754_vm15 = vmmov %vm9743_vm7  ;;  %v3466_v35 = vld [vmem:[#allocation9 + $0x198] sm:$0xff] }
 0x267   : >> { %7167 = vmatpush3.bf16.msra.mxu0 %v7164_v53  ;;  %6267 = vmatprep.mubr.f32.mxu1 %v8928_v9  ;;  %v7172_v53 = vpack.c.bf16 %v4122_v36, %v4121_v48  ;;  %v3234_v9 = vld [vmem:[#allocation9 + $0x178] sm:$0xff]  ;;  %v9582_v36 = vrot.slane %v9154_v42, 7 }
 0x268   : >> { %6491 = vmatprep.mubr.f32.mxu0 %v9129_v15  ;;  %7041 = vmatprep.subr.bf16.mxu1 %v7040_v31  ;;  %v7048_v48 = vpack.c.bf16 %v3234_v9, %v3233_v8  ;;  %v4286_v9 = vld [vmem:[#allocation9 + $0x380] sm:$0xff] }
 0x269   : >> { %6268 = vmatmul.mubr.f32.gmra.mrb[10].mxu1 %v8940_v30  ;;  %7169 = vmatprep.subr.bf16.mxu0 %v7168_v51  ;;  %v3464_v30 = vld [vmem:[#allocation9 + $0x188] sm:$0xff] }
 0x26a   : >> { %6492 = vmatmul.mubr.msk.f32.gmra.mrb[10].mxu0 %vm8170_vm13, %v9140_v13  ;;  %7043 = vmatpush3.bf16.msra.mxu1 %v7040_v31  ;;  %v3139_v31 = vrot.slane %v8857_v19, 1  ;;  %v4287_v19 = vld [vmem:[#allocation9 + $0x388] sm:$0xff] }
 0x26b   : >> { %7171 = vmatpush3.bf16.msra.mxu0 %v7168_v51  ;;  %6270 = vmatprep.mubr.f32.mxu1 %v8949_v38  ;;  %v9169_v51 = vsel %vm9743_vm7, %v3831_v17, %v8972_v26  ;;  %v3463_v38 = vld [vmem:[#allocation9 + $0x180] sm:$0xff]  ;;  %v3848_v17 = vsel %vm9754_vm15, %v8972_v26, %v9028_v41  ;;  %v3465_v26 = vld [vmem:[#allocation9 + $0x190] sm:$0xff]  ;;  %vm9756_vm15 = vnez %v9632_v4 }
 0x26c   : >> { %6494 = vmatprep.mubr.f32.mxu0 %v9148_v21  ;;  %7045 = vmatprep.subr.bf16.mxu1 %v7044_v40  ;;  %v3169_v32 = vsel %vm9743_vm7, %v9583_v11, %v3139_v31  ;;  %v7052_v8 = vpack.c.bf16 %v3464_v30, %v3463_v38  ;;  %v3168_v30 = vsel %vm9743_vm7, %v3139_v31, %v9028_v41  ;;  %v4288_v38 = vld [vmem:[#allocation9 + $0x390] sm:$0xff]  ;;  %v4290_v41 = vld [vmem:[#allocation9 + $0x3a0] sm:$0xff]  ;;  %v4291_v31 = vld [vmem:[#allocation9 + $0x3a8] sm:$0xff] }
 0x26d   : >> { %6271 = vmatmul.mubr.f32.gmra.mrb[12].mxu1 %v8969_v16  ;;  %7173 = vmatprep.subr.bf16.mxu0 %v7172_v53  ;;  %v9795_v11 = vld [vmem:[#allocation15_spill] sm:$0xff] }
 0x26e   : >> { %6495 = vmatmul.mubr.msk.f32.gmra.mrb[12].mxu0 %vm9753_vm14, %v9160_v54  ;;  %7047 = vmatpush3.bf16.msra.mxu1 %v7044_v40  ;;  %vm9755_vm14 = vcmp.lt.s32.totalorder %v8067_v2, 1 }
 0x26f   : >> { %7175 = vmatpush3.bf16.msra.mxu0 %v7172_v53  ;;  %6273 = vmatprep.mubr.f32.mxu1 %v8982_v12  ;;  %v4092_v40 = vsel %vm9755_vm14, %v9582_v36, %v8879_v1  ;;  %v7180_v53 = vpack.c.bf16 %v4287_v19, %v4286_v9  ;;  %v7056_v1 = vpack.c.bf16 %v3466_v35, %v3465_v26  ;;  %v3467_v19 = vld [vmem:[#allocation9 + $0x1a0] sm:$0xff]  ;;  %v3472_v35 = vld [vmem:[#allocation9 + $0x1c8] sm:$0xff]  ;;  %v4300_v36 = vld [vmem:[#allocation9 + $0x3f0] sm:$0xff] }
 0x270   : >> { %6497 = vmatprep.mubr.f32.mxu0 %v9169_v51  ;;  %7049 = vmatprep.subr.bf16.mxu1 %v7048_v48  ;;  %v3471_v26 = vld [vmem:[#allocation9 + $0x1c0] sm:$0xff]  ;;  %vm9762_vm7 = vmmov %vm9755_vm14 }
 0x271   : >> { %6274 = vmatmul.mubr.f32.gmra.mrb[14].mxu1 %v8841_v10  ;;  %7177 = vmatprep.subr.bf16.mxu0 %v7176_v3  ;;  %v4289_v10 = vld [vmem:[#allocation9 + $0x398] sm:$0xff] }
 0x272   : >> { %6498 = vmatmul.mubr.msk.f32.gmra.mrb[14].mxu0 %vm9756_vm15, %v3848_v17  ;;  %7051 = vmatpush3.bf16.msra.mxu1 %v7048_v48  ;;  %v7184_v9 = vpack.c.bf16 %v4289_v10, %v4288_v38  ;;  %v3468_v48 = vld [vmem:[#allocation9 + $0x1a8] sm:$0xff]  ;;  %v7188_v17 = vpack.c.bf16 %v4291_v31, %v4290_v41  ;;  %v7068_v10 = vpack.c.bf16 %v3472_v35, %v3471_v26  ;;  %v4297_v41 = vld [vmem:[#allocation9 + $0x3d8] sm:$0xff]  ;;  %v2658_v26 = vld [vmem:[%s9380_s6 + $0x50] sm:$0xff] }
 0x273   : >> { %7179 = vmatpush3.bf16.msra.mxu0 %v7176_v3  ;;  %6308 = vmatprep.mubr.f32.mxu1 %v3169_v32  ;;  %v7060_v3 = vpack.c.bf16 %v3468_v48, %v3467_v19  ;;  %v3469_v32 = vld [vmem:[#allocation9 + $0x1b0] sm:$0xff]  ;;  %v4295_v38 = vld [vmem:[#allocation9 + $0x3c8] sm:$0xff]  ;;  %v3474_v19 = vld [vmem:[#allocation9 + $0x1d8] sm:$0xff] }
 0x274   : >> { %6532 = vmatprep.mubr.msk.f32.mxu0 %vm8112_vm0, %v4092_v40  ;;  %7053 = vmatprep.subr.bf16.mxu1 %v7052_v8  ;;  %v3470_v40 = vld [vmem:[#allocation9 + $0x1b8] sm:$0xff]  ;;  %v4296_v48 = vld [vmem:[#allocation9 + $0x3d0] sm:$0xff] }
 0x275   : >> { %6309 = vmatmul.mubr.msk.f32.vlgmr.msra.gmra.mrb[0].mxu1 %vm8148_vm8, %v3168_v30  ;;  %7181 = vmatprep.subr.bf16.mxu0 %v7180_v53  ;;  %v4294_v30 = vld [vmem:[#allocation9 + $0x3c0] sm:$0xff] }
 0x276   : >> { %6533 = vmatmul.mubr.f32.vlgmr.msra.gmra.mrb[0].mxu0 %v8911_v52  ;;  %7055 = vmatpush3.bf16.msra.mxu1 %v7052_v8  ;;  %v4292_v8 = vld [vmem:[#allocation9 + $0x3b0] sm:$0xff] }
 0x277   : >> { %7183 = vmatpush3.bf16.msra.mxu0 %v7180_v53  ;;  %6311 = vmatprep.mubr.f32.mxu1 %v9049_v20  ;;  %v4293_v53 = vld [vmem:[#allocation9 + $0x3b8] sm:$0xff]  ;;  %v7064_v20 = vpack.c.bf16 %v3470_v40, %v3469_v32  ;;  %v3475_v32 = vld [vmem:[#allocation9 + $0x1e0] sm:$0xff]  ;;  %v3476_v40 = vld [vmem:[#allocation9 + $0x1e8] sm:$0xff] }
 0x278   : >> { %6535 = vmatprep.mubr.msk.f32.mxu0 %vm8116_vm1, %v8923_v55  ;;  %7057 = vmatprep.subr.bf16.mxu1 %v7056_v1  ;;  %v7076_v35 = vpack.c.bf16 %v3476_v40, %v3475_v32  ;;  %v4301_v32 = vld [vmem:[#allocation9 + $0x3f8] sm:$0xff] }
 0x279   : >> { %6312 = vmatmul.mubr.msk.f32.gmra.mrb[2].mxu1 %vm8152_vm9, %v9057_v29  ;;  %7185 = vmatprep.subr.bf16.mxu0 %v7184_v9  ;;  %v7192_v29 = vpack.c.bf16 %v4293_v53, %v4292_v8  ;;  %v4298_v8 = vld [vmem:[#allocation9 + $0x3e0] sm:$0xff]  ;;  %v4299_v53 = vld [vmem:[#allocation9 + $0x3e8] sm:$0xff] }
 0x27a   : >> { %6536 = vmatmul.mubr.f32.gmra.mrb[2].mxu0 %v8933_v39  ;;  %7059 = vmatpush3.bf16.msra.mxu1 %v7056_v1  ;;  %v7196_v1 = vpack.c.bf16 %v4295_v38, %v4294_v30  ;;  %v9759_v30 = vld [vmem:[#allocation41_spill] sm:$0xff] }
 0x27b   : >> { %7187 = vmatpush3.bf16.msra.mxu0 %v7184_v9  ;;  %6314 = vmatprep.mubr.f32.mxu1 %v9065_v25  ;;  %v3473_v9 = vld [vmem:[#allocation9 + $0x1d0] sm:$0xff] }
 0x27c   : >> { %6538 = vmatprep.mubr.msk.f32.mxu0 %vm8120_vm2, %v8945_v7  ;;  %7061 = vmatprep.subr.bf16.mxu1 %v7060_v3  ;;  %v7072_v31 = vpack.c.bf16 %v3474_v19, %v3473_v9  ;;  %v3477_v19 = vld [vmem:[#allocation9 + $0x1f0] sm:$0xff] }
 0x27d   : >> { %6315 = vmatmul.mubr.msk.f32.gmra.mrb[4].mxu1 %vm9747_vm10, %v9074_v59  ;;  %7189 = vmatprep.subr.bf16.mxu0 %v7188_v17 }
 0x27e   : >> { %6539 = vmatmul.mubr.f32.gmra.mrb[4].mxu0 %v8958_v24  ;;  %7063 = vmatpush3.bf16.msra.mxu1 %v7060_v3  ;;  %v7200_v3 = vpack.c.bf16 %v4297_v41, %v4296_v48  ;;  %v3478_v48 = vld [vmem:[#allocation9 + $0x1f8] sm:$0xff]  ;;  %v9761_v41 = vld [vmem:[#allocation58_spill] sm:$0xff] }
 0x27f   : >> { %7191 = vmatpush3.bf16.msra.mxu0 %v7188_v17  ;;  %6317 = vmatprep.mubr.f32.mxu1 %v9081_v23  ;;  %v9233_v17 = vrot.slane %v9025_v28, 7 }
 0x280   : >> { %6541 = vmatprep.mubr.msk.f32.mxu0 %vm8126_vm3, %v8977_v43  ;;  %7065 = vmatprep.subr.bf16.mxu1 %v7064_v20 }
 0x281   : >> { %6318 = vmatmul.mubr.msk.f32.gmra.mrb[6].mxu1 %vm9749_vm11, %v9090_v27  ;;  %7193 = vmatprep.subr.bf16.mxu0 %v7192_v29  ;;  %v4080_v38 = vsel %vm9755_vm14, %v9759_v30, %v9233_v17  ;;  %vm9764_vm14 = vnez %v9630_v0  ;;  %vm9765_vm11 = vmmov %vm9762_vm7  ;;  %v4512_v30 = vld [vmem:[#allocation9 + $0x408] sm:$0xff] }
 0x282   : >> { %6542 = vmatmul.mubr.f32.gmra.mrb[6].mxu0 %v8994_v6  ;;  %7067 = vmatpush3.bf16.msra.mxu1 %v7064_v20  ;;  %v4074_v20 = vrot.slane %v8962_v34, 7  ;;  %vm9769_vm10 = vmmov %vm9765_vm11 }
 0x283   : >> { %7195 = vmatpush3.bf16.msra.mxu0 %v7192_v29  ;;  %6320 = vmatprep.mubr.f32.mxu1 %v9097_v5  ;;  %v9757_v29 = vld [vmem:[#allocation57_spill] sm:$0xff] }
 0x284   : >> { %6544 = vmatprep.mubr.msk.f32.mxu0 %vm8130_vm4, %v9003_v22  ;;  %7069 = vmatprep.subr.bf16.mxu1 %v7068_v10  ;;  %v9254_v40 = vsel %vm9762_vm7, %v9233_v17, %v4074_v20  ;;  %vm9767_vm7 = vcmp.lt.s32.totalorder %v8067_v2, 7 }
 0x285   : >> { %6321 = vmatmul.mubr.msk.f32.gmra.mrb[8].mxu1 %vm8166_vm12, %v9106_v14  ;;  %7197 = vmatprep.subr.bf16.mxu0 %v7196_v1 }
 0x286   : >> { %6545 = vmatmul.mubr.f32.gmra.mrb[8].mxu0 %v9012_v47  ;;  %7071 = vmatpush3.bf16.msra.mxu1 %v7068_v10  ;;  %v7204_v10 = vpack.c.bf16 %v4299_v53, %v4298_v8  ;;  %v7080_v8 = vpack.c.bf16 %v3478_v48, %v3477_v19  ;;  %v4511_v53 = vld [vmem:[#allocation9 + $0x400] sm:$0xff]  ;;  %v9768_v19 = vrot.slane %v9154_v42, 7 }
 0x287   : >> { %7199 = vmatpush3.bf16.msra.mxu0 %v7196_v1  ;;  %6323 = vmatprep.mubr.f32.mxu1 %v9113_v18  ;;  %v9760_v1 = vld [vmem:[#allocation54_spill] sm:$0xff] }
 0x288   : >> { %6547 = vmatprep.mubr.msk.f32.mxu0 %vm8134_vm5, %v9757_v29  ;;  %7073 = vmatprep.subr.bf16.mxu1 %v7072_v31  ;;  %v4075_v9 = vrot.slane %v9760_v1, 7 }
 0x289   : >> { %6324 = vmatmul.mubr.msk.f32.gmra.mrb[10].mxu1 %vm8170_vm13, %v9122_v60  ;;  %7201 = vmatprep.subr.bf16.mxu0 %v7200_v3 }
 0x28a   : >> { %6548 = vmatmul.mubr.f32.gmra.mrb[10].mxu0 %v9761_v41  ;;  %7075 = vmatpush3.bf16.msra.mxu1 %v7072_v31  ;;  %v4078_v31 = vsel %vm9765_vm11, %v4074_v20, %v4075_v9  ;;  %v9766_v41 = vrot.slane %v8838_v33, 1  ;;  %v4077_v48 = vsel %vm9769_vm10, %v4075_v9, %v9768_v19  ;;  %v9774_v9 = vld [vmem:[#allocation43_spill] sm:$0xff]  ;;  %v4517_v19 = vld [vmem:[#allocation9 + $0x430] sm:$0xff] }
 0x28b   : >> { %7203 = vmatpush3.bf16.msra.mxu0 %v7200_v3  ;;  %6326 = vmatprep.mubr.f32.mxu1 %v9129_v15  ;;  %v7208_v3 = vpack.c.bf16 %v4301_v32, %v4300_v36  ;;  %v9770_v36 = vld [vmem:[#allocation18_spill] sm:$0xff]  ;;  %v9772_v32 = vld [vmem:[#allocation42_spill] sm:$0xff] }
 0x28c   : >> { %6550 = vmatprep.mubr.msk.f32.mxu0 %vm9736_vm6, %v4080_v38  ;;  %7077 = vmatprep.subr.bf16.mxu1 %v7076_v35  ;;  %v3170_v38 = vsel %vm9767_vm7, %v9132_v37, %v9766_v41  ;;  %vm9771_vm11 = vnez %v9770_v36  ;;  %v4513_v37 = vld [vmem:[#allocation9 + $0x410] sm:$0xff] }
 0x28d   : >> { %6327 = vmatmul.mubr.msk.f32.gmra.mrb[12].mxu1 %vm9764_vm14, %v9140_v13  ;;  %7205 = vmatprep.subr.bf16.mxu0 %v7204_v10  ;;  %vm9773_vm14 = vmmov %vm9769_vm10  ;;  %v9775_v41 = vld [vmem:[#allocation46_spill] sm:$0xff] }
 0x28e   : >> { %6551 = vmatmul.mubr.f32.gmra.mrb[12].mxu0 %v9254_v40  ;;  %7079 = vmatpush3.bf16.msra.mxu1 %v7076_v35  ;;  %v3446_v33 = vsel %vm9773_vm14, %v4074_v20, %v9772_v32  ;;  %v7212_v35 = vpack.c.bf16 %v4512_v30, %v4511_v53  ;;  %v4515_v20 = vld [vmem:[#allocation9 + $0x420] sm:$0xff]  ;;  %v4516_v53 = vld [vmem:[#allocation9 + $0x428] sm:$0xff]  ;;  %v9779_v32 = vld [vmem:[#allocation47_spill] sm:$0xff] }
 0x28f   : >> { %7207 = vmatpush3.bf16.msra.mxu0 %v7204_v10  ;;  %6329 = vmatprep.mubr.f32.mxu1 %v9148_v21  ;;  %v4514_v10 = vld [vmem:[#allocation9 + $0x418] sm:$0xff]  ;;  %v9776_v30 = vld [vmem:[#allocation44_spill] sm:$0xff]  ;;  %vm9786_vm14 = vmmov %vm9769_vm10 }
 0x290   : >> { %6553 = vmatprep.mubr.msk.f32.mxu0 %vm9771_vm11, %v4078_v31  ;;  %7081 = vmatprep.subr.bf16.mxu1 %v7080_v8  ;;  %v7216_v31 = vpack.c.bf16 %v4514_v10, %v4513_v37  ;;  %v4519_v37 = vld [vmem:[#allocation9 + $0x440] sm:$0xff]  ;;  %v9781_v10 = vld [vmem:[#allocation50_spill] sm:$0xff] }
 0x291   : >> { %6330 = vmatmul.mubr.msk.f32.gmra.mrb[14].mxu1 %vm9756_vm15, %v3170_v38  ;;  %7209 = vmatprep.subr.bf16.mxu0 %v7208_v3  ;;  %v9777_v38 = vld [vmem:[#allocation48_spill] sm:$0xff] }
 0x292   : >> { %6554 = vmatmul.mubr.f32.gmra.mrb[14].mxu0 %v4077_v48  ;;  %7083 = vmatpush3.bf16.msra.mxu1 %v7080_v8  ;;  %v9778_v8 = vld [vmem:[#allocation45_spill] sm:$0xff]  ;;  %v4518_v48 = vld [vmem:[#allocation9 + $0x438] sm:$0xff] }
 0x293   : >> { %7211 = vmatpush3.bf16.msra.mxu0 %v7208_v3  ;;  %6364 = vmatprep.mubr.msk.f32.mxu1 %vm8112_vm0, %v3446_v33  ;;  %v7220_v3 = vpack.c.bf16 %v4516_v53, %v4515_v20  ;;  %v9780_v33 = vld [vmem:[#allocation49_spill] sm:$0xff] }
 0x294   : >> { %6588 = vmatprep.mubr.f32.mxu0 %v9774_v9  ;;  %7213 = vmatprep.subr.bf16.mxu0 %v7212_v35  ;;  %v9782_v9 = vld [vmem:[#allocation51_spill] sm:$0xff]  ;;  %v9784_v20 = vld [vmem:[#allocation53_spill] sm:$0xff] }
 0x295   : >> { %6365 = vmatmul.mubr.f32.vlgmr.msra.gmra.mrb[0].mxu1 %v9775_v41  ;;  %7404 = vmatprep.subr.bf16.mxu1 %v7212_v35  ;;  %v9783_v41 = vld [vmem:[#allocation52_spill] sm:$0xff]  ;;  %v4524_v53 = vld [vmem:[#allocation9 + $0x468] sm:$0xff] }
 0x296   : >> { %6589 = vmatmul.mubr.f32.vlgmr.msra.gmra.mrb[0].mxu0 %v9776_v30  ;;  %7412 = vmatpush3.bf16.msra.mxu1 %v7212_v35  ;;  %v7656_v30 = vld [vmem:[%s8835_s7 + $0x78] sm:$0xff] }
 0x297   : >> { %7215 = vmatpush3.bf16.msra.mxu0 %v7212_v35  ;;  %6367 = vmatprep.mubr.msk.f32.mxu1 %vm8116_vm1, %v9777_v38  ;;  %v7224_v35 = vpack.c.bf16 %v4518_v48, %v4517_v19  ;;  %v3428_v38 = vrot.slane %v7656_v30, 7 }
 0x298   : >> { %6591 = vmatprep.mubr.f32.mxu0 %v9778_v8  ;;  %7217 = vmatprep.subr.bf16.mxu0 %v7216_v31  ;;  %v4526_v8 = vld [vmem:[#allocation9 + $0x478] sm:$0xff] }
 0x299   : >> { %6368 = vmatmul.mubr.f32.gmra.mrb[2].mxu1 %v8911_v52  ;;  %7405 = vmatprep.subr.bf16.mxu1 %v7216_v31  ;;  %v4520_v52 = vld [vmem:[#allocation9 + $0x448] sm:$0xff] }
 0x29a   : >> { %6592 = vmatmul.mubr.f32.gmra.mrb[2].mxu0 %v9779_v32  ;;  %7413 = vmatpush3.bf16.msra.mxu1 %v7216_v31 }
 0x29b   : >> { %7219 = vmatpush3.bf16.msra.mxu0 %v7216_v31  ;;  %6370 = vmatprep.mubr.msk.f32.mxu1 %vm8120_vm2, %v8923_v55  ;;  %v7228_v55 = vpack.c.bf16 %v4520_v52, %v4519_v37  ;;  %v4522_v31 = vld [vmem:[#allocation9 + $0x458] sm:$0xff]  ;;  %v2661_v37 = vld [vmem:[%s9380_s6 + $0x68] sm:$0xff] }
 0x29c   : >> { %6594 = vmatprep.mubr.f32.mxu0 %v9780_v33  ;;  %7221 = vmatprep.subr.bf16.mxu0 %v7220_v3 }
 0x29d   : >> { %6371 = vmatmul.mubr.f32.gmra.mrb[4].mxu1 %v8933_v39  ;;  %7406 = vmatprep.subr.bf16.mxu1 %v7220_v3  ;;  %v4521_v39 = vld [vmem:[#allocation9 + $0x450] sm:$0xff] }
 0x29e   : >> { %6595 = vmatmul.mubr.f32.gmra.mrb[4].mxu0 %v9781_v10  ;;  %7414 = vmatpush3.bf16.msra.mxu1 %v7220_v3  ;;  %v2660_v10 = vld [vmem:[%s9380_s6 + $0x60] sm:$0xff] }
 0x29f   : >> { %7223 = vmatpush3.bf16.msra.mxu0 %v7220_v3  ;;  %6373 = vmatprep.mubr.msk.f32.mxu1 %vm8126_vm3, %v8945_v7  ;;  %v7232_v7 = vpack.c.bf16 %v4522_v31, %v4521_v39 }
 0x2a0   : >> { %6597 = vmatprep.mubr.f32.mxu0 %v9782_v9  ;;  %7225 = vmatprep.subr.bf16.mxu0 %v7224_v35 }
 0x2a1   : >> { %6374 = vmatmul.mubr.f32.gmra.mrb[6].mxu1 %v8958_v24  ;;  %7407 = vmatprep.subr.bf16.mxu1 %v7224_v35  ;;  %v4523_v24 = vld [vmem:[#allocation9 + $0x460] sm:$0xff] }
 0x2a2   : >> { %6598 = vmatmul.mubr.f32.gmra.mrb[6].mxu0 %v9783_v41  ;;  %7415 = vmatpush3.bf16.msra.mxu1 %v7224_v35 }
 0x2a3   : >> { %7227 = vmatpush3.bf16.msra.mxu0 %v7224_v35  ;;  %6376 = vmatprep.mubr.msk.f32.mxu1 %vm8130_vm4, %v8977_v43  ;;  %v7236_v43 = vpack.c.bf16 %v4524_v53, %v4523_v24  ;;  %v2680_v35 = vadd.f32 %v9795_v11, %v2658_v26  ;;  %v2682_v53 = vadd.f32 %v9795_v11, %v2660_v10 }
 0x2a4   : >> { %6600 = vmatprep.mubr.f32.mxu0 %v9784_v20  ;;  %7229 = vmatprep.subr.bf16.mxu0 %v7228_v55  ;;  %v2683_v20 = vadd.f32 %v9795_v11, %v2661_v37 }
 0x2a5   : >> { %6377 = vmatmul.mubr.f32.gmra.mrb[8].mxu1 %v8994_v6  ;;  %7408 = vmatprep.subr.bf16.mxu1 %v7228_v55  ;;  %v4525_v6 = vld [vmem:[#allocation9 + $0x470] sm:$0xff] }
 0x2a6   : >> { %6601 = vmatmul.mubr.f32.gmra.mrb[8].mxu0 %v8969_v16  ;;  %7416 = vmatpush3.bf16.msra.mxu1 %v7228_v55  ;;  %v9785_v16 = vld [vmem:[#allocation56_spill] sm:$0xff] }
 0x2a7   : >> { %7231 = vmatpush3.bf16.msra.mxu0 %v7228_v55  ;;  %6379 = vmatprep.mubr.msk.f32.mxu1 %vm8134_vm5, %v9003_v22  ;;  %v3433_v3 = vsel %vm9769_vm10, %v9785_v16, %v3428_v38  ;;  %v7240_v22 = vpack.c.bf16 %v4526_v8, %v4525_v6  ;;  %v2649_v16 = vld [vmem:[%s9380_s6 + $0x8] sm:$0xff] }
 0x2a8   : >> { %6603 = vmatprep.mubr.f32.mxu0 %v8982_v12  ;;  %7233 = vmatprep.subr.bf16.mxu0 %v7232_v7  ;;  %v3432_v12 = vsel %vm9786_vm14, %v3428_v38, %v9233_v17  ;;  %vm9794_vm14 = vnez %v9624_v61 }
 0x2a9   : >> { %6380 = vmatmul.mubr.f32.gmra.mrb[10].mxu1 %v9012_v47  ;;  %7409 = vmatprep.subr.bf16.mxu1 %v7232_v7  ;;  %v9787_v47 = vrot.slane %v9760_v1, 1 }
 0x2aa   : >> { %6604 = vmatmul.mubr.f32.gmra.mrb[10].mxu0 %v7656_v30  ;;  %7417 = vmatpush3.bf16.msra.mxu1 %v7232_v7  ;;  %v2663_v30 = vld [vmem:[%s9380_s6 + $0x78] sm:$0xff] }
 0x2ab   : >> { %7235 = vmatpush3.bf16.msra.mxu0 %v7232_v7  ;;  %6382 = vmatprep.mubr.msk.f32.mxu1 %vm9736_vm6, %v9757_v29  ;;  %vm9788_vm6 = vmmov %vm9767_vm7  ;;  %vm9790_vm7 = vnez %v9630_v0  ;;  %v2659_v29 = vld [vmem:[%s9380_s6 + $0x58] sm:$0xff] }
 0x2ac   : >> { %6606 = vmatprep.mubr.f32.mxu0 %v9025_v28  ;;  %7237 = vmatprep.subr.bf16.mxu0 %v7236_v43  ;;  %vm9793_vm10 = vmmov %vm9788_vm6  ;;  %v2681_v48 = vadd.f32 %v9795_v11, %v2659_v29  ;;  %v2651_v29 = vld [vmem:[%s9380_s6 + $0x18] sm:$0xff] }
 0x2ad   : >> { %6383 = vmatmul.mubr.f32.gmra.mrb[12].mxu1 %v3433_v3  ;;  %7410 = vmatprep.subr.bf16.mxu1 %v7236_v43 }
 0x2ae   : >> { %6607 = vmatmul.mubr.f32.gmra.mrb[12].mxu0 %v8962_v34  ;;  %7418 = vmatpush3.bf16.msra.mxu1 %v7236_v43  ;;  %v4478_v34 = vrot.slane %v9154_v42, 1 }
 0x2af   : >> { %7239 = vmatpush3.bf16.msra.mxu0 %v7236_v43  ;;  %6385 = vmatprep.mubr.msk.f32.mxu1 %vm9771_vm11, %v3432_v12  ;;  %vm9791_vm11 = vnez %v9622_v58  ;;  %v2662_v43 = vld [vmem:[%s9380_s6 + $0x70] sm:$0xff] }
 0x2b0   : >> { %6609 = vmatprep.mubr.f32.mxu0 %v9760_v1  ;;  %7241 = vmatprep.subr.bf16.mxu0 %v7240_v22  ;;  %v4479_v28 = vsel %vm9788_vm6, %v9787_v47, %v4478_v34  ;;  %v2648_v47 = vld [vmem:[%s9380_s6] sm:$0xff] }
 0x2b1   : >> { %6386 = vmatmul.mubr.f32.gmra.mrb[14].mxu1 %v9254_v40  ;;  %7411 = vmatprep.subr.bf16.mxu1 %v7240_v22 }
 0x2b2   : >> { %6610 = vmatmul.mubr.f32.gmra.mrb[14].mxu0 %v9154_v42  ;;  %7419 = vmatpush3.bf16.msra.mxu1 %v7240_v22  ;;  %v9789_v42 = vld [vmem:[#allocation55_spill] sm:$0xff] }
 0x2b3   : >> { %7243 = vmatpush3.bf16.msra.mxu0 %v7240_v22  ;;  %6644 = vmatprep.mubr.f32.mxu0 %v9065_v25  ;;  %v9792_v25 = vld [vmem:[#allocation59_spill] sm:$0xff] }
 0x2b4   : >> { %6656 = vmatprep.mubr.f32.mxu1 %v9129_v15 }
 0x2b5   : >> { %6657 = vmatmul.mubr.msk.f32.vlgmr.msra.gmra.mrb[16].mxu1 %vm8166_vm12, %v9140_v13  ;;  %v2657_v13 = vld [vmem:[%s9380_s6 + $0x48] sm:$0xff] }
 0x2b6   : >> { %6645 = vmatmul.mubr.msk.f32.vlgmr.msra.gmra.mrb[0].mxu0 %vm8148_vm8, %v9074_v59  ;;  %6659 = vmatprep.mubr.f32.mxu1 %v9148_v21  ;;  %v4494_v59 = vsel %vm9793_vm10, %v4478_v34, %v9792_v25  ;;  %v2685_v34 = vadd.f32 %v9795_v11, %v2663_v30  ;;  %v2684_v25 = vadd.f32 %v9795_v11, %v2662_v43 }
 0x2b7   : >> { %6647 = vmatprep.mubr.f32.mxu0 %v9081_v23 }
 0x2b9   : >> { %6660 = vmatmul.mubr.msk.f32.gmra.mrb[18].mxu1 %vm8170_vm13, %v9160_v54 }
 0x2ba   : >> { %6648 = vmatmul.mubr.msk.f32.gmra.mrb[2].mxu0 %vm8152_vm9, %v9090_v27  ;;  %6662 = vmatprep.mubr.f32.mxu1 %v9169_v51  ;;  %v2679_v51 = vadd.f32 %v9795_v11, %v2657_v13  ;;  %v2671_v13 = vadd.f32 %v9795_v11, %v2649_v16 }
 0x2bb   : >> { %6650 = vmatprep.mubr.f32.mxu0 %v9097_v5 }
 0x2bd   : >> { %6663 = vmatmul.mubr.msk.f32.gmra.mrb[20].mxu1 %vm9790_vm7, %v9789_v42 }
 0x2be   : >> { %6651 = vmatmul.mubr.msk.f32.gmra.mrb[4].mxu0 %vm9791_vm11, %v9106_v14  ;;  %6665 = vmatprep.mubr.f32.mxu1 %v4479_v28 }
 0x2bf   : >> { %6653 = vmatprep.mubr.f32.mxu0 %v9113_v18 }
 0x2c1   : >> { %6666 = vmatmul.mubr.msk.f32.gmra.mrb[22].mxu1 %vm9756_vm15, %v4494_v59 }
 0x2c2   : >> { %6654 = vmatmul.mubr.msk.f32.gmra.mrb[6].mxu0 %vm9794_vm14, %v9122_v60  ;;  %v2656_v60 = vld [vmem:[%s9380_s6 + $0x40] sm:$0xff] }
 0x2c3   : >> { %v2678_v17 = vadd.f32 %v9795_v11, %v2656_v60 }
 0x368   : >> { %v6366_v23 = vpop.f32.mrb[0].mxu1 }
 0x369   : >> { %v9370_v27 = vpop.f32.mrb[1].mxu1 }
 0x36c   : >> { %v9372_v5 = vpop.f32.mrb[2].mxu1 }
 0x36d   : >> { %v9374_v14 = vpop.f32.mrb[3].mxu1 }
 0x370   : >> { %v9376_v15 = vpop.f32.mrb[4].mxu1 }
 0x371   : >> { %v9382_v18 = vpop.f32.mrb[5].mxu1 }
 0x374   : >> { %v9386_v21 = vpop.f32.mrb[6].mxu1 }
 0x375   : >> { %v9388_v54 = vpop.f32.mrb[7].mxu1 }
 0x378   : >> { %v6378_v1 = vpop.f32.mrb[8].mxu1 }
 0x379   : >> { %v7436_v40 = vadd.f32 %v6378_v1, %v2679_v51  ;;  %v6602_v36 = vpop.f32.mrb[8].mxu0  ;;  %v3585_v19 = vpop.f32.mrb[9].mxu1 }
 0x37a   : >> { %v7439_v32 = vadd.f32 %v3585_v19, %v2678_v17  ;;  %v4408_v33 = vpop.f32.mrb[9].mxu0  ;;  %v2670_v17 = vadd.f32 %v9795_v11, %v2648_v47  ;;  %v2655_v47 = vld [vmem:[%s9380_s6 + $0x38] sm:$0xff] }
 0x37b   : >> { %v7437_v52 = vadd.f32 %v7436_v40, %v6602_v36  ;;  %v2650_v36 = vld [vmem:[%s9380_s6 + $0x10] sm:$0xff] }
 0x37c   : >> { %v7440_v9 = vadd.f32 %v7439_v32, %v4408_v33  ;;  %v6381_v55 = vpop.f32.mrb[10].mxu1  ;;  %v7420_v33 = vadd.f32 %v6366_v23, %v2671_v13  ;;  %v2654_v13 = vld [vmem:[%s9380_s6 + $0x30] sm:$0xff] }
 0x37d   : >> { %v7442_v39 = vadd.f32 %v6381_v55, %v2681_v48  ;;  %v6605_v31 = vpop.f32.mrb[10].mxu0  ;;  %v3595_v41 = vpop.f32.mrb[11].mxu1  ;;  %v7422_v55 = vadd.f32 %v9370_v27, %v2670_v17 }
 0x37e   : >> { %v7445_v7 = vadd.f32 %v3595_v41, %v2680_v35  ;;  %v4418_v24 = vpop.f32.mrb[11].mxu0  ;;  %v2673_v35 = vadd.f32 %v9795_v11, %v2651_v29 }
 0x37f   : >> { %v7443_v38 = vadd.f32 %v7442_v39, %v6605_v31  ;;  %v2672_v39 = vadd.f32 %v9795_v11, %v2650_v36  ;;  %v2653_v31 = vld [vmem:[%s9380_s6 + $0x28] sm:$0xff] }
 0x380   : >> { %v7446_v6 = vadd.f32 %v7445_v7, %v4418_v24  ;;  %v6384_v8 = vpop.f32.mrb[12].mxu1  ;;  %v2652_v24 = vld [vmem:[%s9380_s6 + $0x20] sm:$0xff]  ;;  %v7424_v27 = vadd.f32 %v9372_v5, %v2673_v35  ;;  %v2675_v16 = vadd.f32 %v9795_v11, %v2653_v31 }
 0x381   : >> { %v7448_v3 = vadd.f32 %v6384_v8, %v2683_v20  ;;  %v6608_v12 = vpop.f32.mrb[12].mxu0  ;;  %v3605_v22 = vpop.f32.mrb[13].mxu1 }
 0x382   : >> { %v7451_v28 = vadd.f32 %v3605_v22, %v2682_v53  ;;  %v4428_v42 = vpop.f32.mrb[13].mxu0  ;;  %v7426_v22 = vadd.f32 %v9374_v14, %v2672_v39 }
 0x383   : >> { %v7449_v59 = vadd.f32 %v7448_v3, %v6608_v12 }
 0x384   : >> { %v9407_v60 = vadd.f32 %v7451_v28, %v4428_v42  ;;  %v6387_v51 = vpop.f32.mrb[14].mxu1 }
 0x385   : >> { %v7454_v26 = vadd.f32 %v6387_v51, %v2685_v34  ;;  %v6611_v1 = vpop.f32.mrb[14].mxu0  ;;  %v3615_v40 = vpop.f32.mrb[15].mxu1  ;;  %v2674_v34 = vadd.f32 %v9795_v11, %v2652_v24 }
 0x386   : >> { %v7457_v19 = vadd.f32 %v3615_v40, %v2684_v25  ;;  %v4438_v48 = vpop.f32.mrb[15].mxu0 }
 0x387   : >> { %v9412_v32 = vadd.f32 %v7454_v26, %v6611_v1  ;;  %v7428_v26 = vadd.f32 %v9376_v15, %v2675_v16  ;;  %v2677_v1 = vadd.f32 %v9795_v11, %v2655_v47 }
 0x388   : >> { %v9415_v37 = vadd.f32 %v7457_v19, %v4438_v48  ;;  %v6658_v10 = vpop.f32.mrb[16].mxu1  ;;  %v7430_v19 = vadd.f32 %v9382_v18, %v2674_v34  ;;  %v2676_v48 = vadd.f32 %v9795_v11, %v2654_v13 }
 0x389   : >> { %v6646_v41 = vpop.f32.mrb[0].mxu0  ;;  %v7438_v20 = vadd.f32 %v7437_v52, %v6658_v10  ;;  %v4633_v7 = vpop.f32.mrb[17].mxu1  ;;  %v7432_v18 = vadd.f32 %v9386_v21, %v2677_v1 }
 0x38a   : >> { %v7421_v53 = vadd.f32 %v7420_v33, %v6646_v41  ;;  %v4593_v23 = vpop.f32.mrb[1].mxu0  ;;  %v7441_v30 = vadd.f32 %v7440_v9, %v4633_v7 }
 0x38b   : >> { %v4697_v43 = vmax.f32 %v7438_v20, 0.0  ;;  %v7423_v8 = vadd.f32 %v7422_v55, %v4593_v23 }
 0x38c   : >> { %v4689_v3 = vmax.f32 %v7421_v53, 0.0  ;;  %v4696_v52 = vmax.f32 %v7441_v30, 0.0  ;;  %v6661_v12 = vpop.f32.mrb[18].mxu1 }
 0x38d   : >> { %4714 = vst [vmem:[%s9423_s8 + $0x48] sm:$0xff] %v4697_v43  ;;  %v4688_v9 = vmax.f32 %v7423_v8, 0.0  ;;  %v6649_v28 = vpop.f32.mrb[2].mxu0  ;;  %v7444_v42 = vadd.f32 %v7443_v38, %v6661_v12  ;;  %v4643_v25 = vpop.f32.mrb[19].mxu1 }
 0x38e   : >> { %4706 = vst [vmem:[%s9423_s8 + $0x8] sm:$0xff] %v4689_v3  ;;  %4713 = vst [vmem:[%s9423_s8 + $0x40] sm:$0xff] %v4696_v52  ;;  %v7425_v5 = vadd.f32 %v7424_v27, %v6649_v28  ;;  %v4603_v51 = vpop.f32.mrb[3].mxu0  ;;  %v7447_v17 = vadd.f32 %v7446_v6, %v4643_v25 }
 0x38f   : >> { %4705 = vst [vmem:[%s9423_s8] sm:$0xff] %v4688_v9  ;;  %v4699_v29 = vmax.f32 %v7444_v42, 0.0  ;;  %v7427_v14 = vadd.f32 %v7426_v22, %v4603_v51 }
 0x390   : >> { %v4691_v40 = vmax.f32 %v7425_v5, 0.0  ;;  %v4698_v38 = vmax.f32 %v7447_v17, 0.0  ;;  %v6664_v36 = vpop.f32.mrb[20].mxu1 }
 0x391   : >> { %4716 = vst [vmem:[%s9423_s8 + $0x58] sm:$0xff] %v4699_v29  ;;  %v4690_v33 = vmax.f32 %v7427_v14, 0.0  ;;  %v6652_v6 = vpop.f32.mrb[4].mxu0  ;;  %v7450_v35 = vadd.f32 %v7449_v59, %v6664_v36  ;;  %v4653_v10 = vpop.f32.mrb[21].mxu1  ;;  %v7434_v59 = vadd.f32 %v9388_v54, %v2676_v48 }
 0x392   : >> { %4708 = vst [vmem:[%s9423_s8 + $0x18] sm:$0xff] %v4691_v40  ;;  %4715 = vst [vmem:[%s9423_s8 + $0x50] sm:$0xff] %v4698_v38  ;;  %v7429_v55 = vadd.f32 %v7428_v26, %v6652_v6  ;;  %v4613_v15 = vpop.f32.mrb[5].mxu0  ;;  %v7453_v39 = vadd.f32 %v9407_v60, %v4653_v10 }
 0x393   : >> { %4707 = vst [vmem:[%s9423_s8 + $0x10] sm:$0xff] %v4690_v33  ;;  %v4701_v31 = vmax.f32 %v7450_v35, 0.0  ;;  %v7431_v41 = vadd.f32 %v7430_v19, %v4613_v15 }
 0x394   : >> { %v4693_v20 = vmax.f32 %v7429_v55, 0.0  ;;  %v4700_v7 = vmax.f32 %v7453_v39, 0.0  ;;  %v6667_v24 = vpop.f32.mrb[22].mxu1 }
 0x395   : >> { %4718 = vst [vmem:[%s9423_s8 + $0x68] sm:$0xff] %v4701_v31  ;;  %v4692_v53 = vmax.f32 %v7431_v41, 0.0  ;;  %v6655_v23 = vpop.f32.mrb[6].mxu0  ;;  %v7456_v30 = vadd.f32 %v9412_v32, %v6667_v24  ;;  %v4663_v60 = vpop.f32.mrb[23].mxu1  ;;  %2643 = sbr.rel (!%p2641_p0) target bundleno = 530 (0x212), region = 130 }
 0x396   : >> { %4710 = vst [vmem:[%s9423_s8 + $0x28] sm:$0xff] %v4693_v20  ;;  %4717 = vst [vmem:[%s9423_s8 + $0x60] sm:$0xff] %v4700_v7  ;;  %v7433_v43 = vadd.f32 %v7432_v18, %v6655_v23  ;;  %v4623_v8 = vpop.f32.mrb[7].mxu0  ;;  %v7459_v21 = vadd.f32 %v9415_v37, %v4663_v60 }
 0x397   : >> { %4709 = vst [vmem:[%s9423_s8 + $0x20] sm:$0xff] %v4692_v53  ;;  %v4703_v27 = vmax.f32 %v7456_v30, 0.0  ;;  %v7435_v16 = vadd.f32 %v7434_v59, %v4623_v8 }
 0x398   : >> { %v4695_v54 = vmax.f32 %v7433_v43, 0.0  ;;  %v4702_v3 = vmax.f32 %v7459_v21, 0.0 }
 0x399   : >> { %4720 = vst [vmem:[%s9423_s8 + $0x78] sm:$0xff] %v4703_v27  ;;  %v4694_v52 = vmax.f32 %v7435_v16, 0.0 }
 0x39a   : >> { %4712 = vst [vmem:[%s9423_s8 + $0x38] sm:$0xff] %v4695_v54  ;;  %4719 = vst [vmem:[%s9423_s8 + $0x70] sm:$0xff] %v4702_v3 }
 0x39b   : >> { %4711 = vst [vmem:[%s9423_s8 + $0x30] sm:$0xff] %v4694_v52 }
 0x39c   : > { %7756 = shalt.err (!%p7753_p6)
}
 0x39d   : > { %s7757_s10 = scalar_lea.hbm %s9463_s16, 4096  ;;  %s7761_s7 = scalar_lea.hbm %s9515_s5, 8192 }
 0x39e   : > { %p7758_p10 = scmp.ne.s32.totalorder %s9463_s16, %s7757_s10  ;;  %p7762_p8 = scmp.lt.u32.totalorder %s9463_s16, %s9515_s5 }
 0x39f   : > { %p7763_p11 = scmp.lt.u32.totalorder %s7761_s7, %s7757_s10  ;;  %p7765_p2 = scmp.lt.u32.totalorder %s7757_s10, %s9463_s16 }
 0x3a0   : > { %p7759_p4 = pnand %p7758_p10, %p9796_p3 }
 0x3a1   : > { %p7764_p0 = por %p7763_p11, %p7762_p8 }
 0x3a2   : > { %p7760_p5 = pneg %p7759_p4 }
 0x3a3   : > { %p7766_p7 = por %p7765_p2, %p7764_p0 }
 0x3a5   : > { %p7767_p9 = pnand %p7766_p7, %p7760_p5 }
 0x3a7   : > { %7770 = shalt.err (!%p7767_p9)
}
 0x3a8   : > { %s7838_s24 = smov 128   ;;  %s7839_s26 = smov 8  }
 0x3a9   : > { %7574 = dma.vmem_to_hbm [thread:$0]  (%p9796_p3), %s9466_s28, 4096, %s9463_s16, %s4722_s13, %s7838_s24, %s7838_s24, %s7839_s26  }
 0x3aa PF: > { %s4750_s15 = sand.u32 1, %s7809_s18   ;;  %p9797_p12 = scmp.ne.s32.totalorder %s9587_s25, 0 }
 0x3ab   : > { %p9798_p1 = scmp.ge.s32.totalorder %s7821_s21, 2  ;;  %s4751_s9 = scalar_lea.sflag [#allocation6], %s4750_s15 }
 0x3ad   : > { %p7588_p13 = pnand %p9798_p1, %p9797_p12 }
 0x3af   : > { %7804 = dma.done.wait (!%p7588_p13), %s4751_s9, 4096  }
 0x3b0   : > { %7806 = vsyncadd (!%p7588_p13), %s4751_s9, 4294963200  ;;  %p19_p6 = scmp.ge.s32.totalorder %s7986_s29, 4   ;;  %s9799_s18 = smov %s7813_s19 }
 0x3b1   : > { %s9800_s19 = smov %s7817_s20  ;;  %s9801_s20 = smov %s8002_s27 }
 0x3b2   : > { %s9802_s21 = smov %s7986_s29  ;;  %21 = sbr.rel (!%p19_p6) target bundleno = 6 (0x6), region = 141 }
 0x3b9   :  { %4756 = vsyncpa [#allocation5], 1 }
 0x3ba   :  { %4758 = vsyncpa [#allocation5 + $0x1], 1 }
 0x3bb   :  { %4759 = vsyncpa [#allocation8], 1 }
 0x3bc   :  { %4760 = vsyncpa [#allocation6], 1 }
 0x3bd   :  { %4762 = vsyncpa [#allocation6 + $0x1], 1 }

</bundles_post_ra>
